<compile_context>
chip_gen: v7x
topology: tpu7x:2x2x1
jax: 0.10.0
libtpu: 0.0.40
codegen_flags: <defaults>
</compile_context>

<pallas_src>
import jax
import jax.numpy as jnp
from jax.experimental import pallas as pl
from jax.experimental.pallas import tpu as pltpu

BN_EPS = 1e-5


def _bn_relu_fused(h, gamma, beta, *, relu):
    """Training-mode BatchNorm1d (+ optional ReLU), folded to one scale/shift.

    h:           (M, C) f32 pre-BN activations (rows = batch*positions).
    gamma, beta: (1, C) f32 affine parameters.
    """
    inv_m = 1.0 / h.shape[0]
    mean = jnp.sum(h, axis=0, keepdims=True) * inv_m          # (1, C)
    mean_sq = jnp.sum(h * h, axis=0, keepdims=True) * inv_m   # (1, C)
    var = mean_sq - mean * mean                               # biased variance
    scale = gamma * jax.lax.rsqrt(var + BN_EPS)               # (1, C)
    shift = beta - mean * scale                               # (1, C)
    out = h * scale + shift                                   # 2 VALU ops/elem
    return jnp.maximum(out, 0.0) if relu else out


def sc_seg_kernel(x_ref,
                  w1_ref, g1_ref, be1_ref,
                  w2_ref, g2_ref, be2_ref,
                  w3_ref, g3_ref, be3_ref,
                  o_ref):
    B, C_in, N = x_ref.shape
    M = B * N

    # (B, C_in, N) -> channels-last slab (M, C_in); small XLU transpose in VMEM.
    x = jnp.transpose(x_ref[...], (0, 2, 1)).reshape(M, C_in)
    x = x.astype(jnp.bfloat16)

    # layer 1: conv1 (1x1, bias cancelled by BN) -> bn1 -> relu
    h = jnp.dot(x, w1_ref[...], preferred_element_type=jnp.float32)
    h = _bn_relu_fused(h, g1_ref[...], be1_ref[...], relu=True)

    # layer 2: conv2 -> bn2 -> relu
    h = jnp.dot(h.astype(jnp.bfloat16), w2_ref[...],
                preferred_element_type=jnp.float32)
    h = _bn_relu_fused(h, g2_ref[...], be2_ref[...], relu=True)

    # layer 3: conv3 -> bn3 (no relu)
    h = jnp.dot(h.astype(jnp.bfloat16), w3_ref[...],
                preferred_element_type=jnp.float32)
    h = _bn_relu_fused(h, g3_ref[...], be3_ref[...], relu=False)

    # (M, 16) -> (B, 16, N): output stores are lane-dense (last dim = N >= 128).
    o_ref[...] = jnp.transpose(h.reshape(B, N, 16), (0, 2, 1))


def init_params(key, ch_in):
    """PyTorch-default-style init (U(-1/sqrt(fan_in), ..), BN gamma=1, beta=0).
    Conv weights stored as (C_in, C_out) so the kernel does X @ W.  Biases are
    created (to mirror the PyTorch module / reference) but are NOT fed to the
    kernel: training-mode BN cancels them exactly."""
    dims = [(ch_in, 512), (512, 128), (128, 16)]
    params = {}
    for i, (cin, cout) in enumerate(dims, start=1):
        key, kw, kb = jax.random.split(key, 3)
        bound = 1.0 / (cin ** 0.5)
        params[f"w{i}"] = jax.random.uniform(kw, (cin, cout), jnp.float32, -bound, bound)
        params[f"b{i}"] = jax.random.uniform(kb, (1, cout), jnp.float32, -bound, bound)
        params[f"g{i}"] = jnp.ones((1, cout), jnp.float32)
        params[f"be{i}"] = jnp.zeros((1, cout), jnp.float32)
    return params


def _pick_vmem_limit_bytes():
    """Raise the scoped-VMEM limit, leaving headroom below physical capacity
    (v5e/v6e: 128 MiB -> ~96 MiB; v7x: 64 MiB -> ~48 MiB)."""
    try:
        cap = pltpu.get_tpu_info().vmem_capacity_bytes
    except Exception:
        cap = 64 << 20  # conservative fallback (v7x-sized)
    return min(int(cap) * 3 // 4, 100 << 20)


def sc_seg_small_forward(x_ncl, params):
    """x_ncl: (B, C_in, N) float32 (PyTorch NCL layout).  Returns (B, 16, N).

    N should be a multiple of 128 so the output stores stay lane-dense.
    """
    B, C_in, N = x_ncl.shape

    args = (x_ncl,
            params["w1"].astype(jnp.bfloat16), params["g1"], params["be1"],
            params["w2"].astype(jnp.bfloat16), params["g2"], params["be2"],
            params["w3"].astype(jnp.bfloat16), params["g3"], params["be3"])

    def full_spec(shape):
        return pl.BlockSpec(shape, lambda i: (0,) * len(shape))

    return pl.pallas_call(
        sc_seg_kernel,
        out_shape=jax.ShapeDtypeStruct((B, 16, N), jnp.float32),
        grid=(1,),
        in_specs=[full_spec(a.shape) for a in args],
        out_specs=full_spec((B, 16, N)),
        compiler_params=pltpu.CompilerParams(
            dimension_semantics=("arbitrary",),
            vmem_limit_bytes=_pick_vmem_limit_bytes()),
    )(*args)


def _bn_train_ref(h, gamma, beta):
    mean = jnp.mean(h, axis=0, keepdims=True)
    var = jnp.mean((h - mean) ** 2, axis=0, keepdims=True)
    return (h - mean) * jax.lax.rsqrt(var + BN_EPS) * gamma + beta


def _reference_forward(x_ncl, params):
    """Pure-JAX f32 reference of the PyTorch forward (training-mode BN),
    INCLUDING the conv biases that the kernel drops (BN cancels them)."""
    B, C_in, N = x_ncl.shape
    h = jnp.transpose(x_ncl, (0, 2, 1)).reshape(B * N, C_in)
    h = jnp.maximum(_bn_train_ref(h @ params["w1"] + params["b1"],
                                  params["g1"], params["be1"]), 0.0)
    h = jnp.maximum(_bn_train_ref(h @ params["w2"] + params["b2"],
                                  params["g2"], params["be2"]), 0.0)
    h = _bn_train_ref(h @ params["w3"] + params["b3"],
                      params["g3"], params["be3"])
    return jnp.transpose(h.reshape(B, N, 16), (0, 2, 1))


if __name__ == "__main__":
    # Small shapes consistent with the module: (B, ch_in, N); the internal
    # widths 512 -> 128 -> 16 are fixed by the module.  N is a lane multiple.
    B, CH_IN, N = 2, 64, 128

    key = jax.random.PRNGKey(0)
    key, kx = jax.random.split(key)
    x = jax.random.normal(kx, (B, CH_IN, N), dtype=jnp.float32)
    params = init_params(key, CH_IN)

    out = jax.block_until_ready(sc_seg_small_forward(x, params))
    ref = _reference_forward(x, params)

    assert out.shape == (B, 16, N)
    # Tolerance accounts for bf16 MXU operands in the kernel vs. the f32
    # reference; outputs are BN-normalized (O(1)), so this is a ~1-2% band.
    assert jnp.allclose(out, ref, atol=2e-2, rtol=2e-2), "mismatch vs reference"

    print("KERNEL_OK")
</pallas_src>

<mosaic_0001>
module attributes {stable_mosaic.version = 11 : i64} {
  func.func @sc_seg_kernel(%arg0: i32, %arg1: memref<2x64x128xf32, #tpu.memory_space<vmem>>, %arg2: memref<64x512xbf16, #tpu.memory_space<vmem>>, %arg3: memref<1x512xf32, #tpu.memory_space<vmem>>, %arg4: memref<1x512xf32, #tpu.memory_space<vmem>>, %arg5: memref<512x128xbf16, #tpu.memory_space<vmem>>, %arg6: memref<1x128xf32, #tpu.memory_space<vmem>>, %arg7: memref<1x128xf32, #tpu.memory_space<vmem>>, %arg8: memref<128x16xbf16, #tpu.memory_space<vmem>>, %arg9: memref<1x16xf32, #tpu.memory_space<vmem>>, %arg10: memref<1x16xf32, #tpu.memory_space<vmem>>, %arg11: memref<2x16x128xf32, #tpu.memory_space<vmem>>) attributes {dimension_semantics = [#tpu.dimension_semantics<arbitrary>], iteration_bounds = array<i64: 1>, scalar_prefetch = 0 : i64, scratch_operands = 0 : i64, tpu.core_type = #tpu.core_type<tc>, window_params = [{pipeline_mode = #tpu.pipeline_mode<synchronous>, transform_indices = @transform_0, window_bounds = array<i64: 2, 64, 128>}, {pipeline_mode = #tpu.pipeline_mode<synchronous>, transform_indices = @transform_1, window_bounds = array<i64: 64, 512>}, {pipeline_mode = #tpu.pipeline_mode<synchronous>, transform_indices = @transform_2, window_bounds = array<i64: 1, 512>}, {pipeline_mode = #tpu.pipeline_mode<synchronous>, transform_indices = @transform_3, window_bounds = array<i64: 1, 512>}, {pipeline_mode = #tpu.pipeline_mode<synchronous>, transform_indices = @transform_4, window_bounds = array<i64: 512, 128>}, {pipeline_mode = #tpu.pipeline_mode<synchronous>, transform_indices = @transform_5, window_bounds = array<i64: 1, 128>}, {pipeline_mode = #tpu.pipeline_mode<synchronous>, transform_indices = @transform_6, window_bounds = array<i64: 1, 128>}, {pipeline_mode = #tpu.pipeline_mode<synchronous>, transform_indices = @transform_7, window_bounds = array<i64: 128, 16>}, {pipeline_mode = #tpu.pipeline_mode<synchronous>, transform_indices = @transform_8, window_bounds = array<i64: 1, 16>}, {pipeline_mode = #tpu.pipeline_mode<synchronous>, transform_indices = @transform_9, window_bounds = array<i64: 1, 16>}, {pipeline_mode = #tpu.pipeline_mode<synchronous>, transform_indices = @transform_10, window_bounds = array<i64: 2, 16, 128>}]} {
    %c0 = arith.constant 0 : index
    %c0_0 = arith.constant 0 : index
    %c0_1 = arith.constant 0 : index
    %0 = vector.load %arg1[%c0, %c0_0, %c0_1] : memref<2x64x128xf32, #tpu.memory_space<vmem>>, vector<2x64x128xf32>
    %1 = tpu.transpose %0, [0, 2, 1] : vector<2x64x128xf32> -> vector<2x128x64xf32>
    %2 = vector.shape_cast %1 : vector<2x128x64xf32> to vector<256x64xf32>
    %3 = arith.truncf %2 : vector<256x64xf32> to vector<256x64xbf16>
    %c0_2 = arith.constant 0 : index
    %c0_3 = arith.constant 0 : index
    %4 = vector.load %arg2[%c0_2, %c0_3] : memref<64x512xbf16, #tpu.memory_space<vmem>>, vector<64x512xbf16>
    %cst = arith.constant dense<0.000000e+00> : vector<256x512xf32>
    %5 = tpu.matmul %3, %4, %cst {dimension_numbers = #tpu.dot_dimension_numbers<[1], [0], [0], [1], [0, 0, 1, 1], [], []>} : vector<256x64xbf16>, vector<64x512xbf16>, vector<256x512xf32> -> vector<256x512xf32>
    %c0_4 = arith.constant 0 : index
    %c0_5 = arith.constant 0 : index
    %6 = vector.load %arg3[%c0_4, %c0_5] : memref<1x512xf32, #tpu.memory_space<vmem>>, vector<1x512xf32>
    %c0_6 = arith.constant 0 : index
    %c0_7 = arith.constant 0 : index
    %7 = vector.load %arg4[%c0_6, %c0_7] : memref<1x512xf32, #tpu.memory_space<vmem>>, vector<1x512xf32>
    %cst_8 = arith.constant dense<0.000000e+00> : vector<512xf32>
    %8 = vector.multi_reduction <add>, %5, %cst_8 [0] : vector<256x512xf32> to vector<512xf32>
    %9 = vector.shape_cast %8 : vector<512xf32> to vector<1x512xf32>
    %cst_9 = arith.constant 3.906250e-03 : f32
    %10 = vector.broadcast %cst_9 : f32 to vector<1x512xf32>
    %11 = arith.mulf %9, %10 : vector<1x512xf32>
    %12 = arith.mulf %5, %5 : vector<256x512xf32>
    %cst_10 = arith.constant dense<0.000000e+00> : vector<512xf32>
    %13 = vector.multi_reduction <add>, %12, %cst_10 [0] : vector<256x512xf32> to vector<512xf32>
    %14 = vector.shape_cast %13 : vector<512xf32> to vector<1x512xf32>
    %cst_11 = arith.constant 3.906250e-03 : f32
    %15 = vector.broadcast %cst_11 : f32 to vector<1x512xf32>
    %16 = arith.mulf %14, %15 : vector<1x512xf32>
    %17 = arith.mulf %11, %11 : vector<1x512xf32>
    %18 = arith.subf %16, %17 : vector<1x512xf32>
    %cst_12 = arith.constant 9.99999974E-6 : f32
    %19 = vector.broadcast %cst_12 : f32 to vector<1x512xf32>
    %20 = arith.addf %18, %19 : vector<1x512xf32>
    %21 = math.rsqrt %20 : vector<1x512xf32>
    %22 = arith.mulf %6, %21 : vector<1x512xf32>
    %23 = arith.mulf %11, %22 : vector<1x512xf32>
    %24 = arith.subf %7, %23 : vector<1x512xf32>
    %25 = vector.broadcast %22 : vector<1x512xf32> to vector<256x512xf32>
    %26 = arith.mulf %5, %25 : vector<256x512xf32>
    %27 = vector.broadcast %24 : vector<1x512xf32> to vector<256x512xf32>
    %28 = arith.addf %26, %27 : vector<256x512xf32>
    %cst_13 = arith.constant 0.000000e+00 : f32
    %29 = vector.broadcast %cst_13 : f32 to vector<256x512xf32>
    %30 = arith.maximumf %28, %29 : vector<256x512xf32>
    %31 = arith.truncf %30 : vector<256x512xf32> to vector<256x512xbf16>
    %c0_14 = arith.constant 0 : index
    %c0_15 = arith.constant 0 : index
    %32 = vector.load %arg5[%c0_14, %c0_15] : memref<512x128xbf16, #tpu.memory_space<vmem>>, vector<512x128xbf16>
    %cst_16 = arith.constant dense<0.000000e+00> : vector<256x128xf32>
    %33 = tpu.matmul %31, %32, %cst_16 {dimension_numbers = #tpu.dot_dimension_numbers<[1], [0], [0], [1], [0, 0, 1, 1], [], []>} : vector<256x512xbf16>, vector<512x128xbf16>, vector<256x128xf32> -> vector<256x128xf32>
    %c0_17 = arith.constant 0 : index
    %c0_18 = arith.constant 0 : index
    %34 = vector.load %arg6[%c0_17, %c0_18] : memref<1x128xf32, #tpu.memory_space<vmem>>, vector<1x128xf32>
    %c0_19 = arith.constant 0 : index
    %c0_20 = arith.constant 0 : index
    %35 = vector.load %arg7[%c0_19, %c0_20] : memref<1x128xf32, #tpu.memory_space<vmem>>, vector<1x128xf32>
    %cst_21 = arith.constant dense<0.000000e+00> : vector<128xf32>
    %36 = vector.multi_reduction <add>, %33, %cst_21 [0] : vector<256x128xf32> to vector<128xf32>
    %37 = vector.shape_cast %36 : vector<128xf32> to vector<1x128xf32>
    %cst_22 = arith.constant 3.906250e-03 : f32
    %38 = vector.broadcast %cst_22 : f32 to vector<1x128xf32>
    %39 = arith.mulf %37, %38 : vector<1x128xf32>
    %40 = arith.mulf %33, %33 : vector<256x128xf32>
    %cst_23 = arith.constant dense<0.000000e+00> : vector<128xf32>
    %41 = vector.multi_reduction <add>, %40, %cst_23 [0] : vector<256x128xf32> to vector<128xf32>
    %42 = vector.shape_cast %41 : vector<128xf32> to vector<1x128xf32>
    %cst_24 = arith.constant 3.906250e-03 : f32
    %43 = vector.broadcast %cst_24 : f32 to vector<1x128xf32>
    %44 = arith.mulf %42, %43 : vector<1x128xf32>
    %45 = arith.mulf %39, %39 : vector<1x128xf32>
    %46 = arith.subf %44, %45 : vector<1x128xf32>
    %cst_25 = arith.constant 9.99999974E-6 : f32
    %47 = vector.broadcast %cst_25 : f32 to vector<1x128xf32>
    %48 = arith.addf %46, %47 : vector<1x128xf32>
    %49 = math.rsqrt %48 : vector<1x128xf32>
    %50 = arith.mulf %34, %49 : vector<1x128xf32>
    %51 = arith.mulf %39, %50 : vector<1x128xf32>
    %52 = arith.subf %35, %51 : vector<1x128xf32>
    %53 = vector.broadcast %50 : vector<1x128xf32> to vector<256x128xf32>
    %54 = arith.mulf %33, %53 : vector<256x128xf32>
    %55 = vector.broadcast %52 : vector<1x128xf32> to vector<256x128xf32>
    %56 = arith.addf %54, %55 : vector<256x128xf32>
    %cst_26 = arith.constant 0.000000e+00 : f32
    %57 = vector.broadcast %cst_26 : f32 to vector<256x128xf32>
    %58 = arith.maximumf %56, %57 : vector<256x128xf32>
    %59 = arith.truncf %58 : vector<256x128xf32> to vector<256x128xbf16>
    %c0_27 = arith.constant 0 : index
    %c0_28 = arith.constant 0 : index
    %60 = vector.load %arg8[%c0_27, %c0_28] : memref<128x16xbf16, #tpu.memory_space<vmem>>, vector<128x16xbf16>
    %cst_29 = arith.constant dense<0.000000e+00> : vector<256x16xf32>
    %61 = tpu.matmul %59, %60, %cst_29 {dimension_numbers = #tpu.dot_dimension_numbers<[1], [0], [0], [1], [0, 0, 1, 1], [], []>} : vector<256x128xbf16>, vector<128x16xbf16>, vector<256x16xf32> -> vector<256x16xf32>
    %c0_30 = arith.constant 0 : index
    %c0_31 = arith.constant 0 : index
    %62 = vector.load %arg9[%c0_30, %c0_31] : memref<1x16xf32, #tpu.memory_space<vmem>>, vector<1x16xf32>
    %c0_32 = arith.constant 0 : index
    %c0_33 = arith.constant 0 : index
    %63 = vector.load %arg10[%c0_32, %c0_33] : memref<1x16xf32, #tpu.memory_space<vmem>>, vector<1x16xf32>
    %cst_34 = arith.constant dense<0.000000e+00> : vector<16xf32>
    %64 = vector.multi_reduction <add>, %61, %cst_34 [0] : vector<256x16xf32> to vector<16xf32>
    %65 = vector.shape_cast %64 : vector<16xf32> to vector<1x16xf32>
    %cst_35 = arith.constant 3.906250e-03 : f32
    %66 = vector.broadcast %cst_35 : f32 to vector<1x16xf32>
    %67 = arith.mulf %65, %66 : vector<1x16xf32>
    %68 = arith.mulf %61, %61 : vector<256x16xf32>
    %cst_36 = arith.constant dense<0.000000e+00> : vector<16xf32>
    %69 = vector.multi_reduction <add>, %68, %cst_36 [0] : vector<256x16xf32> to vector<16xf32>
    %70 = vector.shape_cast %69 : vector<16xf32> to vector<1x16xf32>
    %cst_37 = arith.constant 3.906250e-03 : f32
    %71 = vector.broadcast %cst_37 : f32 to vector<1x16xf32>
    %72 = arith.mulf %70, %71 : vector<1x16xf32>
    %73 = arith.mulf %67, %67 : vector<1x16xf32>
    %74 = arith.subf %72, %73 : vector<1x16xf32>
    %cst_38 = arith.constant 9.99999974E-6 : f32
    %75 = vector.broadcast %cst_38 : f32 to vector<1x16xf32>
    %76 = arith.addf %74, %75 : vector<1x16xf32>
    %77 = math.rsqrt %76 : vector<1x16xf32>
    %78 = arith.mulf %62, %77 : vector<1x16xf32>
    %79 = arith.mulf %67, %78 : vector<1x16xf32>
    %80 = arith.subf %63, %79 : vector<1x16xf32>
    %81 = vector.broadcast %78 : vector<1x16xf32> to vector<256x16xf32>
    %82 = arith.mulf %61, %81 : vector<256x16xf32>
    %83 = vector.broadcast %80 : vector<1x16xf32> to vector<256x16xf32>
    %84 = arith.addf %82, %83 : vector<256x16xf32>
    %85 = vector.shape_cast %84 : vector<256x16xf32> to vector<2x128x16xf32>
    %86 = tpu.transpose %85, [0, 2, 1] : vector<2x128x16xf32> -> vector<2x16x128xf32>
    %c0_39 = arith.constant 0 : index
    %c0_40 = arith.constant 0 : index
    %c0_41 = arith.constant 0 : index
    %87 = vector.load %arg11[%c0_39, %c0_40, %c0_41] : memref<2x16x128xf32, #tpu.memory_space<vmem>>, vector<2x16x128xf32>
    tpu.vector_store %arg11[%c0_39, %c0_40, %c0_41], %86 {strides = array<i32>} : memref<2x16x128xf32, #tpu.memory_space<vmem>>, vector<2x16x128xf32>,
    return
  }
  func.func @transform_0(%arg0: i32) -> (i32, i32, i32) {
    %c0_i32 = arith.constant 0 : i32
    %c0_i32_0 = arith.constant 0 : i32
    %c0_i32_1 = arith.constant 0 : i32
    %c0_i32_2 = arith.constant 0 : i32
    return %c0_i32, %c0_i32_0, %c0_i32_1 : i32, i32, i32
  }
  func.func @transform_1(%arg0: i32) -> (i32, i32) {
    %c0_i32 = arith.constant 0 : i32
    %c0_i32_0 = arith.constant 0 : i32
    %c0_i32_1 = arith.constant 0 : i32
    return %c0_i32, %c0_i32_0 : i32, i32
  }
  func.func @transform_2(%arg0: i32) -> (i32, i32) {
    %c0_i32 = arith.constant 0 : i32
    %c0_i32_0 = arith.constant 0 : i32
    %c0_i32_1 = arith.constant 0 : i32
    return %c0_i32, %c0_i32_0 : i32, i32
  }
  func.func @transform_3(%arg0: i32) -> (i32, i32) {
    %c0_i32 = arith.constant 0 : i32
    %c0_i32_0 = arith.constant 0 : i32
    %c0_i32_1 = arith.constant 0 : i32
    return %c0_i32, %c0_i32_0 : i32, i32
  }
  func.func @transform_4(%arg0: i32) -> (i32, i32) {
    %c0_i32 = arith.constant 0 : i32
    %c0_i32_0 = arith.constant 0 : i32
    %c0_i32_1 = arith.constant 0 : i32
    return %c0_i32, %c0_i32_0 : i32, i32
  }
  func.func @transform_5(%arg0: i32) -> (i32, i32) {
    %c0_i32 = arith.constant 0 : i32
    %c0_i32_0 = arith.constant 0 : i32
    %c0_i32_1 = arith.constant 0 : i32
    return %c0_i32, %c0_i32_0 : i32, i32
  }
  func.func @transform_6(%arg0: i32) -> (i32, i32) {
    %c0_i32 = arith.constant 0 : i32
    %c0_i32_0 = arith.constant 0 : i32
    %c0_i32_1 = arith.constant 0 : i32
    return %c0_i32, %c0_i32_0 : i32, i32
  }
  func.func @transform_7(%arg0: i32) -> (i32, i32) {
    %c0_i32 = arith.constant 0 : i32
    %c0_i32_0 = arith.constant 0 : i32
    %c0_i32_1 = arith.constant 0 : i32
    return %c0_i32, %c0_i32_0 : i32, i32
  }
  func.func @transform_8(%arg0: i32) -> (i32, i32) {
    %c0_i32 = arith.constant 0 : i32
    %c0_i32_0 = arith.constant 0 : i32
    %c0_i32_1 = arith.constant 0 : i32
    return %c0_i32, %c0_i32_0 : i32, i32
  }
  func.func @transform_9(%arg0: i32) -> (i32, i32) {
    %c0_i32 = arith.constant 0 : i32
    %c0_i32_0 = arith.constant 0 : i32
    %c0_i32_1 = arith.constant 0 : i32
    return %c0_i32, %c0_i32_0 : i32, i32
  }
  func.func @transform_10(%arg0: i32) -> (i32, i32, i32) {
    %c0_i32 = arith.constant 0 : i32
    %c0_i32_0 = arith.constant 0 : i32
    %c0_i32_1 = arith.constant 0 : i32
    %c0_i32_2 = arith.constant 0 : i32
    return %c0_i32, %c0_i32_0, %c0_i32_1 : i32, i32, i32
  }
}

</mosaic_0001>

<bundles_post_ra>
// kernel: tpu_custom_call.1
= control target key start
LH: loop header
LB: loop body
LE: loop exit
PB: predicated region body
PF: predicated region fallthrough
CT: control target
= control target key end

     0   :  { %15 = vsyncpa [#allocation3], 0  ;;  %s6403_s0 = inlined_call_operand.hbm [shape: f32[2,64,128], index: 0, kind: input, shape index: {}]   ;;  %s6404_s1 = inlined_call_operand.hbm [shape: bf16[64,512], index: 1, kind: input, shape index: {}]   ;;  %s6405_s2 = inlined_call_operand.vmem [shape: f32[1,512], index: 2, kind: input, shape index: {}]   ;;  %s6406_s3 = inlined_call_operand.vmem [shape: f32[1,512], index: 3, kind: input, shape index: {}]   ;;  %s6407_s4 = inlined_call_operand.hbm [shape: bf16[512,128], index: 4, kind: input, shape index: {}]   ;;  %s6408_s5 = inlined_call_operand.vmem [shape: f32[1,128], index: 5, kind: input, shape index: {}]   ;;  %s6409_s6 = inlined_call_operand.vmem [shape: f32[1,128], index: 6, kind: input, shape index: {}]   ;;  %s6410_s7 = inlined_call_operand.vmem [shape: bf16[128,16], index: 7, kind: input, shape index: {}]   ;;  %s6411_s8 = inlined_call_operand.vmem [shape: f32[1,16], index: 8, kind: input, shape index: {}]   ;;  %s6412_s9 = inlined_call_operand.vmem [shape: f32[1,16], index: 9, kind: input, shape index: {}]   ;;  %s6413_s10 = inlined_call_operand.hbm [shape: f32[2,16,128], index: 10, kind: output, shape index: {}]  }
   0x1   :  { %16 = vsyncpa [#allocation6], 0 }
   0x2   :  { %17 = vsyncpa [#allocation4], 0  ;;  %s3672_s13 = smov [#allocation5]   ;;  %s3578_s17 = scalar_lea.hbm %s6404_s1, 2048 }
   0x3   :  { %s35_s14 = sshll.u32 %s3672_s13, 4  ;;  %p3579_p0 = scmp.ne.s32.totalorder %s6404_s1, %s3578_s17  ;;  %s36_s14 = int_to_ptr.vmem [resolvable:$true] %s35_s14 }
   0x4   :  { %p3582_p1 = scmp.lt.u32.totalorder %s3578_s17, %s6404_s1 }
   0x6   :  { %p3584_p2 = pnand %p3582_p1, %p3579_p0 }
   0x8   :  { %3587 = shalt.err (!%p3584_p2)
}
   0x9   :  { %s3588_s22 = scalar_lea.vmem %s36_s14, 2048  ;;  %p3593_p4 = scmp.lt.s32.totalorder %s36_s14, %s36_s14 }
   0xa   :  { %p3589_p3 = scmp.ne.s32.totalorder %s36_s14, %s3588_s22  ;;  %p3594_p5 = scmp.lt.s32.totalorder %s3588_s22, %s3588_s22 }
   0xc   :  { %p3595_p6 = por %p3594_p5, %p3593_p4 }
   0xe   :  { %p3596_p7 = pnand %p3595_p6, %p3589_p3 }
  0x10   :  { %3599 = shalt.err (!%p3596_p7)
}
  0x11   :  { %s3673_s23 = smov 256   ;;  %s3674_s24 = smov 16  }
  0x12   :  { %41 = dma.hbm_to_vmem [thread:$0]  %s6404_s1, 2048, %s36_s14, [#allocation6], %s3673_s23, %s3673_s23, %s3674_s24  }
  0x13   :  { %s3675_s27 = smov [#allocation2]   ;;  %s3600_s11 = scalar_lea.hbm %s6403_s0, 2048 }
  0x14   :  { %s23_s28 = sshll.u32 %s3675_s27, 4  ;;  %p3601_p8 = scmp.ne.s32.totalorder %s6403_s0, %s3600_s11  ;;  %s24_s28 = int_to_ptr.vmem [resolvable:$true] %s23_s28 }
  0x15   :  { %p3604_p9 = scmp.lt.u32.totalorder %s3600_s11, %s6403_s0 }
  0x17   :  { %p3606_p10 = pnand %p3604_p9, %p3601_p8 }
  0x19   :  { %3609 = shalt.err (!%p3606_p10)
}
  0x1a   :  { %s3610_s17 = scalar_lea.vmem %s24_s28, 2048  ;;  %p3615_p12 = scmp.lt.s32.totalorder %s24_s28, %s24_s28 }
  0x1b   :  { %p3611_p11 = scmp.ne.s32.totalorder %s24_s28, %s3610_s17  ;;  %p3616_p13 = scmp.lt.s32.totalorder %s3610_s17, %s3610_s17 }
  0x1d   :  { %p3617_p0 = por %p3616_p13, %p3615_p12 }
  0x1f   :  { %p3618_p1 = pnand %p3617_p0, %p3611_p11 }
  0x21   :  { %3621 = shalt.err (!%p3618_p1)
}
  0x22   :  { %s3676_s1 = smov 128   ;;  %s3677_s14 = smov 8  }
  0x23   :  { %29 = dma.hbm_to_vmem [thread:$0]  %s6403_s0, 2048, %s24_s28, [#allocation3], %s3676_s1, %s3676_s1, %s3677_s14  }
  0x24   :  { %s3678_s20 = smov [#allocation7]   ;;  %s3622_s24 = scalar_lea.hbm %s6407_s4, 4096 }
  0x25   :  { %s51_s21 = sshll.u32 %s3678_s20, 4  ;;  %p3623_p2 = scmp.ne.s32.totalorder %s6407_s4, %s3622_s24  ;;  %s52_s21 = int_to_ptr.vmem [resolvable:$true] %s51_s21 }
  0x26   :  { %p3626_p3 = scmp.lt.u32.totalorder %s3622_s24, %s6407_s4 }
  0x28   :  { %p3628_p4 = pnand %p3626_p3, %p3623_p2 }
  0x2a   :  { %3631 = shalt.err (!%p3628_p4)
}
  0x2b   :  { %s3632_s30 = scalar_lea.vmem %s52_s21, 4096  ;;  %p3637_p6 = scmp.lt.s32.totalorder %s52_s21, %s52_s21 }
  0x2c   :  { %p3633_p5 = scmp.ne.s32.totalorder %s52_s21, %s3632_s30  ;;  %p3638_p7 = scmp.lt.s32.totalorder %s3632_s30, %s3632_s30 }
  0x2e   :  { %p3639_p8 = por %p3638_p7, %p3637_p6 }
  0x30   :  { %p3640_p9 = pnand %p3639_p8, %p3633_p5 }
  0x32   :  { %3643 = shalt.err (!%p3640_p9)
}
  0x33   :  { %s3679_s0 = smov 64   ;;  %s3680_s28 = smov 4  }
  0x34   :  { %57 = dma.hbm_to_vmem [thread:$0]  %s6407_s4, 4096, %s52_s21, [#allocation6], %s3679_s0, %s3679_s0, %s3680_s28  }
  0x35   :  { %3666 = dma.done.wait [#allocation3], 2048  }
  0x36   :  { %3667 = vsyncadd [#allocation3], 4294965248 }
  0x37   :  { %3668 = dma.done.wait [#allocation6], 6144  }
  0x38   :  { %3669 = vsyncadd [#allocation6], 4294961152  ;;  %v86_v0 = vld [vmem:[#allocation2 + $0x40] sm:$0xff]  ;;  %v87_v2 = vld [vmem:[#allocation2 + $0x48] sm:$0xff]  ;;  %v3681_v9 = vmov 0   ;;  %vm270_vm0 = vcmask 523264  }
  0x39   :  { %v78_v1 = vld [vmem:[#allocation2] sm:$0xff]  ;;  %126 = vxpose.xlu0.b32.start [1/8] (short) %v86_v0, 128  ;;  %v79_v3 = vld [vmem:[#allocation2 + $0x8] sm:$0xff]  ;;  %v88_v4 = vld [vmem:[#allocation2 + $0x50] sm:$0xff]  ;;  %351 = vmatprep.mubr.bf16.mxu0 %v3681_v9  ;;  %vm2755_vm1 = vcmask 130048  }
  0x3a   :  { %94 = vxpose.xlu1.b32.start [1/8] (short) %v78_v1, 128  ;;  %v80_v5 = vld [vmem:[#allocation2 + $0x10] sm:$0xff]  ;;  %471 = vmatprep.mubr.bf16.mxu1 %v3681_v9  ;;  %v89_v10 = vld [vmem:[#allocation2 + $0x58] sm:$0xff]  ;;  %v90_v14 = vld [vmem:[#allocation2 + $0x60] sm:$0xff] }
  0x3b   :  { %v3502_v6 = vld [vmem:[#allocation5 + $0x4] ss:$16 sps:$4 sm:$0xff]   ;;  %v3504_v7 = vld [vmem:[#allocation5] ss:$16 sps:$4 sm:$0xff]   ;;  %v81_v11 = vld [vmem:[#allocation2 + $0x18] sm:$0xff] }
  0x3c   :  { %v3505_v8 = vld [vmem:[#allocation5 + $0x24] ss:$16 sps:$4 sm:$0xff]   ;;  %319 = vmatprep.subr.bf16.mxu0 %v3502_v6  ;;  %3481 = vmatprep.subr.bf16.mxu1 %v3502_v6  ;;  %v3507_v12 = vld [vmem:[#allocation5 + $0x20] ss:$16 sps:$4 sm:$0xff]   ;;  %v91_v18 = vld [vmem:[#allocation2 + $0x68] sm:$0xff] }
  0x3d   :  { %127 = vxpose.xlu0.b32.cont [2/8] (short) %v87_v2, 128  ;;  %320 = vmatpush1.bf16.msra.mxu0 %v3504_v7  ;;  %v3508_v13 = vld [vmem:[#allocation5 + $0x44] ss:$16 sps:$4 sm:$0xff]   ;;  %v3510_v16 = vld [vmem:[#allocation5 + $0x40] ss:$16 sps:$4 sm:$0xff]   ;;  %v83_v19 = vld [vmem:[#allocation2 + $0x28] sm:$0xff] }
  0x3e   :  { %95 = vxpose.xlu1.b32.cont [2/8] (short) %v79_v3, 128  ;;  %3485 = vmatpush1.bf16.msra.mxu1 %v3504_v7  ;;  %v82_v15 = vld [vmem:[#allocation2 + $0x20] sm:$0xff]  ;;  %v92_v21 = vld [vmem:[#allocation2 + $0x70] sm:$0xff]  ;;  %v93_v23 = vld [vmem:[#allocation2 + $0x78] sm:$0xff] }
  0x3f   :  { %321 = vmatprep.subr.bf16.mxu0 %v3505_v8  ;;  %3482 = vmatprep.subr.bf16.mxu1 %v3505_v8  ;;  %v3511_v17 = vld [vmem:[#allocation5 + $0x64] ss:$16 sps:$4 sm:$0xff]   ;;  %v3513_v20 = vld [vmem:[#allocation5 + $0x60] ss:$16 sps:$4 sm:$0xff]   ;;  %v85_v24 = vld [vmem:[#allocation2 + $0x38] sm:$0xff] }
  0x40   :  { %v84_v22 = vld [vmem:[#allocation2 + $0x30] sm:$0xff]  ;;  %v3516_v25 = vld [vmem:[#allocation5 + $0xc] ss:$16 sps:$4 sm:$0xff]   ;;  %v3514_v54 = vld [vmem:[#allocation5 + $0x8] ss:$16 sps:$4 sm:$0xff]  }
  0x41   :  { %128 = vxpose.xlu0.b32.cont [3/8] (short) %v88_v4, 128  ;;  %322 = vmatpush1.bf16.msra.mxu0 %v3507_v12  ;;  %v3519_v57 = vld [vmem:[#allocation5 + $0x2c] ss:$16 sps:$4 sm:$0xff]   ;;  %v3517_v60 = vld [vmem:[#allocation5 + $0x28] ss:$16 sps:$4 sm:$0xff]  }
  0x42   :  { %96 = vxpose.xlu1.b32.cont [3/8] (short) %v80_v5, 128  ;;  %3486 = vmatpush1.bf16.msra.mxu1 %v3507_v12  ;;  %v3522_v61 = vld [vmem:[#allocation5 + $0x4c] ss:$16 sps:$4 sm:$0xff]   ;;  %v3520_v2 = vld [vmem:[#allocation5 + $0x48] ss:$16 sps:$4 sm:$0xff]  }
  0x43   :  { %323 = vmatprep.subr.bf16.mxu0 %v3508_v13  ;;  %3483 = vmatprep.subr.bf16.mxu1 %v3508_v13  ;;  %v3525_v3 = vld [vmem:[#allocation5 + $0x6c] ss:$16 sps:$4 sm:$0xff]   ;;  %v3523_v6 = vld [vmem:[#allocation5 + $0x68] ss:$16 sps:$4 sm:$0xff]  }
  0x45   :  { %129 = vxpose.xlu0.b32.cont [4/8] (short) %v89_v10, 128  ;;  %324 = vmatpush1.bf16.msra.mxu0 %v3510_v16 }
  0x46   :  { %97 = vxpose.xlu1.b32.cont [4/8] (short) %v81_v11, 128  ;;  %3487 = vmatpush1.bf16.msra.mxu1 %v3510_v16 }
  0x47   :  { %325 = vmatprep.subr.bf16.mxu0 %v3511_v17  ;;  %3484 = vmatprep.subr.bf16.mxu1 %v3511_v17 }
  0x49   :  { %130 = vxpose.xlu0.b32.cont [5/8] (short) %v90_v14, 128  ;;  %326 = vmatpush1.bf16.msra.mxu0 %v3513_v20 }
  0x4a   :  { %98 = vxpose.xlu1.b32.cont [5/8] (short) %v82_v15, 128  ;;  %3488 = vmatpush1.bf16.msra.mxu1 %v3513_v20 }
  0x4b   :  { %512 = vmatprep.subr.bf16.mxu1 %v3516_v25 }
  0x4d   :  { %131 = vxpose.xlu0.b32.cont [6/8] (short) %v91_v18, 128  ;;  %v3526_v18 = vld [vmem:[#allocation7 + $0xc0] sm:$0xff]  }
  0x4e   :  { %99 = vxpose.xlu1.b32.cont [6/8] (short) %v83_v19, 128  ;;  %v3527_v19 = vld [vmem:[#allocation7 + $0x80] sm:$0xff]  }
  0x51   :  { %132 = vxpose.xlu0.b32.cont [7/8] (short) %v92_v21, 128 }
  0x52   :  { %100 = vxpose.xlu1.b32.cont [7/8] (short) %v84_v22, 128 }
  0x55   :  { %133 = vxpose.xlu0.b32.end [8/8] (short) %v93_v23, 128 }
  0x56   :  { %101 = vxpose.xlu1.b32.end [8/8] (short) %v85_v24, 128 }
  0xb9   :  { %v142_v26 = vpop.trf.xlu0 }
  0xba   :  { %v110_v27 = vpop.trf.xlu1 }
  0xbd   :  { %v143_v28 = vpop.trf.xlu0 }
  0xbe   :  { %v111_v29 = vpop.trf.xlu1  ;;  %v3780_v30 = vpack.c.bf16 %v143_v28, %v142_v26 }
  0xbf   :  { %v3782_v31 = vpack.c.bf16 %v111_v29, %v110_v27 }
  0xc1   :  { %3113 = vmatmul.mubr.msk.bf16.vlgmr.msra.gmra.mrb[0].mxu0 %vm270_vm0, %v3782_v31  ;;  %v144_v32 = vpop.trf.xlu0 }
  0xc2   :  { %v112_v33 = vpop.trf.xlu1  ;;  %361 = vmatprep.mubr.bf16.mxu0 %v3681_v9 }
  0xc5   :  { %v145_v34 = vpop.trf.xlu0 }
  0xc6   :  { %v113_v35 = vpop.trf.xlu1  ;;  %v3787_v36 = vpack.c.bf16 %v145_v34, %v144_v32 }
  0xc7   :  { %v3789_v37 = vpack.c.bf16 %v113_v35, %v112_v33 }
  0xc9   :  { %3114 = vmatmul.mubr.msk.bf16.gmra.mrb[4].mxu0 %vm270_vm0, %v3789_v37  ;;  %v146_v38 = vpop.trf.xlu0 }
  0xca   :  { %v114_v39 = vpop.trf.xlu1  ;;  %371 = vmatprep.mubr.bf16.mxu0 %v3681_v9 }
  0xcd   :  { %v147_v40 = vpop.trf.xlu0 }
  0xce   :  { %v115_v41 = vpop.trf.xlu1  ;;  %v3794_v42 = vpack.c.bf16 %v147_v40, %v146_v38 }
  0xcf   :  { %v3796_v43 = vpack.c.bf16 %v115_v41, %v114_v39 }
  0xd1   :  { %3115 = vmatmul.mubr.msk.bf16.gmra.mrb[8].mxu0 %vm270_vm0, %v3796_v43  ;;  %v148_v44 = vpop.trf.xlu0 }
  0xd2   :  { %v116_v45 = vpop.trf.xlu1  ;;  %381 = vmatprep.mubr.bf16.mxu0 %v3681_v9 }
  0xd5   :  { %v149_v46 = vpop.trf.xlu0 }
  0xd6   :  { %v117_v47 = vpop.trf.xlu1  ;;  %v3801_v48 = vpack.c.bf16 %v149_v46, %v148_v44 }
  0xd7   :  { %v3803_v49 = vpack.c.bf16 %v117_v47, %v116_v45  ;;  %v3528_v47 = vld [vmem:[#allocation7 + $0xc8] sm:$0xff]  }
  0xd9   :  { %3116 = vmatmul.mubr.msk.bf16.gmra.mrb[12].mxu0 %vm270_vm0, %v3803_v49  ;;  %v150_v50 = vpop.trf.xlu0 }
  0xda   :  { %v118_v51 = vpop.trf.xlu1  ;;  %391 = vmatprep.mubr.bf16.mxu0 %v3681_v9 }
  0xdd   :  { %v151_v52 = vpop.trf.xlu0 }
  0xde   :  { %v119_v53 = vpop.trf.xlu1  ;;  %v3808_v55 = vpack.c.bf16 %v151_v52, %v150_v50 }
  0xdf   :  { %v3810_v56 = vpack.c.bf16 %v119_v53, %v118_v51 }
  0xe0   :  { %3125 = vmatmul.mubr.msk.bf16.vlgmr.msra.gmra.mrb[0].mxu1 %vm270_vm0, %v3808_v55 }
  0xe1   :  { %3117 = vmatmul.mubr.msk.bf16.gmra.mrb[16].mxu0 %vm270_vm0, %v3810_v56  ;;  %513 = vmatpush1.bf16.msra.mxu1 %v3514_v54  ;;  %v152_v58 = vpop.trf.xlu0 }
  0xe2   :  { %v120_v59 = vpop.trf.xlu1  ;;  %401 = vmatprep.mubr.bf16.mxu0 %v3681_v9  ;;  %481 = vmatprep.mubr.bf16.mxu1 %v3681_v9 }
  0xe3   :  { %514 = vmatprep.subr.bf16.mxu1 %v3519_v57 }
  0xe5   :  { %v153_v62 = vpop.trf.xlu0  ;;  %515 = vmatpush1.bf16.msra.mxu1 %v3517_v60 }
  0xe6   :  { %v121_v63 = vpop.trf.xlu1  ;;  %v3818_v0 = vpack.c.bf16 %v153_v62, %v152_v58  ;;  %516 = vmatprep.subr.bf16.mxu1 %v3522_v61 }
  0xe7   :  { %v163_v1 = vpack.c.bf16 %v121_v63, %v120_v59 }
  0xe8   :  { %3126 = vmatmul.mubr.msk.bf16.gmra.mrb[4].mxu1 %vm270_vm0, %v3818_v0 }
  0xe9   :  { %3118 = vmatmul.mubr.msk.bf16.gmra.mrb[20].mxu0 %vm270_vm0, %v163_v1  ;;  %v154_v4 = vpop.trf.xlu0  ;;  %491 = vmatprep.mubr.bf16.mxu1 %v3681_v9 }
  0xea   :  { %v122_v5 = vpop.trf.xlu1  ;;  %411 = vmatprep.mubr.bf16.mxu0 %v3681_v9  ;;  %517 = vmatpush1.bf16.msra.mxu1 %v3520_v2 }
  0xeb   :  { %518 = vmatprep.subr.bf16.mxu1 %v3525_v3 }
  0xed   :  { %v155_v7 = vpop.trf.xlu0 }
  0xee   :  { %v123_v8 = vpop.trf.xlu1  ;;  %v172_v10 = vpack.c.bf16 %v155_v7, %v154_v4  ;;  %519 = vmatpush1.bf16.msra.mxu1 %v3523_v6 }
  0xef   :  { %v164_v11 = vpack.c.bf16 %v123_v8, %v122_v5  ;;  %3297 = vmatprep.subr.bf16.mxu1 %v3526_v18  ;;  %v3530_v18 = vld [vmem:[#allocation7 + $0x40] sm:$0xff]  }
  0xf0   :  { %3127 = vmatmul.mubr.msk.bf16.gmra.mrb[8].mxu1 %vm270_vm0, %v172_v10  ;;  %3185 = vmatprep.subr.bf16.mxu0 %v3530_v18 }
  0xf1   :  { %3119 = vmatmul.mubr.msk.bf16.gmra.mrb[24].mxu0 %vm270_vm0, %v164_v11  ;;  %v156_v12 = vpop.trf.xlu0  ;;  %501 = vmatprep.mubr.bf16.mxu1 %v3681_v9 }
  0xf2   :  { %v124_v13 = vpop.trf.xlu1  ;;  %421 = vmatprep.mubr.bf16.mxu0 %v3681_v9 }
  0xf5   :  { %v157_v14 = vpop.trf.xlu0 }
  0xf6   :  { %v125_v15 = vpop.trf.xlu1  ;;  %v173_v16 = vpack.c.bf16 %v157_v14, %v156_v12 }
  0xf7   :  { %v165_v17 = vpack.c.bf16 %v125_v15, %v124_v13 }
  0xf8   :  { %3128 = vmatmul.mubr.msk.bf16.gmra.mrb[12].mxu1 %vm270_vm0, %v173_v16 }
  0xf9   :  { %3120 = vmatmul.mubr.msk.bf16.gmra.mrb[28].mxu0 %vm270_vm0, %v165_v17  ;;  %544 = vmatprep.mubr.bf16.mxu1 %v3681_v9 }
  0xfa   :  { %431 = vmatprep.mubr.bf16.mxu0 %v3681_v9 }
 0x100   :  { %3129 = vmatmul.mubr.msk.bf16.vlgmr.msra.gmra.mrb[16].mxu1 %vm270_vm0, %v3782_v31 }
 0x101   :  { %3121 = vmatmul.mubr.msk.bf16.gmra.mrb[32].mxu0 %vm270_vm0, %v3780_v30  ;;  %554 = vmatprep.mubr.bf16.mxu1 %v3681_v9 }
 0x102   :  { %441 = vmatprep.mubr.bf16.mxu0 %v3681_v9  ;;  %3298 = vmatpush3.bf16.msra.mxu1 %v3527_v19  ;;  %v3531_v19 = vld [vmem:[#allocation7 + $0xd0] sm:$0xff]  }
 0x103   :  { %3299 = vmatprep.subr.bf16.mxu1 %v3528_v47 }
 0x108   :  { %3130 = vmatmul.mubr.msk.bf16.gmra.mrb[20].mxu1 %vm270_vm0, %v3789_v37 }
 0x109   :  { %3122 = vmatmul.mubr.msk.bf16.gmra.mrb[36].mxu0 %vm270_vm0, %v3787_v36  ;;  %564 = vmatprep.mubr.bf16.mxu1 %v3681_v9 }
 0x10a   :  { %451 = vmatprep.mubr.bf16.mxu0 %v3681_v9 }
 0x110   :  { %3131 = vmatmul.mubr.msk.bf16.gmra.mrb[24].mxu1 %vm270_vm0, %v3796_v43 }
 0x111   :  { %3123 = vmatmul.mubr.msk.bf16.gmra.mrb[40].mxu0 %vm270_vm0, %v3794_v42  ;;  %574 = vmatprep.mubr.bf16.mxu1 %v3681_v9 }
 0x112   :  { %461 = vmatprep.mubr.bf16.mxu0 %v3681_v9 }
 0x118   :  { %3132 = vmatmul.mubr.msk.bf16.gmra.mrb[28].mxu1 %vm270_vm0, %v3803_v49 }
 0x119   :  { %3124 = vmatmul.mubr.msk.bf16.gmra.mrb[44].mxu0 %vm270_vm0, %v3801_v48  ;;  %584 = vmatprep.mubr.bf16.mxu1 %v3681_v9 }
 0x120   :  { %3133 = vmatmul.mubr.msk.bf16.gmra.mrb[32].mxu1 %vm270_vm0, %v3810_v56 }
 0x121   :  { %594 = vmatprep.mubr.bf16.mxu1 %v3681_v9 }
 0x128   :  { %3134 = vmatmul.mubr.msk.bf16.gmra.mrb[36].mxu1 %vm270_vm0, %v163_v1 }
 0x129   :  { %604 = vmatprep.mubr.bf16.mxu1 %v3681_v9 }
 0x130   :  { %3135 = vmatmul.mubr.msk.bf16.gmra.mrb[40].mxu1 %vm270_vm0, %v164_v11 }
 0x131   :  { %614 = vmatprep.mubr.bf16.mxu1 %v3681_v9 }
 0x138   :  { %3136 = vmatmul.mubr.msk.bf16.gmra.mrb[44].mxu1 %vm270_vm0, %v165_v17 }
 0x139   :  { %624 = vmatprep.mubr.bf16.mxu1 %v3681_v9 }
 0x140   :  { %3137 = vmatmul.mubr.msk.bf16.gmra.mrb[48].mxu1 %vm270_vm0, %v3780_v30 }
 0x141   :  { %634 = vmatprep.mubr.bf16.mxu1 %v3681_v9 }
 0x148   :  { %3138 = vmatmul.mubr.msk.bf16.gmra.mrb[52].mxu1 %vm270_vm0, %v3787_v36 }
 0x149   :  { %644 = vmatprep.mubr.bf16.mxu1 %v3681_v9 }
 0x150   :  { %3139 = vmatmul.mubr.msk.bf16.gmra.mrb[56].mxu1 %vm270_vm0, %v3794_v42 }
 0x151   :  { %654 = vmatprep.mubr.bf16.mxu1 %v3681_v9 }
 0x158   :  { %3140 = vmatmul.mubr.msk.bf16.gmra.mrb[60].mxu1 %vm270_vm0, %v3801_v48  ;;  %v3529_v48 = vld [vmem:[#allocation7 + $0x88] sm:$0xff]  }
 0x159   :  { %664 = vmatprep.mubr.bf16.mxu1 %v3681_v9  ;;  %3300 = vmatpush3.bf16.msra.mxu1 %v3529_v48 }
 0x15a   :  { %3301 = vmatprep.subr.bf16.mxu1 %v3531_v19 }
 0x160   :  { %3141 = vmatmul.mubr.msk.bf16.gmra.mrb[64].mxu1 %vm270_vm0, %v3808_v55 }
 0x161   :  { %674 = vmatprep.mubr.bf16.mxu1 %v3681_v9 }
 0x168   :  { %3142 = vmatmul.mubr.msk.bf16.gmra.mrb[68].mxu1 %vm270_vm0, %v3818_v0 }
 0x169   :  { %684 = vmatprep.mubr.bf16.mxu1 %v3681_v9 }
 0x170   :  { %3143 = vmatmul.mubr.msk.bf16.gmra.mrb[72].mxu1 %vm270_vm0, %v172_v10 }
 0x171   :  { %694 = vmatprep.mubr.bf16.mxu1 %v3681_v9 }
 0x178   :  { %3144 = vmatmul.mubr.msk.bf16.gmra.mrb[76].mxu1 %vm270_vm0, %v173_v16 }
 0x194   :  { %v3886_v20 = vpop.f32.mrb[0].mxu0 }
 0x195   :  { %v859_v21 = vmul.f32 %v3886_v20, %v3886_v20  ;;  %v3890_v22 = vpop.f32.mrb[1].mxu0 }
 0x196   :  { %v860_v23 = vmul.f32 %v3890_v22, %v3890_v22  ;;  %v3894_v24 = vpop.f32.mrb[2].mxu0 }
 0x197   :  { %v707_v9 = vadd.f32 %v3894_v24, %v3886_v20  ;;  %v863_v25 = vmul.f32 %v3894_v24, %v3894_v24  ;;  %v3900_v26 = vpop.f32.mrb[3].mxu0 }
 0x198   :  { %v744_v27 = vadd.f32 %v3900_v26, %v3890_v22  ;;  %v864_v28 = vmul.f32 %v3900_v26, %v3900_v26 }
 0x199   :  { %v987_v29 = vadd.f32 %v863_v25, %v859_v21  ;;  %v3532_v21 = vld [vmem:[#allocation7] sm:$0xff]  }
 0x19a   :  { %v1024_v30 = vadd.f32 %v864_v28, %v860_v23  ;;  %v3533_v23 = vld [vmem:[#allocation7 + $0x90] sm:$0xff]   ;;  %3186 = vmatpush3.bf16.msra.mxu0 %v3532_v21 }
 0x19b   :  { %3302 = vmatpush3.bf16.msra.mxu1 %v3533_v23 }
 0x19c   :  { %v3906_v31 = vpop.f32.mrb[4].mxu0 }
 0x19d   :  { %v708_v32 = vadd.f32 %v707_v9, %v3906_v31  ;;  %v867_v33 = vmul.f32 %v3906_v31, %v3906_v31  ;;  %v3911_v34 = vpop.f32.mrb[5].mxu0 }
 0x19e   :  { %v745_v35 = vadd.f32 %v744_v27, %v3911_v34  ;;  %v868_v36 = vmul.f32 %v3911_v34, %v3911_v34  ;;  %v3916_v37 = vpop.f32.mrb[6].mxu0 }
 0x19f   :  { %v988_v38 = vadd.f32 %v987_v29, %v867_v33  ;;  %v709_v39 = vadd.f32 %v708_v32, %v3916_v37  ;;  %v871_v40 = vmul.f32 %v3916_v37, %v3916_v37  ;;  %v3921_v41 = vpop.f32.mrb[7].mxu0 }
 0x1a0   :  { %v1025_v42 = vadd.f32 %v1024_v30, %v868_v36  ;;  %v746_v43 = vadd.f32 %v745_v35, %v3921_v41  ;;  %v872_v44 = vmul.f32 %v3921_v41, %v3921_v41 }
 0x1a1   :  { %v989_v45 = vadd.f32 %v988_v38, %v871_v40 }
 0x1a2   :  { %v1026_v46 = vadd.f32 %v1025_v42, %v872_v44 }
 0x1a4   :  { %v3926_v49 = vpop.f32.mrb[8].mxu0 }
 0x1a5   :  { %6511 = vst [vmem:[#allocation12_spill] sm:$0xff] %v3926_v49  ;;  %v710_v50 = vadd.f32 %v709_v39, %v3926_v49  ;;  %v875_v51 = vmul.f32 %v3926_v49, %v3926_v49  ;;  %v3931_v52 = vpop.f32.mrb[9].mxu0 }
 0x1a6   :  { %6512 = vst [vmem:[#allocation13_spill] sm:$0xff] %v3931_v52  ;;  %v747_v53 = vadd.f32 %v746_v43, %v3931_v52  ;;  %v876_v54 = vmul.f32 %v3931_v52, %v3931_v52  ;;  %v3936_v55 = vpop.f32.mrb[10].mxu0 }
 0x1a7   :  { %6513 = vst [vmem:[#allocation14_spill] sm:$0xff] %v3936_v55  ;;  %v990_v56 = vadd.f32 %v989_v45, %v875_v51  ;;  %v711_v57 = vadd.f32 %v710_v50, %v3936_v55  ;;  %v879_v58 = vmul.f32 %v3936_v55, %v3936_v55  ;;  %v3941_v59 = vpop.f32.mrb[11].mxu0 }
 0x1a8   :  { %6514 = vst [vmem:[#allocation15_spill] sm:$0xff] %v3941_v59  ;;  %v1027_v60 = vadd.f32 %v1026_v46, %v876_v54  ;;  %v748_v61 = vadd.f32 %v747_v53, %v3941_v59  ;;  %v880_v62 = vmul.f32 %v3941_v59, %v3941_v59 }
 0x1a9   :  { %v991_v63 = vadd.f32 %v990_v56, %v879_v58 }
 0x1aa   :  { %v1028_v0 = vadd.f32 %v1027_v60, %v880_v62 }
 0x1ac   :  { %v3946_v1 = vpop.f32.mrb[12].mxu0 }
 0x1ad   :  { %6515 = vst [vmem:[#allocation16_spill] sm:$0xff] %v3946_v1  ;;  %v712_v2 = vadd.f32 %v711_v57, %v3946_v1  ;;  %v883_v3 = vmul.f32 %v3946_v1, %v3946_v1  ;;  %v3951_v4 = vpop.f32.mrb[13].mxu0 }
 0x1ae   :  { %6516 = vst [vmem:[#allocation17_spill] sm:$0xff] %v3951_v4  ;;  %v749_v5 = vadd.f32 %v748_v61, %v3951_v4  ;;  %v884_v6 = vmul.f32 %v3951_v4, %v3951_v4  ;;  %v3956_v7 = vpop.f32.mrb[14].mxu0 }
 0x1af   :  { %6517 = vst [vmem:[#allocation18_spill] sm:$0xff] %v3956_v7  ;;  %v992_v8 = vadd.f32 %v991_v63, %v883_v3  ;;  %v713_v10 = vadd.f32 %v712_v2, %v3956_v7  ;;  %v887_v11 = vmul.f32 %v3956_v7, %v3956_v7  ;;  %v3961_v12 = vpop.f32.mrb[15].mxu0 }
 0x1b0   :  { %6518 = vst [vmem:[#allocation19_spill] sm:$0xff] %v3961_v12  ;;  %v1029_v13 = vadd.f32 %v1028_v0, %v884_v6  ;;  %v750_v14 = vadd.f32 %v749_v5, %v3961_v12  ;;  %v888_v15 = vmul.f32 %v3961_v12, %v3961_v12 }
 0x1b1   :  { %v993_v16 = vadd.f32 %v992_v8, %v887_v11  ;;  %v3534_v11 = vld [vmem:[#allocation7 + $0x48] sm:$0xff]  }
 0x1b2   :  { %v1030_v17 = vadd.f32 %v1029_v13, %v888_v15  ;;  %3187 = vmatprep.subr.bf16.mxu0 %v3534_v11 }
 0x1b3   :  { %v3966_v9 = vpop.f32.mrb[0].mxu1 }
 0x1b4   :  { %6519 = vst [vmem:[#allocation20_spill] sm:$0xff] %v3966_v9  ;;  %v3968_v25 = vpop.f32.mrb[16].mxu0  ;;  %v3970_v27 = vpop.f32.mrb[1].mxu1 }
 0x1b5   :  { %6520 = vst [vmem:[#allocation21_spill] sm:$0xff] %v3968_v25  ;;  %6521 = vst [vmem:[#allocation22_spill] sm:$0xff] %v3970_v27  ;;  %v714_v28 = vadd.f32 %v713_v10, %v3968_v25  ;;  %v891_v29 = vmul.f32 %v3968_v25, %v3968_v25  ;;  %v3975_v30 = vpop.f32.mrb[17].mxu0  ;;  %v3977_v32 = vpop.f32.mrb[2].mxu1 }
 0x1b6   :  { %6522 = vst [vmem:[#allocation23_spill] sm:$0xff] %v3975_v30  ;;  %6523 = vst [vmem:[#allocation24_spill] sm:$0xff] %v3977_v32  ;;  %v751_v33 = vadd.f32 %v750_v14, %v3975_v30  ;;  %v892_v35 = vmul.f32 %v3975_v30, %v3975_v30  ;;  %v3982_v36 = vpop.f32.mrb[18].mxu0  ;;  %v3984_v38 = vpop.f32.mrb[3].mxu1  ;;  %v3535_v14 = vld [vmem:[#allocation7 + $0x8] sm:$0xff]  }
 0x1b7   :  { %6524 = vst [vmem:[#allocation25_spill] sm:$0xff] %v3982_v36  ;;  %6525 = vst [vmem:[#allocation26_spill] sm:$0xff] %v3984_v38  ;;  %v994_v39 = vadd.f32 %v993_v16, %v891_v29  ;;  %v715_v40 = vadd.f32 %v714_v28, %v3982_v36  ;;  %v895_v42 = vmul.f32 %v3982_v36, %v3982_v36  ;;  %v3989_v43 = vpop.f32.mrb[19].mxu0  ;;  %v3536_v16 = vld [vmem:[#allocation7 + $0xd8] sm:$0xff]   ;;  %3188 = vmatpush3.bf16.msra.mxu0 %v3535_v14 }
 0x1b8   :  { %6526 = vst [vmem:[#allocation27_spill] sm:$0xff] %v3989_v43  ;;  %v1031_v44 = vadd.f32 %v1030_v17, %v892_v35  ;;  %v752_v45 = vadd.f32 %v751_v33, %v3989_v43  ;;  %v896_v46 = vmul.f32 %v3989_v43, %v3989_v43  ;;  %v3537_v17 = vld [vmem:[#allocation7 + $0x98] sm:$0xff]   ;;  %3303 = vmatprep.subr.bf16.mxu1 %v3536_v16 }
 0x1b9   :  { %v995_v47 = vadd.f32 %v994_v39, %v895_v42  ;;  %3304 = vmatpush3.bf16.msra.mxu1 %v3537_v17 }
 0x1ba   :  { %v1032_v48 = vadd.f32 %v1031_v44, %v896_v46 }
 0x1bb   :  { %v3994_v50 = vpop.f32.mrb[4].mxu1 }
 0x1bc   :  { %6527 = vst [vmem:[#allocation28_spill] sm:$0xff] %v3994_v50  ;;  %v3996_v51 = vpop.f32.mrb[20].mxu0  ;;  %v3998_v53 = vpop.f32.mrb[5].mxu1 }
 0x1bd   :  { %6528 = vst [vmem:[#allocation29_spill] sm:$0xff] %v3996_v51  ;;  %6529 = vst [vmem:[#allocation30_spill] sm:$0xff] %v3998_v53  ;;  %v716_v54 = vadd.f32 %v715_v40, %v3996_v51  ;;  %v899_v56 = vmul.f32 %v3996_v51, %v3996_v51  ;;  %v4003_v57 = vpop.f32.mrb[21].mxu0  ;;  %v4005_v58 = vpop.f32.mrb[6].mxu1 }
 0x1be   :  { %6530 = vst [vmem:[#allocation31_spill] sm:$0xff] %v4003_v57  ;;  %6531 = vst [vmem:[#allocation32_spill] sm:$0xff] %v4005_v58  ;;  %v753_v60 = vadd.f32 %v752_v45, %v4003_v57  ;;  %v900_v61 = vmul.f32 %v4003_v57, %v4003_v57  ;;  %v4010_v62 = vpop.f32.mrb[22].mxu0  ;;  %v4012_v63 = vpop.f32.mrb[7].mxu1 }
 0x1bf   :  { %6532 = vst [vmem:[#allocation33_spill] sm:$0xff] %v4010_v62  ;;  %6533 = vst [vmem:[#allocation34_spill] sm:$0xff] %v4012_v63  ;;  %v996_v0 = vadd.f32 %v995_v47, %v899_v56  ;;  %v717_v2 = vadd.f32 %v716_v54, %v4010_v62  ;;  %v903_v3 = vmul.f32 %v4010_v62, %v4010_v62  ;;  %v4017_v5 = vpop.f32.mrb[23].mxu0 }
 0x1c0   :  { %6534 = vst [vmem:[#allocation35_spill] sm:$0xff] %v4017_v5  ;;  %v1033_v6 = vadd.f32 %v1032_v48, %v900_v61  ;;  %v754_v8 = vadd.f32 %v753_v60, %v4017_v5  ;;  %v904_v10 = vmul.f32 %v4017_v5, %v4017_v5 }
 0x1c1   :  { %v997_v13 = vadd.f32 %v996_v0, %v903_v3  ;;  %v3538_v0 = vld [vmem:[#allocation7 + $0x50] sm:$0xff]  }
 0x1c2   :  { %v1034_v15 = vadd.f32 %v1033_v6, %v904_v10  ;;  %3189 = vmatprep.subr.bf16.mxu0 %v3538_v0 }
 0x1c3   :  { %v4022_v18 = vpop.f32.mrb[8].mxu1 }
 0x1c4   :  { %6535 = vst [vmem:[#allocation36_spill] sm:$0xff] %v4022_v18  ;;  %v4024_v19 = vpop.f32.mrb[24].mxu0  ;;  %v4026_v21 = vpop.f32.mrb[9].mxu1 }
 0x1c5   :  { %6536 = vst [vmem:[#allocation37_spill] sm:$0xff] %v4024_v19  ;;  %6537 = vst [vmem:[#allocation38_spill] sm:$0xff] %v4026_v21  ;;  %v718_v23 = vadd.f32 %v717_v2, %v4024_v19  ;;  %v907_v28 = vmul.f32 %v4024_v19, %v4024_v19  ;;  %v4031_v29 = vpop.f32.mrb[25].mxu0  ;;  %v4033_v33 = vpop.f32.mrb[10].mxu1  ;;  %v3539_v2 = vld [vmem:[#allocation7 + $0x10] sm:$0xff]  }
 0x1c6   :  { %6538 = vst [vmem:[#allocation39_spill] sm:$0xff] %v4031_v29  ;;  %6539 = vst [vmem:[#allocation40_spill] sm:$0xff] %v4033_v33  ;;  %v755_v35 = vadd.f32 %v754_v8, %v4031_v29  ;;  %v908_v39 = vmul.f32 %v4031_v29, %v4031_v29  ;;  %v4038_v40 = vpop.f32.mrb[26].mxu0  ;;  %v4040_v42 = vpop.f32.mrb[11].mxu1  ;;  %3190 = vmatpush3.bf16.msra.mxu0 %v3539_v2 }
 0x1c7   :  { %6540 = vst [vmem:[#allocation41_spill] sm:$0xff] %v4038_v40  ;;  %6541 = vst [vmem:[#allocation42_spill] sm:$0xff] %v4040_v42  ;;  %v998_v44 = vadd.f32 %v997_v13, %v907_v28  ;;  %v719_v45 = vadd.f32 %v718_v23, %v4038_v40  ;;  %v911_v46 = vmul.f32 %v4038_v40, %v4038_v40  ;;  %v4045_v47 = vpop.f32.mrb[27].mxu0 }
 0x1c8   :  { %6542 = vst [vmem:[#allocation43_spill] sm:$0xff] %v4045_v47  ;;  %v1035_v48 = vadd.f32 %v1034_v15, %v908_v39  ;;  %v756_v54 = vadd.f32 %v755_v35, %v4045_v47  ;;  %v912_v56 = vmul.f32 %v4045_v47, %v4045_v47 }
 0x1c9   :  { %v999_v60 = vadd.f32 %v998_v44, %v911_v46 }
 0x1ca   :  { %v1036_v61 = vadd.f32 %v1035_v48, %v912_v56 }
 0x1cb   :  { %v4050_v3 = vpop.f32.mrb[12].mxu1 }
 0x1cc   :  { %6543 = vst [vmem:[#allocation44_spill] sm:$0xff] %v4050_v3  ;;  %v4052_v6 = vpop.f32.mrb[28].mxu0  ;;  %v4054_v8 = vpop.f32.mrb[13].mxu1 }
 0x1cd   :  { %6544 = vst [vmem:[#allocation45_spill] sm:$0xff] %v4052_v6  ;;  %6545 = vst [vmem:[#allocation46_spill] sm:$0xff] %v4054_v8  ;;  %v720_v10 = vadd.f32 %v719_v45, %v4052_v6  ;;  %v915_v11 = vmul.f32 %v4052_v6, %v4052_v6  ;;  %v4059_v13 = vpop.f32.mrb[29].mxu0  ;;  %v4061_v14 = vpop.f32.mrb[14].mxu1 }
 0x1ce   :  { %6546 = vst [vmem:[#allocation47_spill] sm:$0xff] %v4059_v13  ;;  %6547 = vst [vmem:[#allocation48_spill] sm:$0xff] %v4061_v14  ;;  %v757_v15 = vadd.f32 %v756_v54, %v4059_v13  ;;  %v916_v16 = vmul.f32 %v4059_v13, %v4059_v13  ;;  %v4066_v17 = vpop.f32.mrb[30].mxu0  ;;  %v4068_v23 = vpop.f32.mrb[15].mxu1 }
 0x1cf   :  { %6548 = vst [vmem:[#allocation49_spill] sm:$0xff] %v4066_v17  ;;  %6549 = vst [vmem:[#allocation50_spill] sm:$0xff] %v4068_v23  ;;  %v1000_v28 = vadd.f32 %v999_v60, %v915_v11  ;;  %v721_v35 = vadd.f32 %v720_v10, %v4066_v17  ;;  %v919_v39 = vmul.f32 %v4066_v17, %v4066_v17  ;;  %v4073_v44 = vpop.f32.mrb[31].mxu0 }
 0x1d0   :  { %6550 = vst [vmem:[#allocation51_spill] sm:$0xff] %v4073_v44  ;;  %v1037_v45 = vadd.f32 %v1036_v61, %v916_v16  ;;  %v758_v46 = vadd.f32 %v757_v15, %v4073_v44  ;;  %v920_v48 = vmul.f32 %v4073_v44, %v4073_v44 }
 0x1d1   :  { %v1001_v54 = vadd.f32 %v1000_v28, %v919_v39 }
 0x1d2   :  { %v1038_v56 = vadd.f32 %v1037_v45, %v920_v48 }
 0x1d3   :  { %v4080_v2 = vpop.f32.mrb[16].mxu1 }
 0x1d4   :  { %v4078_v0 = vpop.f32.mrb[32].mxu0  ;;  %v4087_v17 = vpop.f32.mrb[17].mxu1  ;;  %v861_v61 = vmul.f32 %v4080_v2, %v4080_v2 }
 0x1d5   :  { %6551 = vst [vmem:[#allocation52_spill] sm:$0xff] %v4078_v0  ;;  %v722_v60 = vadd.f32 %v721_v35, %v4078_v0  ;;  %v923_v10 = vmul.f32 %v4078_v0, %v4078_v0  ;;  %v4085_v11 = vpop.f32.mrb[33].mxu0  ;;  %v4096_v39 = vpop.f32.mrb[18].mxu1 }
 0x1d6   :  { %6552 = vst [vmem:[#allocation53_spill] sm:$0xff] %v4085_v11  ;;  %v759_v15 = vadd.f32 %v758_v46, %v4085_v11  ;;  %v924_v16 = vmul.f32 %v4085_v11, %v4085_v11  ;;  %v4094_v28 = vpop.f32.mrb[34].mxu0  ;;  %v781_v0 = vadd.f32 %v4096_v39, %v4080_v2  ;;  %v4105_v13 = vpop.f32.mrb[19].mxu1  ;;  %v865_v11 = vmul.f32 %v4096_v39, %v4096_v39 }
 0x1d7   :  { %6553 = vst [vmem:[#allocation54_spill] sm:$0xff] %v4094_v28  ;;  %v1002_v35 = vadd.f32 %v1001_v54, %v923_v10  ;;  %v723_v45 = vadd.f32 %v722_v60, %v4094_v28  ;;  %v927_v48 = vmul.f32 %v4094_v28, %v4094_v28  ;;  %v4103_v44 = vpop.f32.mrb[35].mxu0  ;;  %v862_v60 = vmul.f32 %v4087_v17, %v4087_v17 }
 0x1d8   :  { %6554 = vst [vmem:[#allocation55_spill] sm:$0xff] %v4103_v44  ;;  %v1039_v46 = vadd.f32 %v1038_v56, %v924_v16  ;;  %v760_v6 = vadd.f32 %v759_v15, %v4103_v44  ;;  %v928_v54 = vmul.f32 %v4103_v44, %v4103_v44  ;;  %v818_v28 = vadd.f32 %v4105_v13, %v4087_v17 }
 0x1d9   :  { %v1003_v10 = vadd.f32 %v1002_v35, %v927_v48  ;;  %v866_v47 = vmul.f32 %v4105_v13, %v4105_v13  ;;  %v1061_v40 = vadd.f32 %v865_v11, %v861_v61 }
 0x1da   :  { %v1040_v56 = vadd.f32 %v1039_v46, %v928_v54 }
 0x1db   :  { %v1098_v16 = vadd.f32 %v866_v47, %v862_v60  ;;  %v4120_v19 = vpop.f32.mrb[20].mxu1 }
 0x1dc   :  { %v4118_v29 = vpop.f32.mrb[36].mxu0  ;;  %v782_v35 = vadd.f32 %v781_v0, %v4120_v19  ;;  %v869_v48 = vmul.f32 %v4120_v19, %v4120_v19  ;;  %v4130_v62 = vpop.f32.mrb[21].mxu1 }
 0x1dd   :  { %6555 = vst [vmem:[#allocation56_spill] sm:$0xff] %v4118_v29  ;;  %v724_v15 = vadd.f32 %v723_v45, %v4118_v29  ;;  %v931_v44 = vmul.f32 %v4118_v29, %v4118_v29  ;;  %v4128_v5 = vpop.f32.mrb[37].mxu0  ;;  %v819_v61 = vadd.f32 %v818_v28, %v4130_v62  ;;  %v870_v45 = vmul.f32 %v4130_v62, %v4130_v62  ;;  %v4140_v0 = vpop.f32.mrb[22].mxu1 }
 0x1de   :  { %6556 = vst [vmem:[#allocation57_spill] sm:$0xff] %v4128_v5  ;;  %v761_v47 = vadd.f32 %v760_v6, %v4128_v5  ;;  %v932_v11 = vmul.f32 %v4128_v5, %v4128_v5  ;;  %v4138_v46 = vpop.f32.mrb[38].mxu0  ;;  %v1062_v60 = vadd.f32 %v1061_v40, %v869_v48  ;;  %v4147_v51 = vpop.f32.mrb[23].mxu1  ;;  %v783_v43 = vadd.f32 %v782_v35, %v4140_v0 }
 0x1df   :  { %6557 = vst [vmem:[#allocation58_spill] sm:$0xff] %v4138_v46  ;;  %v1004_v54 = vadd.f32 %v1003_v10, %v931_v44  ;;  %v725_v29 = vadd.f32 %v724_v15, %v4138_v46  ;;  %v935_v57 = vmul.f32 %v4138_v46, %v4138_v46  ;;  %v4145_v6 = vpop.f32.mrb[39].mxu0  ;;  %6559 = vst [vmem:[#allocation60_spill] sm:$0xff] %v4147_v51 }
 0x1e0   :  { %6558 = vst [vmem:[#allocation59_spill] sm:$0xff] %v4145_v6  ;;  %v1041_v5 = vadd.f32 %v1040_v56, %v932_v11  ;;  %v1099_v28 = vadd.f32 %v1098_v16, %v870_v45  ;;  %v873_v36 = vmul.f32 %v4140_v0, %v4140_v0  ;;  %v762_v44 = vadd.f32 %v761_v47, %v4145_v6 }
 0x1e1   :  { %v1005_v30 = vadd.f32 %v1004_v54, %v935_v57  ;;  %v936_v40 = vmul.f32 %v4145_v6, %v4145_v6  ;;  %v820_v10 = vadd.f32 %v819_v61, %v4147_v51  ;;  %v874_v48 = vmul.f32 %v4147_v51, %v4147_v51 }
 0x1e2   :  { %v1063_v15 = vadd.f32 %v1062_v60, %v873_v36 }
 0x1e3   :  { %v1042_v46 = vadd.f32 %v1041_v5, %v936_v40  ;;  %v1100_v56 = vadd.f32 %v1099_v28, %v874_v48  ;;  %v4160_v35 = vpop.f32.mrb[24].mxu1 }
 0x1e4   :  { %v4158_v16 = vpop.f32.mrb[40].mxu0  ;;  %6561 = vst [vmem:[#allocation62_spill] sm:$0xff] %v4160_v35  ;;  %v784_v47 = vadd.f32 %v783_v43, %v4160_v35  ;;  %v877_v61 = vmul.f32 %v4160_v35, %v4160_v35  ;;  %v4170_v45 = vpop.f32.mrb[25].mxu1 }
 0x1e5   :  { %6560 = vst [vmem:[#allocation61_spill] sm:$0xff] %v4158_v16  ;;  %v726_v11 = vadd.f32 %v725_v29, %v4158_v16  ;;  %v939_v57 = vmul.f32 %v4158_v16, %v4158_v16  ;;  %v4168_v36 = vpop.f32.mrb[41].mxu0  ;;  %6563 = vst [vmem:[#allocation64_spill] sm:$0xff] %v4170_v45  ;;  %v821_v60 = vadd.f32 %v820_v10, %v4170_v45  ;;  %v4180_v43 = vpop.f32.mrb[26].mxu1 }
 0x1e6   :  { %6562 = vst [vmem:[#allocation63_spill] sm:$0xff] %v4168_v36  ;;  %v763_v5 = vadd.f32 %v762_v44, %v4168_v36  ;;  %v940_v54 = vmul.f32 %v4168_v36, %v4168_v36  ;;  %v878_v29 = vmul.f32 %v4170_v45, %v4170_v45  ;;  %v4178_v28 = vpop.f32.mrb[42].mxu0  ;;  %6565 = vst [vmem:[#allocation66_spill] sm:$0xff] %v4180_v43  ;;  %v4187_v25 = vpop.f32.mrb[27].mxu1 }
 0x1e7   :  { %6564 = vst [vmem:[#allocation65_spill] sm:$0xff] %v4178_v28  ;;  %v1006_v40 = vadd.f32 %v1005_v30, %v939_v57  ;;  %v1064_v48 = vadd.f32 %v1063_v15, %v877_v61  ;;  %v727_v16 = vadd.f32 %v726_v11, %v4178_v28  ;;  %v943_v6 = vmul.f32 %v4178_v28, %v4178_v28  ;;  %v4185_v44 = vpop.f32.mrb[43].mxu0 }
 0x1e8   :  { %6566 = vst [vmem:[#allocation67_spill] sm:$0xff] %v4185_v44  ;;  %6567 = vst [vmem:[#allocation68_spill] sm:$0xff] %v4187_v25  ;;  %v1043_v36 = vadd.f32 %v1042_v46, %v940_v54  ;;  %v1101_v10 = vadd.f32 %v1100_v56, %v878_v29  ;;  %v785_v12 = vadd.f32 %v784_v47, %v4180_v43 }
 0x1e9   :  { %v881_v7 = vmul.f32 %v4180_v43, %v4180_v43  ;;  %v1007_v4 = vadd.f32 %v1006_v40, %v943_v6  ;;  %v764_v30 = vadd.f32 %v763_v5, %v4185_v44  ;;  %v944_v15 = vmul.f32 %v4185_v44, %v4185_v44 }
 0x1ea   :  { %v822_v11 = vadd.f32 %v821_v60, %v4187_v25  ;;  %v955_v57 = vmul.f32 %v3966_v9, %v3966_v9  ;;  %v956_v46 = vmul.f32 %v3970_v27, %v3970_v27  ;;  %v882_v47 = vmul.f32 %v4187_v25, %v4187_v25 }
 0x1eb   :  { %v1065_v56 = vadd.f32 %v1064_v48, %v881_v7  ;;  %v959_v6 = vmul.f32 %v3977_v32, %v3977_v32  ;;  %v960_v61 = vmul.f32 %v3984_v38, %v3984_v38  ;;  %v963_v5 = vmul.f32 %v3994_v50, %v3994_v50  ;;  %v4222_v44 = vpop.f32.mrb[28].mxu1 }
 0x1ec   :  { %v1044_v54 = vadd.f32 %v1043_v36, %v944_v15  ;;  %v4210_v60 = vmul.f32 %v3998_v53, %v3998_v53  ;;  %v4214_v7 = vmul.f32 %v4005_v58, %v4005_v58  ;;  %v4218_v29 = vmul.f32 %v4012_v63, %v4012_v63  ;;  %v4220_v48 = vpop.f32.mrb[44].mxu0  ;;  %6569 = vst [vmem:[#allocation70_spill] sm:$0xff] %v4222_v44  ;;  %v4232_v43 = vpop.f32.mrb[29].mxu1 }
 0x1ed   :  { %v1102_v40 = vadd.f32 %v1101_v10, %v882_v47  ;;  %6568 = vst [vmem:[#allocation69_spill] sm:$0xff] %v4220_v48  ;;  %v728_v28 = vadd.f32 %v727_v16, %v4220_v48  ;;  %v947_v36 = vmul.f32 %v4220_v48, %v4220_v48  ;;  %v786_v15 = vadd.f32 %v785_v12, %v4222_v44  ;;  %v4230_v25 = vpop.f32.mrb[45].mxu0  ;;  %v4242_v12 = vpop.f32.mrb[30].mxu1 }
 0x1ee   :  { %v885_v1 = vmul.f32 %v4222_v44, %v4222_v44  ;;  %6570 = vst [vmem:[#allocation71_spill] sm:$0xff] %v4230_v25  ;;  %6571 = vst [vmem:[#allocation72_spill] sm:$0xff] %v4232_v43  ;;  %v765_v10 = vadd.f32 %v764_v30, %v4230_v25  ;;  %v948_v47 = vmul.f32 %v4230_v25, %v4230_v25  ;;  %v4240_v48 = vpop.f32.mrb[46].mxu0  ;;  %v4249_v52 = vpop.f32.mrb[31].mxu1 }
 0x1ef   :  { %v823_v59 = vadd.f32 %v822_v11, %v4232_v43  ;;  %v886_v16 = vmul.f32 %v4232_v43, %v4232_v43  ;;  %6572 = vst [vmem:[#allocation73_spill] sm:$0xff] %v4240_v48  ;;  %v1008_v55 = vadd.f32 %v1007_v4, %v947_v36  ;;  %v729_v45 = vadd.f32 %v728_v28, %v4240_v48  ;;  %v4247_v30 = vpop.f32.mrb[47].mxu0 }
 0x1f0   :  { %v1066_v44 = vadd.f32 %v1065_v56, %v885_v1  ;;  %v951_v35 = vmul.f32 %v4240_v48, %v4240_v48  ;;  %6573 = vst [vmem:[#allocation74_spill] sm:$0xff] %v4247_v30  ;;  %v1045_v25 = vadd.f32 %v1044_v54, %v948_v47  ;;  %v787_v49 = vadd.f32 %v786_v15, %v4242_v12 }
 0x1f1   :  { %v1103_v11 = vadd.f32 %v1102_v40, %v886_v16  ;;  %v889_v43 = vmul.f32 %v4242_v12, %v4242_v12  ;;  %v730_v51 = vadd.f32 %v729_v45, %v3966_v9  ;;  %v766_v1 = vadd.f32 %v765_v10, %v4247_v30 }
 0x1f2   :  { %v1009_v4 = vadd.f32 %v1008_v55, %v951_v35  ;;  %v952_v28 = vmul.f32 %v4247_v30, %v4247_v30  ;;  %v971_v56 = vmul.f32 %v4022_v18, %v4022_v18  ;;  %v824_v54 = vadd.f32 %v823_v59, %v4249_v52 }
 0x1f3   :  { %v1067_v36 = vadd.f32 %v1066_v44, %v889_v43  ;;  %v890_v40 = vmul.f32 %v4249_v52, %v4249_v52  ;;  %v731_v15 = vadd.f32 %v730_v51, %v3977_v32  ;;  %v767_v45 = vadd.f32 %v766_v1, %v3970_v27  ;;  %v4271_v59 = vpop.f32.mrb[32].mxu1 }
 0x1f4   :  { %v1010_v47 = vadd.f32 %v1009_v4, %v955_v57  ;;  %v1046_v55 = vadd.f32 %v1045_v25, %v952_v28  ;;  %v972_v35 = vmul.f32 %v4026_v21, %v4026_v21  ;;  %v975_v10 = vmul.f32 %v4033_v33, %v4033_v33  ;;  %v4275_v4 = vpop.f32.mrb[33].mxu1 }
 0x1f5   :  { %v976_v43 = vmul.f32 %v4040_v42, %v4040_v42  ;;  %v1104_v44 = vadd.f32 %v1103_v11, %v890_v40  ;;  %v732_v16 = vadd.f32 %v731_v15, %v3994_v50  ;;  %v768_v51 = vadd.f32 %v767_v45, %v3984_v38  ;;  %v4283_v40 = vpop.f32.mrb[34].mxu1 }
 0x1f6   :  { %v1011_v9 = vadd.f32 %v1010_v47, %v959_v6  ;;  %v1047_v57 = vadd.f32 %v1046_v55, %v956_v46  ;;  %v788_v25 = vadd.f32 %v787_v49, %v4271_v59  ;;  %v893_v1 = vmul.f32 %v4271_v59, %v4271_v59  ;;  %v4287_v45 = vpop.f32.mrb[35].mxu1 }
 0x1f7   :  { %v825_v28 = vadd.f32 %v824_v54, %v4275_v4  ;;  %v894_v11 = vmul.f32 %v4275_v4, %v4275_v4  ;;  %v733_v15 = vadd.f32 %v732_v16, %v4005_v58  ;;  %v769_v47 = vadd.f32 %v768_v51, %v3998_v53 }
 0x1f8   :  { %v1012_v6 = vadd.f32 %v1011_v9, %v963_v5  ;;  %v1048_v46 = vadd.f32 %v1047_v57, %v960_v61  ;;  %v1068_v55 = vadd.f32 %v1067_v36, %v893_v1  ;;  %v789_v50 = vadd.f32 %v788_v25, %v4283_v40 }
 0x1f9   :  { %v1105_v49 = vadd.f32 %v1104_v44, %v894_v11  ;;  %v897_v54 = vmul.f32 %v4283_v40, %v4283_v40  ;;  %v734_v38 = vadd.f32 %v733_v15, %v4022_v18  ;;  %v770_v27 = vadd.f32 %v769_v47, %v4012_v63 }
 0x1fa   :  { %v1013_v32 = vadd.f32 %v1012_v6, %v4214_v7  ;;  %v1049_v9 = vadd.f32 %v1048_v46, %v4210_v60  ;;  %v979_v61 = vmul.f32 %v4050_v3, %v4050_v3  ;;  %v826_v36 = vadd.f32 %v825_v28, %v4287_v45 }
 0x1fb   :  { %v1069_v5 = vadd.f32 %v1068_v55, %v897_v54  ;;  %v898_v44 = vmul.f32 %v4287_v45, %v4287_v45  ;;  %v735_v16 = vadd.f32 %v734_v38, %v4033_v33  ;;  %v771_v57 = vadd.f32 %v770_v27, %v4026_v21  ;;  %v4310_v11 = vpop.f32.mrb[36].mxu1 }
 0x1fc   :  { %v1014_v51 = vadd.f32 %v1013_v32, %v971_v56  ;;  %v1050_v7 = vadd.f32 %v1049_v9, %v4218_v29  ;;  %v980_v25 = vmul.f32 %v4054_v8, %v4054_v8  ;;  %v983_v60 = vmul.f32 %v4061_v14, %v4061_v14  ;;  %v4314_v56 = vpop.f32.mrb[37].mxu1 }
 0x1fd   :  { %v984_v1 = vmul.f32 %v4068_v23, %v4068_v23  ;;  %v1106_v28 = vadd.f32 %v1105_v49, %v898_v44  ;;  %v736_v15 = vadd.f32 %v735_v16, %v4050_v3  ;;  %v772_v32 = vadd.f32 %v771_v57, %v4040_v42  ;;  %v4322_v55 = vpop.f32.mrb[38].mxu1 }
 0x1fe   :  { %v1015_v38 = vadd.f32 %v1014_v51, %v975_v10  ;;  %v1051_v27 = vadd.f32 %v1050_v7, %v972_v35  ;;  %v790_v29 = vadd.f32 %v789_v50, %v4310_v11  ;;  %v901_v6 = vmul.f32 %v4310_v11, %v4310_v11  ;;  %v4326_v9 = vpop.f32.mrb[39].mxu1 }
 0x1ff   :  { %v827_v47 = vadd.f32 %v826_v36, %v4314_v56  ;;  %v902_v46 = vmul.f32 %v4314_v56, %v4314_v56  ;;  %v737_v49 = vadd.f32 %v736_v15, %v4061_v14  ;;  %v773_v54 = vadd.f32 %v772_v32, %v4054_v8 }
 0x200   :  { %v1016_v10 = vadd.f32 %v1015_v38, %v979_v61  ;;  %v1052_v35 = vadd.f32 %v1051_v27, %v976_v43  ;;  %v1070_v44 = vadd.f32 %v1069_v5, %v901_v6  ;;  %v791_v16 = vadd.f32 %v790_v29, %v4322_v55 }
 0x201   :  { %v1107_v50 = vadd.f32 %v1106_v28, %v902_v46  ;;  %v905_v36 = vmul.f32 %v4322_v55, %v4322_v55  ;;  %v738_v51 = vrot.slane %v737_v49, 4  ;;  %v774_v7 = vadd.f32 %v773_v54, %v4068_v23 }
 0x202   :  { %v1017_v57 = vadd.f32 %v1016_v10, %v983_v60  ;;  %v1053_v3 = vadd.f32 %v1052_v35, %v980_v25  ;;  %v828_v61 = vadd.f32 %v827_v47, %v4326_v9  ;;  %v906_v43 = vmul.f32 %v4326_v9, %v4326_v9 }
 0x203   :  { %v1071_v42 = vadd.f32 %v1070_v44, %v905_v36  ;;  %v739_v15 = vadd.f32 %v738_v51, %v737_v49  ;;  %v775_v5 = vrot.slane %v774_v7, 4  ;;  %v4335_v27 = vpop.f32.mrb[40].mxu1 }
 0x204   :  { %v1018_v38 = vrot.slane %v1017_v57, 4  ;;  %v1054_v28 = vadd.f32 %v1053_v3, %v984_v1  ;;  %v1108_v32 = vadd.f32 %v1107_v50, %v906_v43  ;;  %v4337_v10 = vpop.f32.mrb[41].mxu1  ;;  %v792_v25 = vadd.f32 %v791_v16, %v4335_v27 }
 0x205   :  { %v740_v29 = vrot.slane %v739_v15, 2  ;;  %v776_v46 = vadd.f32 %v775_v5, %v774_v7  ;;  %v909_v47 = vmul.f32 %v4335_v27, %v4335_v27  ;;  %v829_v54 = vadd.f32 %v828_v61, %v4337_v10  ;;  %v4345_v3 = vpop.f32.mrb[42].mxu1 }
 0x206   :  { %v1019_v6 = vadd.f32 %v1018_v38, %v1017_v57  ;;  %v1055_v60 = vrot.slane %v1054_v28, 4  ;;  %v910_v49 = vmul.f32 %v4337_v10, %v4337_v10  ;;  %v4347_v36 = vpop.f32.mrb[43].mxu1  ;;  %v793_v16 = vadd.f32 %v792_v25, %v4345_v3 }
 0x207   :  { %v741_v1 = vadd.f32 %v740_v29, %v739_v15  ;;  %v777_v44 = vrot.slane %v776_v46, 2  ;;  %v1072_v51 = vadd.f32 %v1071_v42, %v909_v47  ;;  %v913_v7 = vmul.f32 %v4345_v3, %v4345_v3 }
 0x208   :  { %v1020_v35 = vrot.slane %v1019_v6, 2  ;;  %v1056_v50 = vadd.f32 %v1055_v60, %v1054_v28  ;;  %v1109_v57 = vadd.f32 %v1108_v32, %v910_v49  ;;  %v830_v14 = vadd.f32 %v829_v54, %v4347_v36 }
 0x209   :  { %v742_v43 = vrot.slane %v741_v1, 1  ;;  %v778_v38 = vadd.f32 %v777_v44, %v776_v46  ;;  %v1073_v23 = vadd.f32 %v1072_v51, %v913_v7  ;;  %v914_v15 = vmul.f32 %v4347_v36, %v4347_v36 }
 0x20a   :  { %v1021_v61 = vadd.f32 %v1020_v35, %v1019_v6  ;;  %v1057_v5 = vrot.slane %v1056_v50, 2 }
 0x20b   :  { %v743_v28 = vadd.f32 %v742_v43, %v741_v1  ;;  %v779_v60 = vrot.slane %v778_v38, 1  ;;  %v1110_v32 = vadd.f32 %v1109_v57, %v914_v15  ;;  %v4355_v47 = vpop.f32.mrb[44].mxu1 }
 0x20c   :  { %v1022_v29 = vrot.slane %v1021_v61, 1  ;;  %v1058_v42 = vadd.f32 %v1057_v5, %v1056_v50  ;;  %v794_v6 = vadd.f32 %v793_v16, %v4355_v47  ;;  %v4358_v46 = vpop.f32.mrb[45].mxu1  ;;  %v917_v54 = vmul.f32 %v4355_v47, %v4355_v47 }
 0x20d   :  { %v780_v49 = vadd.f32 %v779_v60, %v778_v38  ;;  %v831_v35 = vadd.f32 %v830_v14, %v4358_v46  ;;  %v918_v1 = vmul.f32 %v4358_v46, %v4358_v46  ;;  %v4365_v44 = vpop.f32.mrb[46].mxu1  ;;  %v4367_v50 = vmul.f32 0.00390625, %v743_v28 }
 0x20e   :  { %v1023_v25 = vadd.f32 %v1022_v29, %v1021_v61  ;;  %v1059_v8 = vrot.slane %v1058_v42, 1  ;;  %v795_v7 = vadd.f32 %v794_v6, %v4365_v44  ;;  %v921_v16 = vmul.f32 %v4365_v44, %v4365_v44  ;;  %v4372_v43 = vpop.f32.mrb[47].mxu1 }
 0x20f   :  { %6574 = vst [vmem:[#allocation75_spill] sm:$0xff] %v4372_v43  ;;  %v1074_v61 = vadd.f32 %v1073_v23, %v917_v54  ;;  %v1111_v38 = vadd.f32 %v1110_v32, %v918_v1  ;;  %v832_v14 = vadd.f32 %v831_v35, %v4372_v43  ;;  %v922_v5 = vmul.f32 %v4372_v43, %v4372_v43 }
 0x210   :  { %v1135_v51 = vmul.f32 0.00390625, %v1023_v25  ;;  %v1060_v57 = vadd.f32 %v1059_v8, %v1058_v42  ;;  %v4377_v29 = vmul.f32 0.00390625, %v780_v49  ;;  %v1139_v8 = vmul.f32 %v4367_v50, %v4367_v50 }
 0x211   :  { %v1075_v28 = vadd.f32 %v1074_v61, %v921_v16  ;;  %v1112_v60 = vadd.f32 %v1111_v38, %v922_v5 }
 0x212   :  { %v1136_v15 = vmul.f32 0.00390625, %v1060_v57  ;;  %v1140_v42 = vmul.f32 %v4377_v29, %v4377_v29  ;;  %v1143_v25 = vsub.f32 %v1135_v51, %v1139_v8 }
 0x213   :  { %v4383_v6 = vpop.f32.mrb[48].mxu1 }
 0x214   :  { %6575 = vst [vmem:[#allocation76_spill] sm:$0xff] %v4383_v6  ;;  %v796_v23 = vadd.f32 %v795_v7, %v4383_v6  ;;  %v925_v32 = vmul.f32 %v4383_v6, %v4383_v6  ;;  %v4388_v54 = vpop.f32.mrb[49].mxu1  ;;  %v1144_v49 = vsub.f32 %v1136_v15, %v1140_v42  ;;  %v1147_v35 = vadd.f32 1e-05, %v1143_v25 }
 0x215   :  { %6576 = vst [vmem:[#allocation77_spill] sm:$0xff] %v4388_v54  ;;  %v833_v1 = vadd.f32 %v832_v14, %v4388_v54  ;;  %v926_v57 = vmul.f32 %v4388_v54, %v4388_v54  ;;  %v4393_v16 = vpop.f32.mrb[50].mxu1 }
 0x216   :  { %6577 = vst [vmem:[#allocation78_spill] sm:$0xff] %v4393_v16  ;;  %v1076_v61 = vadd.f32 %v1075_v28, %v925_v32  ;;  %v797_v51 = vadd.f32 %v796_v23, %v4393_v16  ;;  %v929_v7 = vmul.f32 %v4393_v16, %v4393_v16  ;;  %v4398_v38 = vpop.f32.mrb[51].mxu1  ;;  %v1148_v5 = vadd.f32 1e-05, %v1144_v49 }
 0x217   :  { %6578 = vst [vmem:[#allocation79_spill] sm:$0xff] %v4398_v38  ;;  %v1113_v8 = vadd.f32 %v1112_v60, %v926_v57  ;;  %v834_v15 = vadd.f32 %v833_v1, %v4398_v38  ;;  %v930_v14 = vmul.f32 %v4398_v38, %v4398_v38  ;;  %3566 = vrsqrt.f32 %v1147_v35 }
 0x218   :  { %v1077_v42 = vadd.f32 %v1076_v61, %v929_v7  ;;  %3568 = vrsqrt.f32 %v1148_v5 }
 0x219   :  { %v1114_v25 = vadd.f32 %v1113_v8, %v930_v14 }
 0x21b   :  { %v4403_v33 = vpop.f32.mrb[52].mxu1 }
 0x21c   :  { %6579 = vst [vmem:[#allocation80_spill] sm:$0xff] %v4403_v33  ;;  %v798_v28 = vadd.f32 %v797_v51, %v4403_v33  ;;  %v933_v23 = vmul.f32 %v4403_v33, %v4403_v33  ;;  %v4408_v32 = vpop.f32.mrb[53].mxu1 }
 0x21d   :  { %6580 = vst [vmem:[#allocation81_spill] sm:$0xff] %v4408_v32  ;;  %v835_v60 = vadd.f32 %v834_v15, %v4408_v32  ;;  %v934_v49 = vmul.f32 %v4408_v32, %v4408_v32  ;;  %v4413_v1 = vpop.f32.mrb[54].mxu1  ;;  %v3540_v15 = vld [vmem:[#allocation7 + $0xe0] sm:$0xff]  }
 0x21e   :  { %6581 = vst [vmem:[#allocation82_spill] sm:$0xff] %v4413_v1  ;;  %v1078_v35 = vadd.f32 %v1077_v42, %v933_v23  ;;  %v799_v57 = vadd.f32 %v798_v28, %v4413_v1  ;;  %v937_v61 = vmul.f32 %v4413_v1, %v4413_v1  ;;  %v4418_v7 = vpop.f32.mrb[55].mxu1  ;;  %3305 = vmatprep.subr.bf16.mxu1 %v3540_v15  ;;  %v3557_v1 = vld [vmem:[#allocation7 + $0x38] sm:$0xff]  }
 0x21f   :  { %6582 = vst [vmem:[#allocation83_spill] sm:$0xff] %v4418_v7  ;;  %v1115_v51 = vadd.f32 %v1114_v25, %v934_v49  ;;  %v836_v5 = vadd.f32 %v835_v60, %v4418_v7  ;;  %v938_v8 = vmul.f32 %v4418_v7, %v4418_v7  ;;  %v3548_v7 = vld [vmem:[#allocation7 + $0x68] sm:$0xff]  }
 0x220   :  { %v1079_v14 = vadd.f32 %v1078_v35, %v937_v61 }
 0x221   :  { %v4423_v21 = vpop.eup %3566  ;;  %v1116_v18 = vadd.f32 %v1115_v51, %v938_v8 }
 0x222   :  { %v4425_v42 = vpop.eup %3568 }
 0x223   :  { %v4427_v28 = vpop.f32.mrb[56].mxu1 }
 0x224   :  { %6583 = vst [vmem:[#allocation84_spill] sm:$0xff] %v4427_v28  ;;  %v800_v25 = vadd.f32 %v799_v57, %v4427_v28  ;;  %v941_v60 = vmul.f32 %v4427_v28, %v4427_v28  ;;  %v4434_v49 = vpop.f32.mrb[57].mxu1 }
 0x225   :  { %6584 = vst [vmem:[#allocation85_spill] sm:$0xff] %v4434_v49  ;;  %v837_v35 = vadd.f32 %v836_v5, %v4434_v49  ;;  %v942_v61 = vmul.f32 %v4434_v49, %v4434_v49  ;;  %v4439_v51 = vpop.f32.mrb[58].mxu1 }
 0x226   :  { %6585 = vst [vmem:[#allocation86_spill] sm:$0xff] %v4439_v51  ;;  %v1080_v8 = vadd.f32 %v1079_v14, %v941_v60  ;;  %v801_v15 = vadd.f32 %v800_v25, %v4439_v51  ;;  %v945_v23 = vmul.f32 %v4439_v51, %v4439_v51  ;;  %v4444_v63 = vpop.f32.mrb[59].mxu1 }
 0x227   :  { %6586 = vst [vmem:[#allocation87_spill] sm:$0xff] %v4444_v63  ;;  %v1117_v57 = vadd.f32 %v1116_v18, %v942_v61  ;;  %v838_v58 = vadd.f32 %v837_v35, %v4444_v63  ;;  %v946_v53 = vmul.f32 %v4444_v63, %v4444_v63  ;;  %v3542_v63 = vld [vmem:[#allocation7 + $0x58] sm:$0xff]  }
 0x228   :  { %v1081_v5 = vadd.f32 %v1080_v8, %v945_v23  ;;  %3191 = vmatprep.subr.bf16.mxu0 %v3542_v63  ;;  %v3546_v63 = vld [vmem:[#allocation7 + $0x20] sm:$0xff]  }
 0x229   :  { %v1118_v30 = vadd.f32 %v1117_v57, %v946_v53 }
 0x22b   :  { %v4449_v48 = vpop.f32.mrb[60].mxu1 }
 0x22c   :  { %6587 = vst [vmem:[#allocation88_spill] sm:$0xff] %v4449_v48  ;;  %v802_v49 = vadd.f32 %v801_v15, %v4449_v48  ;;  %v949_v14 = vmul.f32 %v4449_v48, %v4449_v48  ;;  %v4454_v25 = vpop.f32.mrb[61].mxu1 }
 0x22d   :  { %6588 = vst [vmem:[#allocation89_spill] sm:$0xff] %v4454_v25  ;;  %v839_v60 = vadd.f32 %v838_v58, %v4454_v25  ;;  %v950_v18 = vmul.f32 %v4454_v25, %v4454_v25  ;;  %v4459_v35 = vpop.f32.mrb[62].mxu1  ;;  %v3543_v25 = vld [vmem:[#allocation7 + $0x18] sm:$0xff]  }
 0x22e   :  { %6589 = vst [vmem:[#allocation90_spill] sm:$0xff] %v4459_v35  ;;  %v1082_v61 = vadd.f32 %v1081_v5, %v949_v14  ;;  %v803_v23 = vadd.f32 %v802_v49, %v4459_v35  ;;  %v953_v53 = vmul.f32 %v4459_v35, %v4459_v35  ;;  %v4464_v8 = vpop.f32.mrb[63].mxu1  ;;  %3192 = vmatpush3.bf16.msra.mxu0 %v3543_v25  ;;  %v3545_v35 = vld [vmem:[#allocation7 + $0xe8] sm:$0xff]  }
 0x22f   :  { %6590 = vst [vmem:[#allocation91_spill] sm:$0xff] %v4464_v8  ;;  %v1119_v15 = vadd.f32 %v1118_v30, %v950_v18  ;;  %v840_v57 = vadd.f32 %v839_v60, %v4464_v8  ;;  %v954_v48 = vmul.f32 %v4464_v8, %v4464_v8  ;;  %v3544_v30 = vld [vmem:[#allocation7 + $0x60] sm:$0xff]  }
 0x230   :  { %v1083_v58 = vadd.f32 %v1082_v61, %v953_v53  ;;  %3193 = vmatprep.subr.bf16.mxu0 %v3544_v30 }
 0x231   :  { %v1120_v51 = vadd.f32 %v1119_v15, %v954_v48  ;;  %v3541_v48 = vld [vmem:[#allocation7 + $0xa0] sm:$0xff]  }
 0x232   :  { %3306 = vmatpush3.bf16.msra.mxu1 %v3541_v48  ;;  %3194 = vmatpush3.bf16.msra.mxu0 %v3546_v63  ;;  %v3552_v48 = vld [vmem:[#allocation7 + $0x70] sm:$0xff]  }
 0x233   :  { %v4469_v28 = vpop.f32.mrb[64].mxu1  ;;  %3307 = vmatprep.subr.bf16.mxu1 %v3545_v35  ;;  %3195 = vmatprep.subr.bf16.mxu0 %v3548_v7  ;;  %v3551_v7 = vld [vmem:[#allocation7 + $0xb0] sm:$0xff]  }
 0x234   :  { %6591 = vst [vmem:[#allocation92_spill] sm:$0xff] %v4469_v28  ;;  %v804_v49 = vadd.f32 %v803_v23, %v4469_v28  ;;  %v957_v5 = vmul.f32 %v4469_v28, %v4469_v28  ;;  %v4474_v14 = vpop.f32.mrb[65].mxu1 }
 0x235   :  { %6592 = vst [vmem:[#allocation93_spill] sm:$0xff] %v4474_v14  ;;  %v841_v60 = vadd.f32 %v840_v57, %v4474_v14  ;;  %v958_v18 = vmul.f32 %v4474_v14, %v4474_v14  ;;  %v4479_v61 = vpop.f32.mrb[66].mxu1 }
 0x236   :  { %6593 = vst [vmem:[#allocation94_spill] sm:$0xff] %v4479_v61  ;;  %v1084_v53 = vadd.f32 %v1083_v58, %v957_v5  ;;  %v805_v25 = vadd.f32 %v804_v49, %v4479_v61  ;;  %v961_v23 = vmul.f32 %v4479_v61, %v4479_v61  ;;  %v4484_v15 = vpop.f32.mrb[67].mxu1  ;;  %v3547_v5 = vld [vmem:[#allocation7 + $0xa8] sm:$0xff]  }
 0x237   :  { %6594 = vst [vmem:[#allocation95_spill] sm:$0xff] %v4484_v15  ;;  %v1121_v28 = vadd.f32 %v1120_v51, %v958_v18  ;;  %v842_v8 = vadd.f32 %v841_v60, %v4484_v15  ;;  %v962_v57 = vmul.f32 %v4484_v15, %v4484_v15  ;;  %v3549_v49 = vld [vmem:[#allocation7 + $0x28] sm:$0xff]   ;;  %3308 = vmatpush3.bf16.msra.mxu1 %v3547_v5  ;;  %v3550_v18 = vld [vmem:[#allocation7 + $0xf0] sm:$0xff]   ;;  %v3554_v15 = vld [vmem:[#allocation7 + $0xf8] sm:$0xff]  }
 0x238   :  { %v1085_v14 = vadd.f32 %v1084_v53, %v961_v23  ;;  %3196 = vmatpush3.bf16.msra.mxu0 %v3549_v49  ;;  %v3553_v53 = vld [vmem:[#allocation7 + $0x30] sm:$0xff]   ;;  %3309 = vmatprep.subr.bf16.mxu1 %v3550_v18 }
 0x239   :  { %v1122_v58 = vadd.f32 %v1121_v28, %v962_v57  ;;  %3197 = vmatprep.subr.bf16.mxu0 %v3552_v48 }
 0x23b   :  { %v4489_v61 = vpop.f32.mrb[68].mxu1  ;;  %3310 = vmatpush3.bf16.msra.mxu1 %v3551_v7 }
 0x23c   :  { %6595 = vst [vmem:[#allocation96_spill] sm:$0xff] %v4489_v61  ;;  %v806_v51 = vadd.f32 %v805_v25, %v4489_v61  ;;  %v965_v30 = vmul.f32 %v4489_v61, %v4489_v61  ;;  %v4494_v60 = vpop.f32.mrb[69].mxu1  ;;  %3198 = vmatpush3.bf16.msra.mxu0 %v3553_v53  ;;  %3311 = vmatprep.subr.bf16.mxu1 %v3554_v15 }
 0x23d   :  { %6596 = vst [vmem:[#allocation97_spill] sm:$0xff] %v4494_v60  ;;  %v843_v63 = vadd.f32 %v842_v8, %v4494_v60  ;;  %v966_v28 = vmul.f32 %v4494_v60, %v4494_v60  ;;  %v4499_v35 = vpop.f32.mrb[70].mxu1 }
 0x23e   :  { %6597 = vst [vmem:[#allocation98_spill] sm:$0xff] %v4499_v35  ;;  %v1086_v23 = vadd.f32 %v1085_v14, %v965_v30  ;;  %v807_v57 = vadd.f32 %v806_v51, %v4499_v35  ;;  %v969_v25 = vmul.f32 %v4499_v35, %v4499_v35  ;;  %v4504_v5 = vpop.f32.mrb[71].mxu1  ;;  %v3556_v14 = vld [vmem:[#allocation7 + $0x78] sm:$0xff]  }
 0x23f   :  { %6598 = vst [vmem:[#allocation99_spill] sm:$0xff] %v4504_v5  ;;  %v1123_v49 = vadd.f32 %v1122_v58, %v966_v28  ;;  %v844_v8 = vadd.f32 %v843_v63, %v4504_v5  ;;  %v970_v60 = vmul.f32 %v4504_v5, %v4504_v5  ;;  %v3555_v51 = vld [vmem:[#allocation7 + $0xb8] sm:$0xff]   ;;  %3199 = vmatprep.subr.bf16.mxu0 %v3556_v14 }
 0x240   :  { %v1087_v61 = vadd.f32 %v1086_v23, %v969_v25  ;;  %3312 = vmatpush3.bf16.msra.mxu1 %v3555_v51  ;;  %3200 = vmatpush3.bf16.msra.mxu0 %v3557_v1 }
 0x241   :  { %v1124_v30 = vadd.f32 %v1123_v49, %v970_v60 }
 0x243   :  { %v4509_v35 = vpop.f32.mrb[72].mxu1 }
 0x244   :  { %6599 = vst [vmem:[#allocation100_spill] sm:$0xff] %v4509_v35  ;;  %v808_v58 = vadd.f32 %v807_v57, %v4509_v35  ;;  %v973_v18 = vmul.f32 %v4509_v35, %v4509_v35  ;;  %v4514_v48 = vpop.f32.mrb[73].mxu1 }
 0x245   :  { %6600 = vst [vmem:[#allocation101_spill] sm:$0xff] %v4514_v48  ;;  %v845_v63 = vadd.f32 %v844_v8, %v4514_v48  ;;  %v974_v60 = vmul.f32 %v4514_v48, %v4514_v48  ;;  %v4519_v28 = vpop.f32.mrb[74].mxu1 }
 0x246   :  { %6601 = vst [vmem:[#allocation102_spill] sm:$0xff] %v4519_v28  ;;  %v1088_v15 = vadd.f32 %v1087_v61, %v973_v18  ;;  %v809_v7 = vadd.f32 %v808_v58, %v4519_v28  ;;  %v977_v1 = vmul.f32 %v4519_v28, %v4519_v28  ;;  %v4524_v53 = vpop.f32.mrb[75].mxu1 }
 0x247   :  { %6602 = vst [vmem:[#allocation103_spill] sm:$0xff] %v4524_v53  ;;  %v1125_v23 = vadd.f32 %v1124_v30, %v974_v60  ;;  %v846_v57 = vadd.f32 %v845_v63, %v4524_v53  ;;  %v978_v25 = vmul.f32 %v4524_v53, %v4524_v53 }
 0x248   :  { %v1089_v49 = vadd.f32 %v1088_v15, %v977_v1 }
 0x249   :  { %v1126_v8 = vadd.f32 %v1125_v23, %v978_v25 }
 0x24b   :  { %v4529_v14 = vpop.f32.mrb[76].mxu1 }
 0x24c   :  { %6603 = vst [vmem:[#allocation104_spill] sm:$0xff] %v4529_v14  ;;  %v810_v51 = vadd.f32 %v809_v7, %v4529_v14  ;;  %v981_v61 = vmul.f32 %v4529_v14, %v4529_v14  ;;  %v4534_v58 = vpop.f32.mrb[77].mxu1 }
 0x24d   :  { %6604 = vst [vmem:[#allocation105_spill] sm:$0xff] %v4534_v58  ;;  %v847_v18 = vadd.f32 %v846_v57, %v4534_v58  ;;  %v982_v30 = vmul.f32 %v4534_v58, %v4534_v58  ;;  %v4539_v63 = vpop.f32.mrb[78].mxu1 }
 0x24e   :  { %6605 = vst [vmem:[#allocation106_spill] sm:$0xff] %v4539_v63  ;;  %v1090_v60 = vadd.f32 %v1089_v49, %v981_v61  ;;  %v811_v15 = vadd.f32 %v810_v51, %v4539_v63  ;;  %v985_v1 = vmul.f32 %v4539_v63, %v4539_v63  ;;  %v4544_v23 = vpop.f32.mrb[79].mxu1 }
 0x24f   :  { %v1127_v7 = vadd.f32 %v1126_v8, %v982_v30  ;;  %v848_v25 = vadd.f32 %v847_v18, %v4544_v23  ;;  %v986_v14 = vmul.f32 %v4544_v23, %v4544_v23 }
 0x250   :  { %v812_v57 = vrot.slane %v811_v15, 4  ;;  %v1091_v53 = vadd.f32 %v1090_v60, %v985_v1 }
 0x251   :  { %v849_v28 = vrot.slane %v848_v25, 4  ;;  %v1128_v58 = vadd.f32 %v1127_v7, %v986_v14 }
 0x252   :  { %v813_v48 = vadd.f32 %v812_v57, %v811_v15  ;;  %v1092_v35 = vrot.slane %v1091_v53, 4 }
 0x253   :  { %v850_v49 = vadd.f32 %v849_v28, %v848_v25  ;;  %v1129_v61 = vrot.slane %v1128_v58, 4 }
 0x254   :  { %v814_v51 = vrot.slane %v813_v48, 2  ;;  %v1093_v5 = vadd.f32 %v1092_v35, %v1091_v53 }
 0x255   :  { %v851_v32 = vrot.slane %v850_v49, 2  ;;  %v1130_v63 = vadd.f32 %v1129_v61, %v1128_v58 }
 0x256   :  { %v815_v33 = vadd.f32 %v814_v51, %v813_v48  ;;  %v1094_v38 = vrot.slane %v1093_v5, 2 }
 0x257   :  { %v852_v8 = vadd.f32 %v851_v32, %v850_v49  ;;  %v1131_v30 = vrot.slane %v1130_v63, 2 }
 0x258   :  { %v816_v18 = vrot.slane %v815_v33, 1  ;;  %v1095_v16 = vadd.f32 %v1094_v38, %v1093_v5  ;;  %v3682_v38 = vmov 1966171168  }
 0x259   :  { %v853_v54 = vrot.slane %v852_v8, 1  ;;  %v1132_v6 = vadd.f32 %v1131_v30, %v1130_v63  ;;  %v1162_v5 = vunpack.c.l.s4 %v3682_v38 }
 0x25a   :  { %v817_v43 = vadd.f32 %v816_v18, %v815_v33  ;;  %v1096_v60 = vrot.slane %v1095_v16, 1  ;;  %v1164_v33 = vlaneseq }
 0x25b   :  { %v854_v1 = vadd.f32 %v853_v54, %v852_v8  ;;  %v1133_v14 = vrot.slane %v1132_v6, 1  ;;  %v1163_v63 = vunpack.c.0.s8 %v1162_v5  ;;  %v6606_v8 = vcombine.low %v4423_v21, %v4425_v42 }
 0x25c   :  { %v857_v15 = vmul.f32 0.00390625, %v817_v43  ;;  %v1097_v7 = vadd.f32 %v1096_v60, %v1095_v16  ;;  %v4549_v54 = vshrl.u32 %v1164_v33, 7 }
 0x25d   :  { %v858_v28 = vmul.f32 0.00390625, %v854_v1  ;;  %v1134_v25 = vadd.f32 %v1133_v14, %v1132_v6  ;;  %v705_v1 = vld [vmem:[%s6405_s2] sm:$0xf] }
 0x25e   :  { %v1137_v57 = vmul.f32 0.00390625, %v1097_v7  ;;  %v1141_v35 = vmul.f32 %v857_v15, %v857_v15  ;;  %v1166_v16 = vsub.s32 %v1163_v63, %v4549_v54  ;;  %v4559_v14 = vsub.s32 0, %v4549_v54 }
 0x25f   :  { %v1138_v53 = vmul.f32 0.00390625, %v1134_v25  ;;  %v1142_v58 = vmul.f32 %v858_v28, %v858_v28  ;;  %v1192_v25 = vsub.s32 1, %v4549_v54 }
 0x260   :  { %v1145_v48 = vsub.f32 %v1137_v57, %v1141_v35  ;;  %v1167_v30 = vrot.slane %v6606_v8, %v1166_v16  ;;  %6607 = vst [vmem:[#allocation107_spill] sm:$0xff] %v4559_v14  ;;  %v1196_v57 = vsub.s32 2, %v4549_v54  ;;  %v1200_v35 = vsub.s32 3, %v4549_v54  ;;  %v6609_v8 = vld [vmem:[#allocation12_spill] sm:$0xff] }
 0x261   :  { %v1146_v61 = vsub.f32 %v1138_v53, %v1142_v58 }
 0x262   :  { %v1149_v32 = vadd.f32 1e-05, %v1145_v48 }
 0x263   :  { %v1150_v49 = vadd.f32 1e-05, %v1146_v61 }
 0x264   :  { %3570 = vrsqrt.f32 %v1149_v32 }
 0x265   :  { %3572 = vrsqrt.f32 %v1150_v49 }
 0x26e   :  { %v3571_v43 = vpop.eup %3570 }
 0x26f   :  { %v3573_v6 = vpop.eup %3572 }
 0x270   :  { %v1160_v51 = vcombine.low %v3571_v43, %v3573_v6 }
 0x272   :  { %v1174_v18 = vrot.slane %v1160_v51, %v1166_v16  ;;  %v6608_v51 = vld [vmem:[#allocation60_spill] sm:$0xff] }
 0x274   :  { %v1175_v60 = vcombine.low %v1167_v30, %v1174_v18  ;;  %v6610_v30 = vld [vmem:[#allocation13_spill] sm:$0xff]  ;;  %v6611_v18 = vld [vmem:[#allocation62_spill] sm:$0xff] }
 0x276   :  { %v1182_v7 = vrot.slane %v1175_v60, %v1166_v16  ;;  %v6612_v60 = vld [vmem:[#allocation64_spill] sm:$0xff] }
 0x278   :  { %v1184_v53 = vmul.f32 %v1182_v7, %v705_v1  ;;  %v6613_v7 = vld [vmem:[#allocation14_spill] sm:$0xff] }
 0x27a   :  { %v4565_v21 = vrot.slane %v1184_v53, %v4559_v14  ;;  %v4567_v42 = vrot.slane %v1184_v53, %v1192_v25  ;;  %v4569_v58 = vrot.slane %v1184_v53, %v1196_v57  ;;  %v4571_v48 = vrot.slane %v1184_v53, %v1200_v35 }
 0x27c   :  { %v1206_v61 = vmul.f32 %v4565_v21, %v4367_v50  ;;  %v1207_v32 = vmul.f32 %v4567_v42, %v4377_v29  ;;  %v1208_v49 = vmul.f32 %v4569_v58, %v857_v15  ;;  %v1209_v38 = vmul.f32 %v4571_v48, %v858_v28 }
 0x27d   :  { %v1367_v5 = vmul.f32 %v4571_v48, %v4544_v23  ;;  %v4583_v33 = vmul.f32 %v4565_v21, %v3886_v20  ;;  %v4587_v63 = vmul.f32 %v4567_v42, %v3890_v22  ;;  %v4591_v50 = vmul.f32 %v4569_v58, %v4080_v2 }
 0x27e   :  { %v1214_v29 = vcombine.low %v1206_v61, %v1207_v32  ;;  %v1215_v54 = vcombine.low %v1208_v49, %v1209_v38  ;;  %v4595_v15 = vmul.f32 %v4571_v48, %v4087_v17  ;;  %v4599_v23 = vmul.f32 %v4565_v21, %v3894_v24  ;;  %v6614_v61 = vld [vmem:[#allocation15_spill] sm:$0xff]  ;;  %v6615_v38 = vld [vmem:[#allocation66_spill] sm:$0xff] }
 0x27f   :  { %v4603_v20 = vmul.f32 %v4567_v42, %v3900_v26  ;;  %v4607_v22 = vmul.f32 %v4569_v58, %v4096_v39  ;;  %v4611_v2 = vmul.f32 %v4571_v48, %v4105_v13  ;;  %v4615_v17 = vmul.f32 %v4565_v21, %v3906_v31 }
 0x280   :  { %v1222_v28 = vrot.slane %v1214_v29, %v1166_v16  ;;  %v1229_v43 = vrot.slane %v1215_v54, %v1166_v16  ;;  %v4619_v24 = vmul.f32 %v4567_v42, %v3911_v34  ;;  %v4623_v26 = vmul.f32 %v4569_v58, %v4120_v19  ;;  %v6616_v54 = vld [vmem:[#allocation68_spill] sm:$0xff] }
 0x281   :  { %v4627_v39 = vmul.f32 %v4571_v48, %v4130_v62  ;;  %v4631_v13 = vmul.f32 %v4565_v21, %v3916_v37  ;;  %v4635_v31 = vmul.f32 %v4567_v42, %v3921_v41  ;;  %v4639_v34 = vmul.f32 %v4569_v58, %v4140_v0  ;;  %v706_v41 = vld [vmem:[%s6406_s3] sm:$0xf] }
 0x282   :  { %v1230_v6 = vcombine.low %v1222_v28, %v1229_v43  ;;  %v4643_v19 = vmul.f32 %v4571_v48, %v6608_v51  ;;  %v4647_v62 = vmul.f32 %v4565_v21, %v6609_v8  ;;  %v4651_v37 = vmul.f32 %v4567_v42, %v6610_v30  ;;  %v6617_v43 = vld [vmem:[#allocation16_spill] sm:$0xff]  ;;  %v6618_v8 = vld [vmem:[#allocation17_spill] sm:$0xff] }
 0x283   :  { %v4658_v0 = vmul.f32 %v4569_v58, %v6611_v18  ;;  %v4662_v1 = vmul.f32 %v4571_v48, %v6612_v60  ;;  %v4666_v53 = vmul.f32 %v4565_v21, %v6613_v7  ;;  %v4670_v32 = vmul.f32 %v4567_v42, %v6614_v61  ;;  %v6619_v18 = vld [vmem:[#allocation70_spill] sm:$0xff] }
 0x284   :  { %v1237_v49 = vrot.slane %v1230_v6, %v1166_v16  ;;  %v4674_v29 = vmul.f32 %v4569_v58, %v6615_v38  ;;  %v4678_v28 = vmul.f32 %v4571_v48, %v6616_v54  ;;  %v4682_v51 = vmul.f32 %v4565_v21, %v6617_v43  ;;  %v6621_v16 = vld [vmem:[#allocation72_spill] sm:$0xff]  ;;  %v6623_v7 = vld [vmem:[#allocation18_spill] sm:$0xff]  ;;  %v6624_v54 = vld [vmem:[#allocation19_spill] sm:$0xff] }
 0x285   :  { %v4686_v30 = vmul.f32 %v4567_v42, %v6618_v8  ;;  %v4690_v60 = vmul.f32 %v4569_v58, %v6619_v18  ;;  %v4694_v6 = vmul.f32 %v4571_v48, %v6621_v16  ;;  %v4698_v61 = vmul.f32 %v4565_v21, %v6623_v7 }
 0x286   :  { %v1239_v38 = vsub.f32 %v706_v41, %v1237_v49  ;;  %v4702_v43 = vmul.f32 %v4567_v42, %v6624_v54  ;;  %v4706_v8 = vmul.f32 %v4569_v58, %v4242_v12  ;;  %v4710_v18 = vmul.f32 %v4571_v48, %v4249_v52 }
 0x287   :  { %6620 = vst [vmem:[#allocation60_spill] sm:$0xff] %v4690_v60  ;;  %6622 = vst [vmem:[#allocation12_spill] sm:$0xff] %v4694_v6  ;;  %v6625_v60 = vld [vmem:[#allocation21_spill] sm:$0xff]  ;;  %v6627_v6 = vld [vmem:[#allocation23_spill] sm:$0xff]  ;;  %v4722_v41 = vmul.f32 %v4569_v58, %v4271_v59  ;;  %v4726_v12 = vmul.f32 %v4571_v48, %v4275_v4  ;;  %v4747_v4 = vmul.f32 %v4569_v58, %v4283_v40 }
 0x288   :  { %v4714_v16 = vmul.f32 %v4565_v21, %v6625_v60  ;;  %v4718_v7 = vmul.f32 %v4567_v42, %v6627_v6  ;;  %v4729_v49 = vrot.slane %v1239_v38, %v4559_v14  ;;  %v4731_v52 = vrot.slane %v1239_v38, %v1192_v25 }
 0x289   :  { %v4733_v54 = vrot.slane %v1239_v38, %v1196_v57  ;;  %v4735_v60 = vrot.slane %v1239_v38, %v1200_v35  ;;  %v4751_v25 = vmul.f32 %v4571_v48, %v4287_v45  ;;  %v6632_v35 = vld [vmem:[#allocation29_spill] sm:$0xff]  ;;  %v4770_v40 = vmul.f32 %v4571_v48, %v4314_v56 }
 0x28a   :  { %6626 = vst [vmem:[#allocation13_spill] sm:$0xff] %v4714_v16  ;;  %6628 = vst [vmem:[#allocation62_spill] sm:$0xff] %v4718_v7  ;;  %v6629_v16 = vld [vmem:[#allocation25_spill] sm:$0xff]  ;;  %v6630_v7 = vld [vmem:[#allocation27_spill] sm:$0xff]  ;;  %v4758_v38 = vmul.f32 %v4565_v21, %v6632_v35 }
 0x28b   :  { %v4739_v6 = vmul.f32 %v4565_v21, %v6629_v16  ;;  %v4743_v59 = vmul.f32 %v4567_v42, %v6630_v7  ;;  %v4754_v57 = vadd.f32 %v4735_v60, %v1367_v5  ;;  %v6633_v16 = vld [vmem:[#allocation31_spill] sm:$0xff]  ;;  %v4766_v7 = vmul.f32 %v4569_v58, %v4310_v11  ;;  %6635 = vst [vmem:[#allocation15_spill] sm:$0xff] %v4770_v40  ;;  %v6636_v45 = vld [vmem:[#allocation33_spill] sm:$0xff] }
 0x28c   :  { %v4762_v14 = vmul.f32 %v4567_v42, %v6633_v16  ;;  %v4774_v5 = vmul.f32 %v4565_v21, %v6636_v45  ;;  %v4782_v16 = vmul.f32 %v4569_v58, %v4322_v55  ;;  %v4786_v11 = vmul.f32 %v4571_v48, %v4326_v9  ;;  %v6641_v40 = vld [vmem:[#allocation39_spill] sm:$0xff] }
 0x28d   :  { %6631 = vst [vmem:[#allocation64_spill] sm:$0xff] %v4754_v57  ;;  %6634 = vst [vmem:[#allocation14_spill] sm:$0xff] %v4766_v7  ;;  %v6637_v57 = vld [vmem:[#allocation35_spill] sm:$0xff]  ;;  %v6640_v7 = vld [vmem:[#allocation37_spill] sm:$0xff]  ;;  %v4794_v45 = vmul.f32 %v4567_v42, %v6641_v40  ;;  %v4802_v55 = vmul.f32 %v4571_v48, %v4337_v10  ;;  %v4814_v40 = vmul.f32 %v4569_v58, %v4345_v3 }
 0x28e   :  { %v4778_v35 = vmul.f32 %v4567_v42, %v6637_v57  ;;  %6638 = vst [vmem:[#allocation66_spill] sm:$0xff] %v4782_v16  ;;  %6639 = vst [vmem:[#allocation68_spill] sm:$0xff] %v4786_v11  ;;  %v4790_v56 = vmul.f32 %v4565_v21, %v6640_v7  ;;  %v4798_v57 = vmul.f32 %v4569_v58, %v4335_v27  ;;  %v6644_v16 = vld [vmem:[#allocation41_spill] sm:$0xff]  ;;  %v6645_v11 = vld [vmem:[#allocation43_spill] sm:$0xff] }
 0x28f   :  { %6643 = vst [vmem:[#allocation17_spill] sm:$0xff] %v4802_v55  ;;  %v4806_v9 = vmul.f32 %v4565_v21, %v6644_v16  ;;  %v4810_v7 = vmul.f32 %v4567_v42, %v6645_v11  ;;  %6646 = vst [vmem:[#allocation70_spill] sm:$0xff] %v4814_v40  ;;  %v4818_v27 = vmul.f32 %v4571_v48, %v4347_v36  ;;  %v6649_v55 = vld [vmem:[#allocation47_spill] sm:$0xff]  ;;  %v6653_v40 = vld [vmem:[#allocation49_spill] sm:$0xff] }
 0x290   :  { %6642 = vst [vmem:[#allocation16_spill] sm:$0xff] %v4798_v57  ;;  %v6648_v57 = vld [vmem:[#allocation45_spill] sm:$0xff]  ;;  %v4826_v16 = vmul.f32 %v4567_v42, %v6649_v55  ;;  %v4830_v11 = vmul.f32 %v4569_v58, %v4355_v47  ;;  %v4834_v3 = vmul.f32 %v4571_v48, %v4358_v46  ;;  %v4838_v36 = vmul.f32 %v4565_v21, %v6653_v40 }
 0x291   :  { %6647 = vst [vmem:[#allocation72_spill] sm:$0xff] %v4818_v27  ;;  %v4822_v10 = vmul.f32 %v4565_v21, %v6648_v57  ;;  %v6655_v27 = vld [vmem:[#allocation51_spill] sm:$0xff]  ;;  %v4846_v55 = vmul.f32 %v4569_v58, %v4365_v44 }
 0x292   :  { %6650 = vst [vmem:[#allocation18_spill] sm:$0xff] %v4826_v16  ;;  %6651 = vst [vmem:[#allocation19_spill] sm:$0xff] %v4830_v11  ;;  %v4842_v57 = vmul.f32 %v4567_v42, %v6655_v27  ;;  %v6658_v16 = vld [vmem:[#allocation75_spill] sm:$0xff]  ;;  %v6660_v11 = vld [vmem:[#allocation52_spill] sm:$0xff] }
 0x293   :  { %6652 = vst [vmem:[#allocation21_spill] sm:$0xff] %v4834_v3  ;;  %6654 = vst [vmem:[#allocation23_spill] sm:$0xff] %v4838_v36  ;;  %v4850_v47 = vmul.f32 %v4571_v48, %v6658_v16  ;;  %v4854_v46 = vmul.f32 %v4565_v21, %v6660_v11  ;;  %v6662_v3 = vld [vmem:[#allocation53_spill] sm:$0xff]  ;;  %v6664_v36 = vld [vmem:[#allocation76_spill] sm:$0xff] }
 0x294   :  { %6656 = vst [vmem:[#allocation25_spill] sm:$0xff] %v4842_v57  ;;  %6657 = vst [vmem:[#allocation27_spill] sm:$0xff] %v4846_v55  ;;  %v4858_v40 = vmul.f32 %v4567_v42, %v6662_v3  ;;  %v4862_v27 = vmul.f32 %v4569_v58, %v6664_v36  ;;  %v6666_v57 = vld [vmem:[#allocation77_spill] sm:$0xff]  ;;  %v6668_v55 = vld [vmem:[#allocation54_spill] sm:$0xff] }
 0x295   :  { %6659 = vst [vmem:[#allocation29_spill] sm:$0xff] %v4850_v47  ;;  %6661 = vst [vmem:[#allocation31_spill] sm:$0xff] %v4854_v46  ;;  %v4866_v44 = vmul.f32 %v4571_v48, %v6666_v57  ;;  %v4870_v16 = vmul.f32 %v4565_v21, %v6668_v55  ;;  %v6670_v47 = vld [vmem:[#allocation55_spill] sm:$0xff]  ;;  %v6672_v46 = vld [vmem:[#allocation78_spill] sm:$0xff] }
 0x296   :  { %6663 = vst [vmem:[#allocation33_spill] sm:$0xff] %v4858_v40  ;;  %6665 = vst [vmem:[#allocation35_spill] sm:$0xff] %v4862_v27  ;;  %v4874_v11 = vmul.f32 %v4567_v42, %v6670_v47  ;;  %v4878_v3 = vmul.f32 %v4569_v58, %v6672_v46  ;;  %v6674_v40 = vld [vmem:[#allocation79_spill] sm:$0xff]  ;;  %v6676_v27 = vld [vmem:[#allocation56_spill] sm:$0xff] }
 0x297   :  { %6667 = vst [vmem:[#allocation37_spill] sm:$0xff] %v4866_v44  ;;  %6669 = vst [vmem:[#allocation39_spill] sm:$0xff] %v4870_v16  ;;  %v4882_v36 = vmul.f32 %v4571_v48, %v6674_v40  ;;  %v4886_v57 = vmul.f32 %v4565_v21, %v6676_v27  ;;  %v6678_v44 = vld [vmem:[#allocation57_spill] sm:$0xff]  ;;  %v6680_v16 = vld [vmem:[#allocation80_spill] sm:$0xff] }
 0x298   :  { %6671 = vst [vmem:[#allocation41_spill] sm:$0xff] %v4874_v11  ;;  %6673 = vst [vmem:[#allocation43_spill] sm:$0xff] %v4878_v3  ;;  %v4890_v55 = vmul.f32 %v4567_v42, %v6678_v44  ;;  %v4894_v47 = vmul.f32 %v4569_v58, %v6680_v16  ;;  %v6682_v11 = vld [vmem:[#allocation81_spill] sm:$0xff]  ;;  %v6684_v3 = vld [vmem:[#allocation58_spill] sm:$0xff] }
 0x299   :  { %6675 = vst [vmem:[#allocation45_spill] sm:$0xff] %v4882_v36  ;;  %6677 = vst [vmem:[#allocation47_spill] sm:$0xff] %v4886_v57  ;;  %v4898_v46 = vmul.f32 %v4571_v48, %v6682_v11  ;;  %v4902_v40 = vmul.f32 %v4565_v21, %v6684_v3  ;;  %v6686_v36 = vld [vmem:[#allocation59_spill] sm:$0xff]  ;;  %v6688_v57 = vld [vmem:[#allocation82_spill] sm:$0xff] }
 0x29a   :  { %6679 = vst [vmem:[#allocation49_spill] sm:$0xff] %v4890_v55  ;;  %6681 = vst [vmem:[#allocation51_spill] sm:$0xff] %v4894_v47  ;;  %v4906_v27 = vmul.f32 %v4567_v42, %v6686_v36  ;;  %v4910_v44 = vmul.f32 %v4569_v58, %v6688_v57  ;;  %v6690_v55 = vld [vmem:[#allocation83_spill] sm:$0xff]  ;;  %v6692_v47 = vld [vmem:[#allocation61_spill] sm:$0xff] }
 0x29b   :  { %6683 = vst [vmem:[#allocation75_spill] sm:$0xff] %v4898_v46  ;;  %6685 = vst [vmem:[#allocation52_spill] sm:$0xff] %v4902_v40  ;;  %v4914_v16 = vmul.f32 %v4571_v48, %v6690_v55  ;;  %v4918_v11 = vmul.f32 %v4565_v21, %v6692_v47  ;;  %v6694_v46 = vld [vmem:[#allocation63_spill] sm:$0xff]  ;;  %v6696_v40 = vld [vmem:[#allocation84_spill] sm:$0xff] }
 0x29c   :  { %6687 = vst [vmem:[#allocation53_spill] sm:$0xff] %v4906_v27  ;;  %6689 = vst [vmem:[#allocation76_spill] sm:$0xff] %v4910_v44  ;;  %v4922_v3 = vmul.f32 %v4567_v42, %v6694_v46  ;;  %v4926_v36 = vmul.f32 %v4569_v58, %v6696_v40  ;;  %v6698_v27 = vld [vmem:[#allocation85_spill] sm:$0xff] }
 0x29d   :  { %6691 = vst [vmem:[#allocation77_spill] sm:$0xff] %v4914_v16  ;;  %6693 = vst [vmem:[#allocation54_spill] sm:$0xff] %v4918_v11  ;;  %v4930_v57 = vmul.f32 %v4571_v48, %v6698_v27  ;;  %v6700_v44 = vld [vmem:[#allocation65_spill] sm:$0xff]  ;;  %v6702_v16 = vld [vmem:[#allocation67_spill] sm:$0xff] }
 0x29e   :  { %6695 = vst [vmem:[#allocation55_spill] sm:$0xff] %v4922_v3  ;;  %6697 = vst [vmem:[#allocation78_spill] sm:$0xff] %v4926_v36  ;;  %v4934_v55 = vmul.f32 %v4565_v21, %v6700_v44  ;;  %v4938_v47 = vmul.f32 %v4567_v42, %v6702_v16  ;;  %v6704_v11 = vld [vmem:[#allocation86_spill] sm:$0xff]  ;;  %v6706_v3 = vld [vmem:[#allocation87_spill] sm:$0xff] }
 0x29f   :  { %6699 = vst [vmem:[#allocation79_spill] sm:$0xff] %v4930_v57  ;;  %v4942_v46 = vmul.f32 %v4569_v58, %v6704_v11  ;;  %v4946_v40 = vmul.f32 %v4571_v48, %v6706_v3  ;;  %v6708_v36 = vld [vmem:[#allocation69_spill] sm:$0xff]  ;;  %v6710_v57 = vld [vmem:[#allocation71_spill] sm:$0xff] }
 0x2a0   :  { %6701 = vst [vmem:[#allocation56_spill] sm:$0xff] %v4934_v55  ;;  %6703 = vst [vmem:[#allocation57_spill] sm:$0xff] %v4938_v47  ;;  %v4950_v27 = vmul.f32 %v4565_v21, %v6708_v36  ;;  %v4954_v44 = vmul.f32 %v4567_v42, %v6710_v57  ;;  %v6712_v55 = vld [vmem:[#allocation88_spill] sm:$0xff]  ;;  %v6714_v47 = vld [vmem:[#allocation89_spill] sm:$0xff] }
 0x2a1   :  { %6705 = vst [vmem:[#allocation80_spill] sm:$0xff] %v4942_v46  ;;  %6707 = vst [vmem:[#allocation81_spill] sm:$0xff] %v4946_v40  ;;  %v4958_v16 = vmul.f32 %v4569_v58, %v6712_v55  ;;  %v4962_v11 = vmul.f32 %v4571_v48, %v6714_v47  ;;  %v6716_v46 = vld [vmem:[#allocation73_spill] sm:$0xff]  ;;  %v6718_v40 = vld [vmem:[#allocation74_spill] sm:$0xff] }
 0x2a2   :  { %6709 = vst [vmem:[#allocation58_spill] sm:$0xff] %v4950_v27  ;;  %6711 = vst [vmem:[#allocation59_spill] sm:$0xff] %v4954_v44  ;;  %v4966_v3 = vmul.f32 %v4565_v21, %v6716_v46  ;;  %v4970_v36 = vmul.f32 %v4567_v42, %v6718_v40  ;;  %v6720_v27 = vld [vmem:[#allocation90_spill] sm:$0xff]  ;;  %v6722_v44 = vld [vmem:[#allocation91_spill] sm:$0xff] }
 0x2a3   :  { %6713 = vst [vmem:[#allocation82_spill] sm:$0xff] %v4958_v16  ;;  %6715 = vst [vmem:[#allocation83_spill] sm:$0xff] %v4962_v11  ;;  %v4974_v57 = vmul.f32 %v4569_v58, %v6720_v27  ;;  %v4978_v55 = vmul.f32 %v4571_v48, %v6722_v44  ;;  %v6724_v16 = vld [vmem:[#allocation20_spill] sm:$0xff]  ;;  %v6726_v11 = vld [vmem:[#allocation22_spill] sm:$0xff] }
 0x2a4   :  { %6717 = vst [vmem:[#allocation61_spill] sm:$0xff] %v4966_v3  ;;  %6719 = vst [vmem:[#allocation63_spill] sm:$0xff] %v4970_v36  ;;  %v4982_v47 = vmul.f32 %v4565_v21, %v6724_v16  ;;  %v4986_v46 = vmul.f32 %v4567_v42, %v6726_v11  ;;  %v6728_v3 = vld [vmem:[#allocation92_spill] sm:$0xff]  ;;  %v6730_v36 = vld [vmem:[#allocation93_spill] sm:$0xff] }
 0x2a5   :  { %6721 = vst [vmem:[#allocation84_spill] sm:$0xff] %v4974_v57  ;;  %6723 = vst [vmem:[#allocation85_spill] sm:$0xff] %v4978_v55  ;;  %v4990_v40 = vmul.f32 %v4569_v58, %v6728_v3  ;;  %v4994_v27 = vmul.f32 %v4571_v48, %v6730_v36  ;;  %v6732_v57 = vld [vmem:[#allocation24_spill] sm:$0xff]  ;;  %v6734_v55 = vld [vmem:[#allocation26_spill] sm:$0xff] }
 0x2a6   :  { %6725 = vst [vmem:[#allocation65_spill] sm:$0xff] %v4982_v47  ;;  %6727 = vst [vmem:[#allocation67_spill] sm:$0xff] %v4986_v46  ;;  %v4998_v44 = vmul.f32 %v4565_v21, %v6732_v57  ;;  %v5002_v16 = vmul.f32 %v4567_v42, %v6734_v55  ;;  %v6736_v47 = vld [vmem:[#allocation94_spill] sm:$0xff]  ;;  %v6738_v46 = vld [vmem:[#allocation95_spill] sm:$0xff] }
 0x2a7   :  { %6729 = vst [vmem:[#allocation86_spill] sm:$0xff] %v4990_v40  ;;  %6731 = vst [vmem:[#allocation87_spill] sm:$0xff] %v4994_v27  ;;  %v5006_v11 = vmul.f32 %v4569_v58, %v6736_v47  ;;  %v5010_v3 = vmul.f32 %v4571_v48, %v6738_v46  ;;  %v6740_v40 = vld [vmem:[#allocation28_spill] sm:$0xff]  ;;  %v6742_v27 = vld [vmem:[#allocation30_spill] sm:$0xff] }
 0x2a8   :  { %6733 = vst [vmem:[#allocation69_spill] sm:$0xff] %v4998_v44  ;;  %6735 = vst [vmem:[#allocation71_spill] sm:$0xff] %v5002_v16  ;;  %v5014_v36 = vmul.f32 %v4565_v21, %v6740_v40  ;;  %v5018_v57 = vmul.f32 %v4567_v42, %v6742_v27  ;;  %v6744_v44 = vld [vmem:[#allocation96_spill] sm:$0xff]  ;;  %v6746_v16 = vld [vmem:[#allocation97_spill] sm:$0xff] }
 0x2a9   :  { %6737 = vst [vmem:[#allocation88_spill] sm:$0xff] %v5006_v11  ;;  %6739 = vst [vmem:[#allocation89_spill] sm:$0xff] %v5010_v3  ;;  %v5022_v55 = vmul.f32 %v4569_v58, %v6744_v44  ;;  %v5026_v47 = vmul.f32 %v4571_v48, %v6746_v16  ;;  %v6748_v11 = vld [vmem:[#allocation32_spill] sm:$0xff]  ;;  %v6750_v3 = vld [vmem:[#allocation34_spill] sm:$0xff] }
 0x2aa   :  { %6741 = vst [vmem:[#allocation73_spill] sm:$0xff] %v5014_v36  ;;  %6743 = vst [vmem:[#allocation74_spill] sm:$0xff] %v5018_v57  ;;  %v5030_v46 = vmul.f32 %v4565_v21, %v6748_v11  ;;  %v5034_v40 = vmul.f32 %v4567_v42, %v6750_v3  ;;  %v6752_v36 = vld [vmem:[#allocation98_spill] sm:$0xff]  ;;  %v6754_v57 = vld [vmem:[#allocation99_spill] sm:$0xff] }
 0x2ab   :  { %6745 = vst [vmem:[#allocation90_spill] sm:$0xff] %v5022_v55  ;;  %6747 = vst [vmem:[#allocation91_spill] sm:$0xff] %v5026_v47  ;;  %v5038_v27 = vmul.f32 %v4569_v58, %v6752_v36  ;;  %v5042_v44 = vmul.f32 %v4571_v48, %v6754_v57  ;;  %v6756_v55 = vld [vmem:[#allocation36_spill] sm:$0xff]  ;;  %v6758_v47 = vld [vmem:[#allocation38_spill] sm:$0xff] }
 0x2ac   :  { %6749 = vst [vmem:[#allocation20_spill] sm:$0xff] %v5030_v46  ;;  %6751 = vst [vmem:[#allocation22_spill] sm:$0xff] %v5034_v40  ;;  %v5046_v16 = vmul.f32 %v4565_v21, %v6756_v55  ;;  %v5050_v11 = vmul.f32 %v4567_v42, %v6758_v47  ;;  %v6760_v46 = vld [vmem:[#allocation100_spill] sm:$0xff]  ;;  %v6762_v40 = vld [vmem:[#allocation101_spill] sm:$0xff] }
 0x2ad   :  { %6753 = vst [vmem:[#allocation92_spill] sm:$0xff] %v5038_v27  ;;  %6755 = vst [vmem:[#allocation93_spill] sm:$0xff] %v5042_v44  ;;  %v5054_v3 = vmul.f32 %v4569_v58, %v6760_v46  ;;  %v5058_v36 = vmul.f32 %v4571_v48, %v6762_v40  ;;  %v6764_v27 = vld [vmem:[#allocation40_spill] sm:$0xff]  ;;  %v6766_v44 = vld [vmem:[#allocation42_spill] sm:$0xff] }
 0x2ae   :  { %6757 = vst [vmem:[#allocation24_spill] sm:$0xff] %v5046_v16  ;;  %6759 = vst [vmem:[#allocation26_spill] sm:$0xff] %v5050_v11  ;;  %v5062_v57 = vmul.f32 %v4565_v21, %v6764_v27  ;;  %v5066_v55 = vmul.f32 %v4567_v42, %v6766_v44  ;;  %v6768_v16 = vld [vmem:[#allocation102_spill] sm:$0xff]  ;;  %v6770_v11 = vld [vmem:[#allocation103_spill] sm:$0xff] }
 0x2af   :  { %6761 = vst [vmem:[#allocation94_spill] sm:$0xff] %v5054_v3  ;;  %6763 = vst [vmem:[#allocation95_spill] sm:$0xff] %v5058_v36  ;;  %v5070_v47 = vmul.f32 %v4569_v58, %v6768_v16  ;;  %v5074_v46 = vmul.f32 %v4571_v48, %v6770_v11  ;;  %v6772_v3 = vld [vmem:[#allocation44_spill] sm:$0xff]  ;;  %v6774_v36 = vld [vmem:[#allocation46_spill] sm:$0xff] }
 0x2b0   :  { %6765 = vst [vmem:[#allocation28_spill] sm:$0xff] %v5062_v57  ;;  %6767 = vst [vmem:[#allocation30_spill] sm:$0xff] %v5066_v55  ;;  %v5078_v40 = vmul.f32 %v4565_v21, %v6772_v3  ;;  %v5082_v27 = vmul.f32 %v4567_v42, %v6774_v36  ;;  %v6775_v57 = vld [vmem:[#allocation104_spill] sm:$0xff]  ;;  %v6776_v55 = vld [vmem:[#allocation105_spill] sm:$0xff] }
 0x2b1   :  { %6769 = vst [vmem:[#allocation96_spill] sm:$0xff] %v5070_v47  ;;  %6771 = vst [vmem:[#allocation97_spill] sm:$0xff] %v5074_v46  ;;  %v5086_v44 = vmul.f32 %v4569_v58, %v6775_v57  ;;  %v5090_v16 = vmul.f32 %v4571_v48, %v6776_v55  ;;  %v6777_v47 = vld [vmem:[#allocation48_spill] sm:$0xff]  ;;  %v6778_v46 = vld [vmem:[#allocation50_spill] sm:$0xff]  ;;  %v5106_v57 = vadd.f32 %v4729_v49, %v4583_v33 }
 0x2b2   :  { %6773 = vst [vmem:[#allocation32_spill] sm:$0xff] %v5078_v40  ;;  %v5094_v11 = vmul.f32 %v4565_v21, %v6777_v47  ;;  %v5098_v3 = vmul.f32 %v4567_v42, %v6778_v46  ;;  %v6779_v40 = vld [vmem:[#allocation106_spill] sm:$0xff]  ;;  %v5110_v48 = vadd.f32 %v4731_v52, %v4587_v63  ;;  %v5114_v21 = vadd.f32 %v4733_v54, %v4591_v50  ;;  %v6780_v55 = vld [vmem:[#allocation60_spill] sm:$0xff] }
 0x2b3   :  { %v5102_v36 = vmul.f32 %v4569_v58, %v6779_v40  ;;  %v5118_v42 = vadd.f32 %v4735_v60, %v4595_v15  ;;  %v5122_v58 = vadd.f32 %v4729_v49, %v4599_v23  ;;  %v5126_v33 = vadd.f32 %v4731_v52, %v4603_v20  ;;  %v6781_v47 = vld [vmem:[#allocation12_spill] sm:$0xff]  ;;  %v6782_v40 = vld [vmem:[#allocation13_spill] sm:$0xff] }
 0x2b4   :  { %v5130_v63 = vadd.f32 %v4733_v54, %v4607_v22  ;;  %v5134_v50 = vadd.f32 %v4735_v60, %v4611_v2  ;;  %v5138_v15 = vadd.f32 %v4729_v49, %v4615_v17  ;;  %v5142_v23 = vadd.f32 %v4731_v52, %v4619_v24 }
 0x2b5   :  { %v5146_v20 = vadd.f32 %v4733_v54, %v4623_v26  ;;  %v5150_v22 = vadd.f32 %v4735_v60, %v4627_v39  ;;  %v5154_v2 = vadd.f32 %v4729_v49, %v4631_v13  ;;  %v5158_v17 = vadd.f32 %v4731_v52, %v4635_v31 }
 0x2b6   :  { %v5162_v24 = vadd.f32 %v4733_v54, %v4639_v34  ;;  %v5166_v26 = vadd.f32 %v4735_v60, %v4643_v19  ;;  %v5170_v39 = vadd.f32 %v4729_v49, %v4647_v62  ;;  %v5174_v13 = vadd.f32 %v4731_v52, %v4651_v37 }
 0x2b7   :  { %v5178_v31 = vadd.f32 %v4733_v54, %v4658_v0  ;;  %v5182_v34 = vadd.f32 %v4735_v60, %v4662_v1  ;;  %v5186_v19 = vadd.f32 %v4729_v49, %v4666_v53  ;;  %v5190_v62 = vadd.f32 %v4731_v52, %v4670_v32 }
 0x2b8   :  { %v5194_v37 = vadd.f32 %v4733_v54, %v4674_v29  ;;  %v5198_v0 = vadd.f32 %v4735_v60, %v4678_v28  ;;  %v5202_v1 = vadd.f32 %v4729_v49, %v4682_v51  ;;  %v5206_v53 = vadd.f32 %v4731_v52, %v4686_v30 }
 0x2b9   :  { %v5210_v32 = vadd.f32 %v4733_v54, %v6780_v55  ;;  %v5214_v29 = vadd.f32 %v4735_v60, %v6781_v47  ;;  %v5218_v28 = vadd.f32 %v4729_v49, %v4698_v61  ;;  %v5222_v51 = vadd.f32 %v4731_v52, %v4702_v43  ;;  %v6783_v47 = vld [vmem:[#allocation62_spill] sm:$0xff] }
 0x2ba   :  { %v5226_v30 = vadd.f32 %v4733_v54, %v4706_v8  ;;  %v5230_v46 = vadd.f32 %v4735_v60, %v4710_v18  ;;  %v5234_v55 = vadd.f32 %v4729_v49, %v6782_v40  ;;  %v5238_v61 = vadd.f32 %v4731_v52, %v6783_v47 }
 0x2bb   :  { %v5242_v43 = vadd.f32 %v4733_v54, %v4722_v41  ;;  %v5246_v8 = vadd.f32 %v4735_v60, %v4726_v12  ;;  %v5250_v18 = vadd.f32 %v4729_v49, %v4739_v6  ;;  %v5254_v40 = vadd.f32 %v4731_v52, %v4743_v59 }
 0x2bc   :  { %v5258_v47 = vadd.f32 %v4733_v54, %v4747_v4  ;;  %v5262_v41 = vadd.f32 %v4735_v60, %v4751_v25  ;;  %v5266_v12 = vadd.f32 %v4729_v49, %v4758_v38  ;;  %v5270_v6 = vadd.f32 %v4731_v52, %v4762_v14 }
 0x2bd   :  { %6784 = vst [vmem:[#allocation34_spill] sm:$0xff] %v5242_v43  ;;  %6785 = vst [vmem:[#allocation98_spill] sm:$0xff] %v5250_v18  ;;  %v6788_v43 = vld [vmem:[#allocation14_spill] sm:$0xff]  ;;  %v6790_v18 = vld [vmem:[#allocation15_spill] sm:$0xff]  ;;  %v5282_v25 = vadd.f32 %v4729_v49, %v4774_v5  ;;  %v5286_v38 = vadd.f32 %v4731_v52, %v4778_v35  ;;  %v5302_v5 = vadd.f32 %v4731_v52, %v4794_v45 }
 0x2be   :  { %6786 = vst [vmem:[#allocation99_spill] sm:$0xff] %v5266_v12  ;;  %6787 = vst [vmem:[#allocation36_spill] sm:$0xff] %v5270_v6  ;;  %v5274_v59 = vadd.f32 %v4733_v54, %v6788_v43  ;;  %v5278_v4 = vadd.f32 %v4735_v60, %v6790_v18  ;;  %v6792_v12 = vld [vmem:[#allocation66_spill] sm:$0xff]  ;;  %v6793_v6 = vld [vmem:[#allocation68_spill] sm:$0xff]  ;;  %v5298_v18 = vadd.f32 %v4729_v49, %v4790_v56 }
 0x2bf   :  { %6791 = vst [vmem:[#allocation100_spill] sm:$0xff] %v5282_v25  ;;  %v5290_v14 = vadd.f32 %v4733_v54, %v6792_v12  ;;  %v5294_v43 = vadd.f32 %v4735_v60, %v6793_v6  ;;  %6795 = vst [vmem:[#allocation40_spill] sm:$0xff] %v5302_v5  ;;  %v6798_v25 = vld [vmem:[#allocation17_spill] sm:$0xff]  ;;  %v5314_v6 = vadd.f32 %v4729_v49, %v4806_v9  ;;  %v6803_v5 = vld [vmem:[#allocation72_spill] sm:$0xff] }
 0x2c0   :  { %6789 = vst [vmem:[#allocation38_spill] sm:$0xff] %v5274_v59  ;;  %6794 = vst [vmem:[#allocation101_spill] sm:$0xff] %v5298_v18  ;;  %v6796_v59 = vld [vmem:[#allocation16_spill] sm:$0xff]  ;;  %v5310_v12 = vadd.f32 %v4735_v60, %v6798_v25  ;;  %v5318_v56 = vadd.f32 %v4731_v52, %v4810_v7  ;;  %v6801_v18 = vld [vmem:[#allocation70_spill] sm:$0xff]  ;;  %v5330_v25 = vadd.f32 %v4729_v49, %v4822_v10 }
 0x2c1   :  { %v5306_v35 = vadd.f32 %v4733_v54, %v6796_v59  ;;  %6800 = vst [vmem:[#allocation103_spill] sm:$0xff] %v5314_v6  ;;  %v5322_v45 = vadd.f32 %v4733_v54, %v6801_v18  ;;  %v5326_v59 = vadd.f32 %v4735_v60, %v6803_v5  ;;  %v6808_v6 = vld [vmem:[#allocation19_spill] sm:$0xff] }
 0x2c2   :  { %6799 = vst [vmem:[#allocation102_spill] sm:$0xff] %v5310_v12  ;;  %6805 = vst [vmem:[#allocation104_spill] sm:$0xff] %v5330_v25  ;;  %v5338_v7 = vadd.f32 %v4733_v54, %v6808_v6  ;;  %v6810_v12 = vld [vmem:[#allocation21_spill] sm:$0xff]  ;;  %v6816_v25 = vld [vmem:[#allocation27_spill] sm:$0xff] }
 0x2c3   :  { %6797 = vst [vmem:[#allocation42_spill] sm:$0xff] %v5306_v35  ;;  %6802 = vst [vmem:[#allocation44_spill] sm:$0xff] %v5322_v45  ;;  %v6806_v35 = vld [vmem:[#allocation18_spill] sm:$0xff]  ;;  %v5342_v18 = vadd.f32 %v4735_v60, %v6810_v12  ;;  %v6812_v45 = vld [vmem:[#allocation23_spill] sm:$0xff] }
 0x2c4   :  { %6804 = vst [vmem:[#allocation46_spill] sm:$0xff] %v5326_v59  ;;  %v5334_v9 = vadd.f32 %v4731_v52, %v6806_v35  ;;  %6809 = vst [vmem:[#allocation48_spill] sm:$0xff] %v5338_v7  ;;  %v5346_v5 = vadd.f32 %v4729_v49, %v6812_v45  ;;  %v6814_v59 = vld [vmem:[#allocation25_spill] sm:$0xff]  ;;  %v5354_v35 = vadd.f32 %v4733_v54, %v6816_v25  ;;  %v6820_v7 = vld [vmem:[#allocation31_spill] sm:$0xff] }
 0x2c5   :  { %6811 = vst [vmem:[#allocation50_spill] sm:$0xff] %v5342_v18  ;;  %v5350_v10 = vadd.f32 %v4731_v52, %v6814_v59  ;;  %v5362_v12 = vadd.f32 %v4729_v49, %v6820_v7  ;;  %v6822_v18 = vld [vmem:[#allocation33_spill] sm:$0xff] }
 0x2c6   :  { %6807 = vst [vmem:[#allocation105_spill] sm:$0xff] %v5334_v9  ;;  %6813 = vst [vmem:[#allocation106_spill] sm:$0xff] %v5346_v5  ;;  %v6818_v9 = vld [vmem:[#allocation29_spill] sm:$0xff]  ;;  %v5366_v45 = vadd.f32 %v4731_v52, %v6822_v18  ;;  %v6824_v5 = vld [vmem:[#allocation35_spill] sm:$0xff] }
 0x2c7   :  { %6815 = vst [vmem:[#allocation60_spill] sm:$0xff] %v5350_v10  ;;  %6817 = vst [vmem:[#allocation12_spill] sm:$0xff] %v5354_v35  ;;  %v5358_v6 = vadd.f32 %v4735_v60, %v6818_v9  ;;  %v5370_v59 = vadd.f32 %v4733_v54, %v6824_v5  ;;  %v6826_v10 = vld [vmem:[#allocation37_spill] sm:$0xff]  ;;  %v6828_v35 = vld [vmem:[#allocation39_spill] sm:$0xff] }
 0x2c8   :  { %6821 = vst [vmem:[#allocation62_spill] sm:$0xff] %v5362_v12  ;;  %6823 = vst [vmem:[#allocation14_spill] sm:$0xff] %v5366_v45  ;;  %v5374_v25 = vadd.f32 %v4735_v60, %v6826_v10  ;;  %v5378_v9 = vadd.f32 %v4729_v49, %v6828_v35  ;;  %v6832_v12 = vld [vmem:[#allocation43_spill] sm:$0xff]  ;;  %v6834_v45 = vld [vmem:[#allocation45_spill] sm:$0xff] }
 0x2c9   :  { %6819 = vst [vmem:[#allocation13_spill] sm:$0xff] %v5358_v6  ;;  %6825 = vst [vmem:[#allocation15_spill] sm:$0xff] %v5370_v59  ;;  %v6830_v6 = vld [vmem:[#allocation41_spill] sm:$0xff]  ;;  %v5386_v18 = vadd.f32 %v4733_v54, %v6832_v12  ;;  %v5390_v5 = vadd.f32 %v4735_v60, %v6834_v45  ;;  %v6836_v59 = vld [vmem:[#allocation47_spill] sm:$0xff] }
 0x2ca   :  { %6827 = vst [vmem:[#allocation66_spill] sm:$0xff] %v5374_v25  ;;  %6829 = vst [vmem:[#allocation68_spill] sm:$0xff] %v5378_v9  ;;  %v5382_v7 = vadd.f32 %v4731_v52, %v6830_v6  ;;  %v5394_v10 = vadd.f32 %v4729_v49, %v6836_v59  ;;  %v6838_v25 = vld [vmem:[#allocation49_spill] sm:$0xff]  ;;  %v6840_v9 = vld [vmem:[#allocation51_spill] sm:$0xff] }
 0x2cb   :  { %6833 = vst [vmem:[#allocation17_spill] sm:$0xff] %v5386_v18  ;;  %6835 = vst [vmem:[#allocation70_spill] sm:$0xff] %v5390_v5  ;;  %v5398_v35 = vadd.f32 %v4731_v52, %v6838_v25  ;;  %v5402_v6 = vadd.f32 %v4733_v54, %v6840_v9  ;;  %v6844_v18 = vld [vmem:[#allocation52_spill] sm:$0xff]  ;;  %v6846_v5 = vld [vmem:[#allocation53_spill] sm:$0xff] }
 0x2cc   :  { %6831 = vst [vmem:[#allocation16_spill] sm:$0xff] %v5382_v7  ;;  %6837 = vst [vmem:[#allocation72_spill] sm:$0xff] %v5394_v10  ;;  %v6842_v7 = vld [vmem:[#allocation75_spill] sm:$0xff]  ;;  %v5410_v45 = vadd.f32 %v4729_v49, %v6844_v18  ;;  %v5414_v59 = vadd.f32 %v4731_v52, %v6846_v5  ;;  %v6848_v10 = vld [vmem:[#allocation76_spill] sm:$0xff] }
 0x2cd   :  { %6839 = vst [vmem:[#allocation18_spill] sm:$0xff] %v5398_v35  ;;  %6841 = vst [vmem:[#allocation19_spill] sm:$0xff] %v5402_v6  ;;  %v5406_v12 = vadd.f32 %v4735_v60, %v6842_v7  ;;  %v5418_v25 = vadd.f32 %v4733_v54, %v6848_v10  ;;  %v6850_v35 = vld [vmem:[#allocation77_spill] sm:$0xff]  ;;  %v6852_v6 = vld [vmem:[#allocation54_spill] sm:$0xff] }
 0x2ce   :  { %6845 = vst [vmem:[#allocation23_spill] sm:$0xff] %v5410_v45  ;;  %6847 = vst [vmem:[#allocation25_spill] sm:$0xff] %v5414_v59  ;;  %v5422_v9 = vadd.f32 %v4735_v60, %v6850_v35  ;;  %v5426_v7 = vadd.f32 %v4729_v49, %v6852_v6  ;;  %v6856_v45 = vld [vmem:[#allocation78_spill] sm:$0xff]  ;;  %v6858_v59 = vld [vmem:[#allocation79_spill] sm:$0xff] }
 0x2cf   :  { %6843 = vst [vmem:[#allocation21_spill] sm:$0xff] %v5406_v12  ;;  %6849 = vst [vmem:[#allocation27_spill] sm:$0xff] %v5418_v25  ;;  %v6854_v12 = vld [vmem:[#allocation55_spill] sm:$0xff]  ;;  %v5434_v5 = vadd.f32 %v4733_v54, %v6856_v45  ;;  %v5438_v10 = vadd.f32 %v4735_v60, %v6858_v59  ;;  %v6860_v25 = vld [vmem:[#allocation56_spill] sm:$0xff] }
 0x2d0   :  { %6851 = vst [vmem:[#allocation29_spill] sm:$0xff] %v5422_v9  ;;  %6853 = vst [vmem:[#allocation31_spill] sm:$0xff] %v5426_v7  ;;  %v5430_v18 = vadd.f32 %v4731_v52, %v6854_v12  ;;  %v5442_v35 = vadd.f32 %v4729_v49, %v6860_v25  ;;  %v6862_v9 = vld [vmem:[#allocation57_spill] sm:$0xff]  ;;  %v6864_v7 = vld [vmem:[#allocation80_spill] sm:$0xff] }
 0x2d1   :  { %6857 = vst [vmem:[#allocation35_spill] sm:$0xff] %v5434_v5  ;;  %6859 = vst [vmem:[#allocation37_spill] sm:$0xff] %v5438_v10  ;;  %v5446_v6 = vadd.f32 %v4731_v52, %v6862_v9  ;;  %v5450_v12 = vadd.f32 %v4733_v54, %v6864_v7  ;;  %v6868_v5 = vld [vmem:[#allocation58_spill] sm:$0xff]  ;;  %v6870_v10 = vld [vmem:[#allocation59_spill] sm:$0xff] }
 0x2d2   :  { %6855 = vst [vmem:[#allocation33_spill] sm:$0xff] %v5430_v18  ;;  %6861 = vst [vmem:[#allocation39_spill] sm:$0xff] %v5442_v35  ;;  %v6866_v18 = vld [vmem:[#allocation81_spill] sm:$0xff]  ;;  %v5458_v59 = vadd.f32 %v4729_v49, %v6868_v5  ;;  %v5462_v25 = vadd.f32 %v4731_v52, %v6870_v10  ;;  %v6872_v35 = vld [vmem:[#allocation82_spill] sm:$0xff] }
 0x2d3   :  { %6863 = vst [vmem:[#allocation41_spill] sm:$0xff] %v5446_v6  ;;  %6865 = vst [vmem:[#allocation43_spill] sm:$0xff] %v5450_v12  ;;  %v5454_v45 = vadd.f32 %v4735_v60, %v6866_v18  ;;  %v5466_v9 = vadd.f32 %v4733_v54, %v6872_v35  ;;  %v6874_v6 = vld [vmem:[#allocation83_spill] sm:$0xff]  ;;  %v6876_v12 = vld [vmem:[#allocation61_spill] sm:$0xff] }
 0x2d4   :  { %6869 = vst [vmem:[#allocation47_spill] sm:$0xff] %v5458_v59  ;;  %6871 = vst [vmem:[#allocation49_spill] sm:$0xff] %v5462_v25  ;;  %v5470_v7 = vadd.f32 %v4735_v60, %v6874_v6  ;;  %v5474_v18 = vadd.f32 %v4729_v49, %v6876_v12  ;;  %v6880_v59 = vld [vmem:[#allocation84_spill] sm:$0xff]  ;;  %v6882_v25 = vld [vmem:[#allocation85_spill] sm:$0xff] }
 0x2d5   :  { %6867 = vst [vmem:[#allocation45_spill] sm:$0xff] %v5454_v45  ;;  %6873 = vst [vmem:[#allocation51_spill] sm:$0xff] %v5466_v9  ;;  %v6878_v45 = vld [vmem:[#allocation63_spill] sm:$0xff]  ;;  %v5482_v10 = vadd.f32 %v4733_v54, %v6880_v59  ;;  %v5486_v35 = vadd.f32 %v4735_v60, %v6882_v25  ;;  %v6884_v9 = vld [vmem:[#allocation65_spill] sm:$0xff] }
 0x2d6   :  { %6875 = vst [vmem:[#allocation75_spill] sm:$0xff] %v5470_v7  ;;  %6877 = vst [vmem:[#allocation52_spill] sm:$0xff] %v5474_v18  ;;  %v5478_v5 = vadd.f32 %v4731_v52, %v6878_v45  ;;  %v5490_v6 = vadd.f32 %v4729_v49, %v6884_v9  ;;  %v6886_v7 = vld [vmem:[#allocation67_spill] sm:$0xff]  ;;  %v6888_v18 = vld [vmem:[#allocation86_spill] sm:$0xff] }
 0x2d7   :  { %6881 = vst [vmem:[#allocation76_spill] sm:$0xff] %v5482_v10  ;;  %6883 = vst [vmem:[#allocation77_spill] sm:$0xff] %v5486_v35  ;;  %v5494_v12 = vadd.f32 %v4731_v52, %v6886_v7  ;;  %v5498_v45 = vadd.f32 %v4733_v54, %v6888_v18  ;;  %v6892_v10 = vld [vmem:[#allocation69_spill] sm:$0xff]  ;;  %v6894_v35 = vld [vmem:[#allocation71_spill] sm:$0xff] }
 0x2d8   :  { %6879 = vst [vmem:[#allocation53_spill] sm:$0xff] %v5478_v5  ;;  %6885 = vst [vmem:[#allocation54_spill] sm:$0xff] %v5490_v6  ;;  %v6890_v5 = vld [vmem:[#allocation87_spill] sm:$0xff]  ;;  %v5506_v25 = vadd.f32 %v4729_v49, %v6892_v10  ;;  %v5510_v9 = vadd.f32 %v4731_v52, %v6894_v35  ;;  %v6896_v6 = vld [vmem:[#allocation88_spill] sm:$0xff] }
 0x2d9   :  { %6887 = vst [vmem:[#allocation55_spill] sm:$0xff] %v5494_v12  ;;  %6889 = vst [vmem:[#allocation78_spill] sm:$0xff] %v5498_v45  ;;  %v5502_v59 = vadd.f32 %v4735_v60, %v6890_v5  ;;  %v5514_v7 = vadd.f32 %v4733_v54, %v6896_v6  ;;  %v6898_v12 = vld [vmem:[#allocation89_spill] sm:$0xff] }
 0x2da   :  { %6893 = vst [vmem:[#allocation56_spill] sm:$0xff] %v5506_v25  ;;  %6895 = vst [vmem:[#allocation57_spill] sm:$0xff] %v5510_v9  ;;  %v5518_v18 = vadd.f32 %v4735_v60, %v6898_v12  ;;  %v6900_v45 = vld [vmem:[#allocation73_spill] sm:$0xff]  ;;  %v6904_v25 = vld [vmem:[#allocation90_spill] sm:$0xff] }
 0x2db   :  { %6891 = vst [vmem:[#allocation79_spill] sm:$0xff] %v5502_v59  ;;  %6897 = vst [vmem:[#allocation80_spill] sm:$0xff] %v5514_v7  ;;  %v5522_v5 = vadd.f32 %v4729_v49, %v6900_v45  ;;  %v6902_v59 = vld [vmem:[#allocation74_spill] sm:$0xff]  ;;  %v5530_v35 = vadd.f32 %v4733_v54, %v6904_v25  ;;  %v6906_v9 = vld [vmem:[#allocation91_spill] sm:$0xff] }
 0x2dc   :  { %6899 = vst [vmem:[#allocation81_spill] sm:$0xff] %v5518_v18  ;;  %v5526_v10 = vadd.f32 %v4731_v52, %v6902_v59  ;;  %v5534_v6 = vadd.f32 %v4735_v60, %v6906_v9  ;;  %v6908_v7 = vld [vmem:[#allocation20_spill] sm:$0xff]  ;;  %v6910_v18 = vld [vmem:[#allocation22_spill] sm:$0xff] }
 0x2dd   :  { %6901 = vst [vmem:[#allocation58_spill] sm:$0xff] %v5522_v5  ;;  %6905 = vst [vmem:[#allocation82_spill] sm:$0xff] %v5530_v35  ;;  %v5538_v12 = vadd.f32 %v4729_v49, %v6908_v7  ;;  %v5542_v45 = vadd.f32 %v4731_v52, %v6910_v18  ;;  %v6912_v5 = vld [vmem:[#allocation92_spill] sm:$0xff] }
 0x2de   :  { %6903 = vst [vmem:[#allocation59_spill] sm:$0xff] %v5526_v10  ;;  %6907 = vst [vmem:[#allocation83_spill] sm:$0xff] %v5534_v6  ;;  %v5546_v59 = vadd.f32 %v4733_v54, %v6912_v5  ;;  %v6914_v10 = vld [vmem:[#allocation93_spill] sm:$0xff]  ;;  %v6916_v35 = vld [vmem:[#allocation24_spill] sm:$0xff] }
 0x2df   :  { %6909 = vst [vmem:[#allocation61_spill] sm:$0xff] %v5538_v12  ;;  %6911 = vst [vmem:[#allocation63_spill] sm:$0xff] %v5542_v45  ;;  %v5550_v25 = vadd.f32 %v4735_v60, %v6914_v10  ;;  %v5554_v9 = vadd.f32 %v4729_v49, %v6916_v35  ;;  %v6918_v6 = vld [vmem:[#allocation26_spill] sm:$0xff]  ;;  %v6922_v45 = vld [vmem:[#allocation95_spill] sm:$0xff] }
 0x2e0   :  { %6913 = vst [vmem:[#allocation84_spill] sm:$0xff] %v5546_v59  ;;  %v5558_v7 = vadd.f32 %v4731_v52, %v6918_v6  ;;  %v6920_v12 = vld [vmem:[#allocation94_spill] sm:$0xff]  ;;  %v5566_v5 = vadd.f32 %v4735_v60, %v6922_v45  ;;  %v6923_v59 = vld [vmem:[#allocation28_spill] sm:$0xff] }
 0x2e1   :  { %6915 = vst [vmem:[#allocation85_spill] sm:$0xff] %v5550_v25  ;;  %6917 = vst [vmem:[#allocation65_spill] sm:$0xff] %v5554_v9  ;;  %v5562_v18 = vadd.f32 %v4733_v54, %v6920_v12  ;;  %v5570_v10 = vadd.f32 %v4729_v49, %v6923_v59  ;;  %v6924_v25 = vld [vmem:[#allocation30_spill] sm:$0xff]  ;;  %v6925_v9 = vld [vmem:[#allocation96_spill] sm:$0xff]  ;;  %v5590_v59 = vadd.f32 %v4731_v52, %v5082_v27 }
 0x2e2   :  { %6919 = vst [vmem:[#allocation67_spill] sm:$0xff] %v5558_v7  ;;  %v5574_v35 = vadd.f32 %v4731_v52, %v6924_v25  ;;  %v5578_v6 = vadd.f32 %v4733_v54, %v6925_v9  ;;  %v6926_v7 = vld [vmem:[#allocation97_spill] sm:$0xff]  ;;  %v5594_v25 = vadd.f32 %v4733_v54, %v5086_v44  ;;  %v5598_v9 = vadd.f32 %v4735_v60, %v5090_v16 }
 0x2e3   :  { %6921 = vst [vmem:[#allocation86_spill] sm:$0xff] %v5562_v18  ;;  %v5582_v12 = vadd.f32 %v4735_v60, %v6926_v7  ;;  %v6927_v18 = vld [vmem:[#allocation32_spill] sm:$0xff]  ;;  %v5602_v7 = vadd.f32 %v4729_v49, %v5094_v11  ;;  %v5610_v27 = vadd.f32 %v4733_v54, %v5102_v36  ;;  %v1519_v44 = vmax.f32 %v5114_v21, 0.0 }
 0x2e4   :  { %v5586_v45 = vadd.f32 %v4729_v49, %v6927_v18  ;;  %6929 = vst [vmem:[#allocation69_spill] sm:$0xff] %v5594_v25  ;;  %v5606_v18 = vadd.f32 %v4731_v52, %v5098_v3  ;;  %v1521_v25 = vmax.f32 %v5122_v58, 0.0  ;;  %v1523_v60 = vmax.f32 %v5130_v63, 0.0 }
 0x2e5   :  { %6930 = vst [vmem:[#allocation71_spill] sm:$0xff] %v5602_v7  ;;  %6931 = vst [vmem:[#allocation88_spill] sm:$0xff] %v5610_v27  ;;  %v1518_v16 = vmax.f32 %v5110_v48, 0.0  ;;  %v1522_v49 = vmax.f32 %v5126_v33, 0.0  ;;  %v1520_v11 = vmax.f32 %v5118_v42, 0.0  ;;  %v1524_v52 = vmax.f32 %v5134_v50, 0.0 }
 0x2e6   :  { %6928 = vst [vmem:[#allocation87_spill] sm:$0xff] %v5586_v45  ;;  %v1517_v45 = vmax.f32 %v5106_v57, 0.0  ;;  %v1526_v3 = vmax.f32 %v5142_v23, 0.0  ;;  %v1647_v36 = vpack.c.bf16 %v1523_v60, %v1519_v44  ;;  %v1530_v57 = vmax.f32 %v5158_v17, 0.0 }
 0x2e7   :  { %v1528_v21 = vmax.f32 %v5150_v22, 0.0  ;;  %v1646_v27 = vpack.c.bf16 %v1522_v49, %v1518_v16  ;;  %v1648_v58 = vpack.c.bf16 %v1524_v52, %v1520_v11  ;;  %v1532_v63 = vmax.f32 %v5166_v26, 0.0 }
 0x2e8   :  { %v1645_v54 = vpack.c.bf16 %v1521_v25, %v1517_v45  ;;  %v1525_v48 = vmax.f32 %v5138_v15, 0.0  ;;  %v1650_v7 = vpack.c.bf16 %v1530_v57, %v1526_v3  ;;  %v1529_v33 = vmax.f32 %v5154_v2, 0.0 }
 0x2e9   :  { %v1527_v42 = vmax.f32 %v5146_v20, 0.0  ;;  %v1531_v50 = vmax.f32 %v5162_v24, 0.0  ;;  %1997 = vmatprep.mubr.bf16.mxu0 %v1646_v27  ;;  %2158 = vmatprep.mubr.bf16.mxu1 %v1648_v58  ;;  %v1652_v23 = vpack.c.bf16 %v1532_v63, %v1528_v21  ;;  %v1534_v17 = vmax.f32 %v5174_v13, 0.0 }
 0x2ea   :  { %v1538_v22 = vmax.f32 %v5190_v62, 0.0  ;;  %v1536_v45 = vmax.f32 %v5182_v34, 0.0  ;;  %1998 = vmatmul.mubr.bf16.vlgmr.msra.gmra.mrb[48].mxu0 %v1645_v54  ;;  %2159 = vmatmul.mubr.bf16.vlgmr.msra.gmra.mrb[80].mxu1 %v1647_v36  ;;  %v1649_v26 = vpack.c.bf16 %v1529_v33, %v1525_v48  ;;  %v1540_v25 = vmax.f32 %v5198_v0, 0.0  ;;  %v6935_v48 = vld [vmem:[#allocation99_spill] sm:$0xff] }
 0x2eb   :  { %v1651_v15 = vpack.c.bf16 %v1531_v50, %v1527_v42  ;;  %v1533_v2 = vmax.f32 %v5170_v39, 0.0  ;;  %2005 = vmatprep.mubr.bf16.mxu0 %v1650_v7  ;;  %2166 = vmatprep.mubr.bf16.mxu1 %v1652_v23  ;;  %v1537_v24 = vmax.f32 %v5186_v19, 0.0  ;;  %v1535_v27 = vmax.f32 %v5178_v31, 0.0  ;;  %v6936_v42 = vld [vmem:[#allocation100_spill] sm:$0xff]  ;;  %v6937_v23 = vld [vmem:[#allocation38_spill] sm:$0xff] }
 0x2ec   :  { %v1654_v20 = vpack.c.bf16 %v1538_v22, %v1534_v17  ;;  %v1539_v13 = vmax.f32 %v5194_v37, 0.0  ;;  %v1656_v62 = vpack.c.bf16 %v1540_v25, %v1536_v45  ;;  %v1542_v34 = vmax.f32 %v5206_v53, 0.0 }
 0x2ed   :  { %v1546_v44 = vmax.f32 %v5222_v51, 0.0  ;;  %v1544_v60 = vmax.f32 %v5214_v29, 0.0  ;;  %v1653_v16 = vpack.c.bf16 %v1537_v24, %v1533_v2  ;;  %v1548_v39 = vmax.f32 %v5230_v46, 0.0 }
 0x2ee   :  { %v1655_v0 = vpack.c.bf16 %v1539_v13, %v1535_v27  ;;  %v1541_v7 = vmax.f32 %v5202_v1, 0.0  ;;  %v1545_v19 = vmax.f32 %v5218_v28, 0.0  ;;  %v1543_v31 = vmax.f32 %v5210_v32, 0.0  ;;  %v6932_v32 = vld [vmem:[#allocation98_spill] sm:$0xff]  ;;  %v6941_v27 = vld [vmem:[#allocation101_spill] sm:$0xff] }
 0x2ef   :  { %v1658_v49 = vpack.c.bf16 %v1546_v44, %v1542_v34  ;;  %v1547_v37 = vmax.f32 %v5226_v30, 0.0  ;;  %v1660_v11 = vpack.c.bf16 %v1548_v39, %v1544_v60  ;;  %v1550_v53 = vmax.f32 %v5238_v61, 0.0  ;;  %v6933_v30 = vld [vmem:[#allocation34_spill] sm:$0xff]  ;;  %v6942_v34 = vld [vmem:[#allocation103_spill] sm:$0xff]  ;;  %v6944_v39 = vld [vmem:[#allocation44_spill] sm:$0xff] }
 0x2f0   :  { %v1554_v51 = vmax.f32 %v5254_v40, 0.0  ;;  %v1552_v29 = vmax.f32 %v5246_v8, 0.0  ;;  %v5647_v52 = vpack.c.bf16 %v1545_v19, %v1541_v7  ;;  %v1556_v1 = vmax.f32 %v5262_v41, 0.0  ;;  %v6934_v8 = vld [vmem:[#allocation36_spill] sm:$0xff]  ;;  %v6943_v44 = vld [vmem:[#allocation42_spill] sm:$0xff] }
 0x2f1   :  { %v5649_v3 = vpack.c.bf16 %v1547_v37, %v1543_v31  ;;  %v1549_v46 = vmax.f32 %v5234_v55, 0.0  ;;  %v1553_v54 = vmax.f32 %v6932_v32, 0.0  ;;  %v1551_v36 = vmax.f32 %v6933_v30, 0.0  ;;  %v6946_v37 = vld [vmem:[#allocation60_spill] sm:$0xff]  ;;  %v6948_v32 = vld [vmem:[#allocation13_spill] sm:$0xff] }
 0x2f2   :  { %v5653_v28 = vpack.c.bf16 %v1554_v51, %v1550_v53  ;;  %v1555_v61 = vmax.f32 %v5258_v47, 0.0  ;;  %2006 = vmatmul.mubr.bf16.gmra.mrb[52].mxu0 %v1649_v26  ;;  %2167 = vmatmul.mubr.bf16.gmra.mrb[84].mxu1 %v1651_v15  ;;  %v5658_v40 = vpack.c.bf16 %v1556_v1, %v1552_v29  ;;  %v1558_v57 = vmax.f32 %v6934_v8, 0.0  ;;  %v6939_v15 = vld [vmem:[#allocation102_spill] sm:$0xff]  ;;  %v6949_v30 = vld [vmem:[#allocation104_spill] sm:$0xff] }
 0x2f3   :  { %v1562_v21 = vmax.f32 %v5286_v38, 0.0  ;;  %v1560_v41 = vmax.f32 %v5278_v4, 0.0  ;;  %2013 = vmatprep.mubr.bf16.mxu0 %v1654_v20  ;;  %2174 = vmatprep.mubr.bf16.mxu1 %v1656_v62  ;;  %v5663_v55 = vpack.c.bf16 %v1553_v54, %v1549_v46  ;;  %v1564_v63 = vmax.f32 %v5294_v43, 0.0  ;;  %v6938_v4 = vld [vmem:[#allocation40_spill] sm:$0xff]  ;;  %v6940_v20 = vld [vmem:[#allocation46_spill] sm:$0xff] }
 0x2f4   :  { %v5665_v58 = vpack.c.bf16 %v1555_v61, %v1551_v36  ;;  %v1557_v47 = vmax.f32 %v6935_v48, 0.0  ;;  %v1561_v50 = vmax.f32 %v6936_v42, 0.0  ;;  %v1559_v17 = vmax.f32 %v6937_v23, 0.0  ;;  %v6947_v51 = vld [vmem:[#allocation50_spill] sm:$0xff]  ;;  %v6954_v23 = vld [vmem:[#allocation16_spill] sm:$0xff] }
 0x2f5   :  { %v5669_v33 = vpack.c.bf16 %v1562_v21, %v1558_v57  ;;  %v1563_v38 = vmax.f32 %v5290_v14, 0.0  ;;  %v5674_v22 = vpack.c.bf16 %v1564_v63, %v1560_v41  ;;  %v1566_v45 = vmax.f32 %v6938_v4, 0.0  ;;  %v6950_v8 = vld [vmem:[#allocation106_spill] sm:$0xff]  ;;  %v6951_v21 = vld [vmem:[#allocation48_spill] sm:$0xff] }
 0x2f6   :  { %v1570_v26 = vmax.f32 %v5318_v56, 0.0  ;;  %v1568_v25 = vmax.f32 %v6939_v15, 0.0  ;;  %v5679_v2 = vpack.c.bf16 %v1561_v50, %v1557_v47  ;;  %v1572_v24 = vmax.f32 %v6940_v20, 0.0  ;;  %v6945_v56 = vld [vmem:[#allocation105_spill] sm:$0xff]  ;;  %v6952_v63 = vld [vmem:[#allocation12_spill] sm:$0xff]  ;;  %v6953_v42 = vld [vmem:[#allocation14_spill] sm:$0xff] }
 0x2f7   :  { %v5681_v43 = vpack.c.bf16 %v1563_v38, %v1559_v17  ;;  %v1565_v13 = vmax.f32 %v6941_v27, 0.0  ;;  %v1569_v14 = vmax.f32 %v6942_v34, 0.0  ;;  %v1567_v60 = vmax.f32 %v6943_v44, 0.0  ;;  %v6955_v38 = vld [vmem:[#allocation66_spill] sm:$0xff] }
 0x2f8   :  { %v5685_v62 = vpack.c.bf16 %v1570_v26, %v1566_v45  ;;  %v1571_v7 = vmax.f32 %v6944_v39, 0.0  ;;  %v5690_v19 = vpack.c.bf16 %v1572_v24, %v1568_v25  ;;  %v1574_v31 = vmax.f32 %v6945_v56, 0.0  ;;  %v6956_v45 = vld [vmem:[#allocation70_spill] sm:$0xff]  ;;  %v6959_v24 = vld [vmem:[#allocation15_spill] sm:$0xff]  ;;  %v6962_v39 = vld [vmem:[#allocation25_spill] sm:$0xff] }
 0x2f9   :  { %v1578_v53 = vmax.f32 %v6946_v37, 0.0  ;;  %v1576_v29 = vmax.f32 %v6947_v51, 0.0  ;;  %v5695_v1 = vpack.c.bf16 %v1569_v14, %v1565_v13  ;;  %v1580_v54 = vmax.f32 %v6948_v32, 0.0  ;;  %v6957_v15 = vld [vmem:[#allocation62_spill] sm:$0xff]  ;;  %v6960_v13 = vld [vmem:[#allocation17_spill] sm:$0xff]  ;;  %v6965_v32 = vld [vmem:[#allocation72_spill] sm:$0xff] }
 0x2fa   :  { %v5697_v46 = vpack.c.bf16 %v1571_v7, %v1567_v60  ;;  %v1573_v36 = vmax.f32 %v6949_v30, 0.0  ;;  %2014 = vmatmul.mubr.bf16.gmra.mrb[56].mxu0 %v1653_v16  ;;  %2175 = vmatmul.mubr.bf16.gmra.mrb[88].mxu1 %v1655_v0  ;;  %v1577_v57 = vmax.f32 %v6950_v8, 0.0  ;;  %v1575_v41 = vmax.f32 %v6951_v21, 0.0  ;;  %v6961_v44 = vld [vmem:[#allocation18_spill] sm:$0xff]  ;;  %v6963_v56 = vld [vmem:[#allocation21_spill] sm:$0xff] }
 0x2fb   :  { %v5701_v61 = vpack.c.bf16 %v1578_v53, %v1574_v31  ;;  %v1579_v48 = vmax.f32 %v6952_v63, 0.0  ;;  %2021 = vmatprep.mubr.bf16.mxu0 %v1658_v49  ;;  %2182 = vmatprep.mubr.bf16.mxu1 %v1660_v11  ;;  %v5706_v47 = vpack.c.bf16 %v1580_v54, %v1576_v29  ;;  %v1582_v50 = vmax.f32 %v6953_v42, 0.0  ;;  %v6958_v49 = vld [vmem:[#allocation68_spill] sm:$0xff]  ;;  %v6964_v51 = vld [vmem:[#allocation29_spill] sm:$0xff] }
 0x2fc   :  { %v1586_v17 = vmax.f32 %v6954_v23, 0.0  ;;  %v1584_v4 = vmax.f32 %v6955_v38, 0.0  ;;  %v5711_v16 = vpack.c.bf16 %v1577_v57, %v1573_v36  ;;  %v1588_v26 = vmax.f32 %v6956_v45, 0.0  ;;  %v6966_v36 = vld [vmem:[#allocation23_spill] sm:$0xff]  ;;  %v6969_v42 = vld [vmem:[#allocation33_spill] sm:$0xff] }
 0x2fd   :  { %v5713_v0 = vpack.c.bf16 %v1579_v48, %v1575_v41  ;;  %v1581_v25 = vmax.f32 %v6957_v15, 0.0  ;;  %v1585_v11 = vmax.f32 %v6958_v49, 0.0  ;;  %v1583_v27 = vmax.f32 %v6959_v24, 0.0  ;;  %v6967_v57 = vld [vmem:[#allocation19_spill] sm:$0xff]  ;;  %v6970_v23 = vld [vmem:[#allocation41_spill] sm:$0xff] }
 0x2fe   :  { %v5717_v20 = vpack.c.bf16 %v1586_v17, %v1582_v50  ;;  %v1587_v34 = vmax.f32 %v6960_v13, 0.0  ;;  %v5722_v14 = vpack.c.bf16 %v1588_v26, %v1584_v4  ;;  %v1590_v60 = vmax.f32 %v6961_v44, 0.0  ;;  %v6968_v41 = vld [vmem:[#allocation27_spill] sm:$0xff]  ;;  %v6971_v38 = vld [vmem:[#allocation37_spill] sm:$0xff] }
 0x2ff   :  { %v1594_v7 = vmax.f32 %v6962_v39, 0.0  ;;  %v1592_v31 = vmax.f32 %v6963_v56, 0.0  ;;  %v5727_v37 = vpack.c.bf16 %v1585_v11, %v1581_v25  ;;  %v1596_v29 = vmax.f32 %v6964_v51, 0.0  ;;  %v6972_v15 = vld [vmem:[#allocation45_spill] sm:$0xff]  ;;  %v6973_v49 = vld [vmem:[#allocation31_spill] sm:$0xff] }
 0x300   :  { %v5729_v53 = vpack.c.bf16 %v1587_v34, %v1583_v27  ;;  %v1589_v54 = vmax.f32 %v6965_v32, 0.0  ;;  %v1593_v8 = vmax.f32 %v6966_v36, 0.0  ;;  %v1591_v21 = vmax.f32 %v6967_v57, 0.0  ;;  %v6974_v27 = vld [vmem:[#allocation39_spill] sm:$0xff]  ;;  %v6977_v39 = vld [vmem:[#allocation49_spill] sm:$0xff] }
 0x301   :  { %v5733_v30 = vpack.c.bf16 %v1594_v7, %v1590_v60  ;;  %v1595_v63 = vmax.f32 %v6968_v41, 0.0  ;;  %v5738_v48 = vpack.c.bf16 %v1596_v29, %v1592_v31  ;;  %v1598_v50 = vmax.f32 %v6969_v42, 0.0  ;;  %v6975_v34 = vld [vmem:[#allocation35_spill] sm:$0xff]  ;;  %v6978_v56 = vld [vmem:[#allocation53_spill] sm:$0xff] }
 0x302   :  { %v1602_v17 = vmax.f32 %v6970_v23, 0.0  ;;  %v1600_v4 = vmax.f32 %v6971_v38, 0.0  ;;  %2022 = vmatmul.mubr.bf16.gmra.mrb[60].mxu0 %v5647_v52  ;;  %2183 = vmatmul.mubr.bf16.gmra.mrb[92].mxu1 %v5649_v3  ;;  %v5745_v45 = vpack.c.bf16 %v1593_v8, %v1589_v54  ;;  %v1604_v25 = vmax.f32 %v6972_v15, 0.0  ;;  %v6976_v44 = vld [vmem:[#allocation43_spill] sm:$0xff]  ;;  %v6986_v15 = vld [vmem:[#allocation57_spill] sm:$0xff] }
 0x303   :  { %v5747_v26 = vpack.c.bf16 %v1595_v63, %v1591_v21  ;;  %v1597_v11 = vmax.f32 %v6973_v49, 0.0  ;;  %2029 = vmatprep.mubr.bf16.mxu0 %v5653_v28  ;;  %2190 = vmatprep.mubr.bf16.mxu1 %v5658_v40  ;;  %v1601_v13 = vmax.f32 %v6974_v27, 0.0  ;;  %v1599_v52 = vmax.f32 %v6975_v34, 0.0  ;;  %v6979_v51 = vld [vmem:[#allocation75_spill] sm:$0xff]  ;;  %v6980_v40 = vld [vmem:[#allocation77_spill] sm:$0xff]  ;;  %v6982_v21 = vld [vmem:[#allocation52_spill] sm:$0xff] }
 0x304   :  { %v5753_v24 = vpack.c.bf16 %v1602_v17, %v1598_v50  ;;  %v1603_v3 = vmax.f32 %v6976_v44, 0.0  ;;  %v5758_v60 = vpack.c.bf16 %v1604_v25, %v1600_v4  ;;  %v1606_v7 = vmax.f32 %v6977_v39, 0.0  ;;  %v6981_v36 = vld [vmem:[#allocation47_spill] sm:$0xff]  ;;  %v6984_v50 = vld [vmem:[#allocation76_spill] sm:$0xff]  ;;  %v6988_v34 = vld [vmem:[#allocation81_spill] sm:$0xff] }
 0x305   :  { %v1610_v31 = vmax.f32 %v6978_v56, 0.0  ;;  %v1608_v29 = vmax.f32 %v6979_v51, 0.0  ;;  %v5763_v32 = vpack.c.bf16 %v1601_v13, %v1597_v11  ;;  %v1612_v54 = vmax.f32 %v6980_v40, 0.0  ;;  %v6983_v63 = vld [vmem:[#allocation51_spill] sm:$0xff]  ;;  %v6989_v44 = vld [vmem:[#allocation54_spill] sm:$0xff] }
 0x306   :  { %v5765_v28 = vpack.c.bf16 %v1603_v3, %v1599_v52  ;;  %v1605_v8 = vmax.f32 %v6981_v36, 0.0  ;;  %v1609_v41 = vmax.f32 %v6982_v21, 0.0  ;;  %v1607_v42 = vmax.f32 %v6983_v63, 0.0  ;;  %v6985_v38 = vld [vmem:[#allocation55_spill] sm:$0xff] }
 0x307   :  { %v5769_v57 = vpack.c.bf16 %v1610_v31, %v1606_v7  ;;  %v1611_v23 = vmax.f32 %v6984_v50, 0.0  ;;  %v5774_v17 = vpack.c.bf16 %v1612_v54, %v1608_v29  ;;  %v1614_v4 = vmax.f32 %v6985_v38, 0.0  ;;  %v6987_v49 = vld [vmem:[#allocation79_spill] sm:$0xff]  ;;  %v6990_v7 = vld [vmem:[#allocation56_spill] sm:$0xff]  ;;  %v6991_v31 = vld [vmem:[#allocation78_spill] sm:$0xff] }
 0x308   :  { %v1618_v25 = vmax.f32 %v6986_v15, 0.0  ;;  %v1616_v11 = vmax.f32 %v6987_v49, 0.0  ;;  %v5779_v27 = vpack.c.bf16 %v1609_v41, %v1605_v8  ;;  %v1620_v52 = vmax.f32 %v6988_v34, 0.0  ;;  %v6992_v29 = vld [vmem:[#allocation80_spill] sm:$0xff]  ;;  %v6993_v36 = vld [vmem:[#allocation59_spill] sm:$0xff]  ;;  %v6996_v38 = vld [vmem:[#allocation85_spill] sm:$0xff] }
 0x309   :  { %v5781_v13 = vpack.c.bf16 %v1611_v23, %v1607_v42  ;;  %v1613_v3 = vmax.f32 %v6989_v44, 0.0  ;;  %v1617_v56 = vmax.f32 %v6990_v7, 0.0  ;;  %v1615_v51 = vmax.f32 %v6991_v31, 0.0  ;;  %v6994_v21 = vld [vmem:[#allocation63_spill] sm:$0xff]  ;;  %v6997_v15 = vld [vmem:[#allocation58_spill] sm:$0xff] }
 0x30a   :  { %v5785_v39 = vpack.c.bf16 %v1618_v25, %v1614_v4  ;;  %v1619_v40 = vmax.f32 %v6992_v29, 0.0  ;;  %2030 = vmatmul.mubr.bf16.gmra.mrb[64].mxu0 %v5663_v55  ;;  %2191 = vmatmul.mubr.bf16.gmra.mrb[96].mxu1 %v5665_v58  ;;  %v5792_v54 = vpack.c.bf16 %v1620_v52, %v1616_v11  ;;  %v1622_v8 = vmax.f32 %v6993_v36, 0.0  ;;  %v6995_v63 = vld [vmem:[#allocation83_spill] sm:$0xff]  ;;  %v6998_v58 = vld [vmem:[#allocation61_spill] sm:$0xff]  ;;  %v6999_v11 = vld [vmem:[#allocation82_spill] sm:$0xff] }
 0x30b   :  { %v1626_v41 = vmax.f32 %v6994_v21, 0.0  ;;  %v1624_v42 = vmax.f32 %v6995_v63, 0.0  ;;  %2037 = vmatprep.mubr.bf16.mxu0 %v5669_v33  ;;  %2198 = vmatprep.mubr.bf16.mxu1 %v5674_v22  ;;  %v1693_v50 = vpack.c.bf16 %v1617_v56, %v1613_v3  ;;  %v1628_v4 = vmax.f32 %v6996_v38, 0.0  ;;  %v7000_v52 = vld [vmem:[#allocation84_spill] sm:$0xff]  ;;  %v7001_v31 = vld [vmem:[#allocation67_spill] sm:$0xff] }
 0x30c   :  { %v1695_v23 = vpack.c.bf16 %v1619_v40, %v1615_v51  ;;  %v1621_v55 = vmax.f32 %v6997_v15, 0.0  ;;  %v1625_v49 = vmax.f32 %v6998_v58, 0.0  ;;  %v1623_v34 = vmax.f32 %v6999_v11, 0.0  ;;  %v7002_v40 = vld [vmem:[#allocation65_spill] sm:$0xff]  ;;  %v7004_v58 = vld [vmem:[#allocation64_spill] sm:$0xff] }
 0x30d   :  { %v1698_v25 = vpack.c.bf16 %v1626_v41, %v1622_v8  ;;  %v1627_v44 = vmax.f32 %v7000_v52, 0.0  ;;  %v1700_v7 = vpack.c.bf16 %v1628_v4, %v1624_v42  ;;  %v1630_v29 = vmax.f32 %v7001_v31, 0.0  ;;  %v7003_v41 = vld [vmem:[#allocation86_spill] sm:$0xff]  ;;  %v7007_v52 = vld [vmem:[#allocation69_spill] sm:$0xff] }
 0x30e   :  { %v1634_v33 = vmax.f32 %v5574_v35, 0.0  ;;  %v1632_v22 = vmax.f32 %v5566_v5, 0.0  ;;  %v1697_v3 = vpack.c.bf16 %v1625_v49, %v1621_v55  ;;  %v1636_v51 = vmax.f32 %v5582_v12, 0.0  ;;  %v7005_v49 = vld [vmem:[#allocation87_spill] sm:$0xff] }
 0x30f   :  { %v1699_v56 = vpack.c.bf16 %v1627_v44, %v1623_v34  ;;  %v1629_v36 = vmax.f32 %v7002_v40, 0.0  ;;  %v1633_v21 = vmax.f32 %v5570_v10, 0.0  ;;  %v1631_v63 = vmax.f32 %v7003_v41, 0.0  ;;  %v7006_v34 = vld [vmem:[#allocation71_spill] sm:$0xff] }
 0x310   :  { %v1702_v8 = vpack.c.bf16 %v1634_v33, %v1630_v29  ;;  %v1635_v38 = vmax.f32 %v5578_v6, 0.0  ;;  %v1704_v42 = vpack.c.bf16 %v1636_v51, %v1632_v22  ;;  %v1638_v4 = vmax.f32 %v5590_v59, 0.0  ;;  %v7008_v59 = vld [vmem:[#allocation88_spill] sm:$0xff] }
 0x311   :  { %v1642_v35 = vmax.f32 %v5606_v18, 0.0  ;;  %v1640_v5 = vmax.f32 %v5598_v9, 0.0  ;;  %v1701_v15 = vpack.c.bf16 %v1633_v21, %v1629_v36  ;;  %v1644_v12 = vmax.f32 %v7004_v58, 0.0 }
 0x312   :  { %v1703_v55 = vpack.c.bf16 %v1635_v38, %v1631_v63  ;;  %v1637_v11 = vmax.f32 %v7005_v49, 0.0  ;;  %2038 = vmatmul.mubr.bf16.gmra.mrb[68].mxu0 %v5679_v2  ;;  %2199 = vmatmul.mubr.bf16.gmra.mrb[100].mxu1 %v5681_v43  ;;  %v1641_v6 = vmax.f32 %v7006_v34, 0.0  ;;  %v1639_v44 = vmax.f32 %v7007_v52, 0.0  ;;  %v3558_v2 = vld [vmem:[%s6410_s7] sm:$0xff]   ;;  %v3559_v43 = vld [vmem:[%s6410_s7 + $0x8] sm:$0xff]  }
 0x313   :  { %v1706_v10 = vpack.c.bf16 %v1642_v35, %v1638_v4  ;;  %v1643_v31 = vmax.f32 %v7008_v59, 0.0  ;;  %2045 = vmatprep.mubr.bf16.mxu0 %v5685_v62  ;;  %2206 = vmatprep.mubr.bf16.mxu1 %v5690_v19  ;;  %v1708_v9 = vpack.c.bf16 %v1644_v12, %v1640_v5  ;;  %v3560_v62 = vld [vmem:[%s6410_s7 + $0x10] sm:$0xff]   ;;  %v3561_v19 = vld [vmem:[%s6410_s7 + $0x18] sm:$0xff]  }
 0x314   :  { %v1705_v18 = vpack.c.bf16 %v1641_v6, %v1637_v11  ;;  %3433 = vmatprep.subr.bf16.mxu0 %v3558_v2 }
 0x315   :  { %v1707_v29 = vpack.c.bf16 %v1643_v31, %v1639_v44  ;;  %3434 = vmatpush3.bf16.msra.mxu0 %v3558_v2 }
 0x316   :  { %3435 = vmatprep.subr.bf16.mxu0 %v3559_v43 }
 0x319   :  { %3436 = vmatpush3.bf16.msra.mxu0 %v3559_v43 }
 0x31a   :  { %2046 = vmatmul.mubr.bf16.gmra.mrb[72].mxu0 %v5695_v1  ;;  %2207 = vmatmul.mubr.bf16.gmra.mrb[104].mxu1 %v5697_v46  ;;  %v3562_v1 = vld [vmem:[%s6410_s7 + $0x20] sm:$0xff]  }
 0x31b   :  { %2053 = vmatprep.mubr.bf16.mxu0 %v5701_v61  ;;  %2214 = vmatprep.mubr.bf16.mxu1 %v5706_v47 }
 0x31c   :  { %3437 = vmatprep.subr.bf16.mxu0 %v3560_v62 }
 0x31d   :  { %3438 = vmatpush3.bf16.msra.mxu0 %v3560_v62 }
 0x31e   :  { %3439 = vmatprep.subr.bf16.mxu0 %v3561_v19 }
 0x321   :  { %3440 = vmatpush3.bf16.msra.mxu0 %v3561_v19 }
 0x322   :  { %2054 = vmatmul.mubr.bf16.gmra.mrb[76].mxu0 %v5711_v16  ;;  %2215 = vmatmul.mubr.bf16.gmra.mrb[108].mxu1 %v5713_v0 }
 0x323   :  { %2061 = vmatprep.mubr.bf16.mxu0 %v5717_v20  ;;  %2222 = vmatprep.mubr.bf16.mxu1 %v5722_v14 }
 0x324   :  { %3441 = vmatprep.subr.bf16.mxu0 %v3562_v1 }
 0x325   :  { %3442 = vmatpush3.bf16.msra.mxu0 %v3562_v1 }
 0x32a   :  { %2062 = vmatmul.mubr.bf16.gmra.mrb[80].mxu0 %v5727_v37  ;;  %2223 = vmatmul.mubr.bf16.gmra.mrb[112].mxu1 %v5729_v53 }
 0x32b   :  { %2069 = vmatprep.mubr.bf16.mxu0 %v5733_v30  ;;  %2230 = vmatprep.mubr.bf16.mxu1 %v5738_v48 }
 0x332   :  { %2070 = vmatmul.mubr.bf16.gmra.mrb[84].mxu0 %v5745_v45  ;;  %2231 = vmatmul.mubr.bf16.gmra.mrb[116].mxu1 %v5747_v26 }
 0x333   :  { %2077 = vmatprep.mubr.bf16.mxu0 %v5753_v24  ;;  %2238 = vmatprep.mubr.bf16.mxu1 %v5758_v60 }
 0x33a   :  { %2078 = vmatmul.mubr.bf16.gmra.mrb[88].mxu0 %v5763_v32  ;;  %2239 = vmatmul.mubr.bf16.gmra.mrb[120].mxu1 %v5765_v28 }
 0x33b   :  { %2085 = vmatprep.mubr.bf16.mxu0 %v5769_v57  ;;  %2246 = vmatprep.mubr.bf16.mxu1 %v5774_v17 }
 0x342   :  { %2086 = vmatmul.mubr.bf16.gmra.mrb[92].mxu0 %v5779_v27  ;;  %2247 = vmatmul.mubr.bf16.gmra.mrb[124].mxu1 %v5781_v13 }
 0x343   :  { %2093 = vmatprep.mubr.bf16.mxu0 %v5785_v39  ;;  %2254 = vmatprep.mubr.bf16.mxu1 %v5792_v54 }
 0x34a   :  { %2094 = vmatmul.mubr.bf16.gmra.mrb[96].mxu0 %v1693_v50  ;;  %2255 = vmatmul.mubr.bf16.gmra.mrb[128].mxu1 %v1695_v23 }
 0x34b   :  { %2101 = vmatprep.mubr.bf16.mxu0 %v1698_v25  ;;  %2262 = vmatprep.mubr.bf16.mxu1 %v1700_v7 }
 0x352   :  { %2102 = vmatmul.mubr.bf16.gmra.mrb[100].mxu0 %v1697_v3  ;;  %2263 = vmatmul.mubr.bf16.gmra.mrb[132].mxu1 %v1699_v56 }
 0x353   :  { %2109 = vmatprep.mubr.bf16.mxu0 %v1702_v8  ;;  %2270 = vmatprep.mubr.bf16.mxu1 %v1704_v42 }
 0x35a   :  { %2110 = vmatmul.mubr.bf16.gmra.mrb[104].mxu0 %v1701_v15  ;;  %2271 = vmatmul.mubr.bf16.gmra.mrb[136].mxu1 %v1703_v55 }
 0x35b   :  { %2117 = vmatprep.mubr.bf16.mxu0 %v1706_v10  ;;  %2278 = vmatprep.mubr.bf16.mxu1 %v1708_v9 }
 0x362   :  { %2118 = vmatmul.mubr.bf16.gmra.mrb[108].mxu0 %v1705_v18  ;;  %2279 = vmatmul.mubr.bf16.gmra.mrb[140].mxu1 %v1707_v29 }
 0x3bd   :  { %v3201_v46 = vpop.f32.mrb[48].mxu0  ;;  %v3313_v61 = vpop.f32.mrb[80].mxu1 }
 0x3be   :  { %v3202_v47 = vpop.f32.mrb[49].mxu0  ;;  %v3314_v16 = vpop.f32.mrb[81].mxu1 }
 0x3bf   :  { %v3203_v0 = vadd.f32 %v3202_v47, %v3201_v46  ;;  %v3315_v20 = vadd.f32 %v3314_v16, %v3313_v61  ;;  %v3204_v14 = vpop.f32.mrb[50].mxu0  ;;  %v3316_v37 = vpop.f32.mrb[82].mxu1 }
 0x3c0   :  { %v3205_v53 = vpop.f32.mrb[51].mxu0  ;;  %v3317_v30 = vpop.f32.mrb[83].mxu1 }
 0x3c1   :  { %v5863_v48 = vadd.f32 %v3315_v20, %v3203_v0  ;;  %v3206_v45 = vadd.f32 %v3205_v53, %v3204_v14  ;;  %v3318_v26 = vadd.f32 %v3317_v30, %v3316_v37 }
 0x3c3   :  { %v5865_v24 = vadd.f32 %v3318_v26, %v3206_v45  ;;  %v2327_v61 = vmul.f32 %v5863_v48, %v5863_v48 }
 0x3c5   :  { %v3207_v60 = vpop.f32.mrb[52].mxu0  ;;  %v3319_v32 = vpop.f32.mrb[84].mxu1  ;;  %v2328_v29 = vmul.f32 %v5865_v24, %v5865_v24  ;;  %v2289_v20 = vadd.f32 %v5865_v24, %v5863_v48 }
 0x3c6   :  { %v3208_v28 = vpop.f32.mrb[53].mxu0  ;;  %v3320_v57 = vpop.f32.mrb[85].mxu1 }
 0x3c7   :  { %v3209_v17 = vadd.f32 %v3208_v28, %v3207_v60  ;;  %v3321_v27 = vadd.f32 %v3320_v57, %v3319_v32  ;;  %v3210_v13 = vpop.f32.mrb[54].mxu0  ;;  %v3322_v39 = vpop.f32.mrb[86].mxu1  ;;  %v2359_v30 = vadd.f32 %v2328_v29, %v2327_v61 }
 0x3c8   :  { %v3211_v54 = vpop.f32.mrb[55].mxu0  ;;  %v3323_v50 = vpop.f32.mrb[87].mxu1 }
 0x3c9   :  { %v5867_v23 = vadd.f32 %v3321_v27, %v3209_v17  ;;  %v3212_v25 = vadd.f32 %v3211_v54, %v3210_v13  ;;  %v3324_v7 = vadd.f32 %v3323_v50, %v3322_v39 }
 0x3cb   :  { %v5869_v33 = vadd.f32 %v3324_v7, %v3212_v25  ;;  %v2329_v47 = vmul.f32 %v5867_v23, %v5867_v23  ;;  %v2290_v45 = vadd.f32 %v2289_v20, %v5867_v23 }
 0x3cd   :  { %v3213_v22 = vpop.f32.mrb[56].mxu0  ;;  %v3325_v3 = vpop.f32.mrb[88].mxu1  ;;  %v2360_v60 = vadd.f32 %v2359_v30, %v2329_v47  ;;  %v2330_v32 = vmul.f32 %v5869_v33, %v5869_v33  ;;  %v2291_v39 = vadd.f32 %v2290_v45, %v5869_v33 }
 0x3ce   :  { %v3214_v56 = vpop.f32.mrb[57].mxu0  ;;  %v3326_v51 = vpop.f32.mrb[89].mxu1 }
 0x3cf   :  { %v3215_v40 = vadd.f32 %v3214_v56, %v3213_v22  ;;  %v3327_v36 = vadd.f32 %v3326_v51, %v3325_v3  ;;  %v3216_v8 = vpop.f32.mrb[58].mxu0  ;;  %v3328_v21 = vpop.f32.mrb[90].mxu1  ;;  %v2361_v22 = vadd.f32 %v2360_v60, %v2330_v32 }
 0x3d0   :  { %v3217_v41 = vpop.f32.mrb[59].mxu0  ;;  %v3329_v63 = vpop.f32.mrb[91].mxu1 }
 0x3d1   :  { %v5871_v38 = vadd.f32 %v3327_v36, %v3215_v40  ;;  %v3218_v42 = vadd.f32 %v3217_v41, %v3216_v8  ;;  %v3330_v4 = vadd.f32 %v3329_v63, %v3328_v21 }
 0x3d3   :  { %v5873_v35 = vadd.f32 %v3330_v4, %v3218_v42  ;;  %v2331_v17 = vmul.f32 %v5871_v38, %v5871_v38  ;;  %v2292_v51 = vadd.f32 %v2291_v39, %v5871_v38 }
 0x3d5   :  { %v3219_v5 = vpop.f32.mrb[60].mxu0  ;;  %v3331_v15 = vpop.f32.mrb[92].mxu1  ;;  %v2362_v21 = vadd.f32 %v2361_v22, %v2331_v17  ;;  %v2332_v41 = vmul.f32 %v5873_v35, %v5873_v35  ;;  %v2293_v4 = vadd.f32 %v2292_v51, %v5873_v35 }
 0x3d6   :  { %v3220_v55 = vpop.f32.mrb[61].mxu0  ;;  %v3332_v58 = vpop.f32.mrb[93].mxu1 }
 0x3d7   :  { %v3221_v12 = vadd.f32 %v3220_v55, %v3219_v5  ;;  %v3333_v49 = vadd.f32 %v3332_v58, %v3331_v15  ;;  %v3222_v11 = vpop.f32.mrb[62].mxu0  ;;  %v3334_v10 = vpop.f32.mrb[94].mxu1  ;;  %v2363_v55 = vadd.f32 %v2362_v21, %v2332_v41 }
 0x3d8   :  { %v3223_v34 = vpop.f32.mrb[63].mxu0  ;;  %v3335_v6 = vpop.f32.mrb[95].mxu1 }
 0x3d9   :  { %v5875_v52 = vadd.f32 %v3333_v49, %v3221_v12  ;;  %v3224_v44 = vadd.f32 %v3223_v34, %v3222_v11  ;;  %v3336_v59 = vadd.f32 %v3335_v6, %v3334_v10  ;;  %v3563_v49 = vld [vmem:[%s6410_s7 + $0x28] sm:$0xff]   ;;  %v3564_v11 = vld [vmem:[%s6410_s7 + $0x30] sm:$0xff]  }
 0x3da   :  { %3443 = vmatprep.subr.bf16.mxu0 %v3563_v49 }
 0x3db   :  { %v5877_v31 = vadd.f32 %v3336_v59, %v3224_v44  ;;  %v2333_v42 = vmul.f32 %v5875_v52, %v5875_v52  ;;  %v2294_v10 = vadd.f32 %v2293_v4, %v5875_v52  ;;  %3444 = vmatpush3.bf16.msra.mxu0 %v3563_v49 }
 0x3dc   :  { %3445 = vmatprep.subr.bf16.mxu0 %v3564_v11 }
 0x3dd   :  { %v3225_v9 = vpop.f32.mrb[64].mxu0  ;;  %v3337_v18 = vpop.f32.mrb[96].mxu1  ;;  %v2295_v61 = vadd.f32 %v2294_v10, %v5877_v31 }
 0x3de   :  { %v3226_v2 = vpop.f32.mrb[65].mxu0  ;;  %v3338_v43 = vpop.f32.mrb[97].mxu1 }
 0x3df   :  { %v3227_v62 = vadd.f32 %v3226_v2, %v3225_v9  ;;  %v3339_v19 = vadd.f32 %v3338_v43, %v3337_v18  ;;  %v3228_v1 = vpop.f32.mrb[66].mxu0  ;;  %v3340_v46 = vpop.f32.mrb[98].mxu1  ;;  %v2364_v9 = vadd.f32 %v2363_v55, %v2333_v42  ;;  %v2334_v18 = vmul.f32 %v5877_v31, %v5877_v31  ;;  %3446 = vmatpush3.bf16.msra.mxu0 %v3564_v11 }
 0x3e0   :  { %v3229_v16 = vpop.f32.mrb[67].mxu0  ;;  %v3341_v0 = vpop.f32.mrb[99].mxu1 }
 0x3e1   :  { %v5887_v14 = vadd.f32 %v3339_v19, %v3227_v62  ;;  %v3230_v37 = vadd.f32 %v3229_v16, %v3228_v1  ;;  %v3342_v53 = vadd.f32 %v3341_v0, %v3340_v46  ;;  %v3565_v46 = vld [vmem:[%s6410_s7 + $0x38] sm:$0xff]   ;;  %v2365_v16 = vadd.f32 %v2364_v9, %v2334_v18 }
 0x3e2   :  { %3447 = vmatprep.subr.bf16.mxu0 %v3565_v46 }
 0x3e3   :  { %v5890_v26 = vadd.f32 %v3342_v53, %v3230_v37  ;;  %v2335_v1 = vmul.f32 %v5887_v14, %v5887_v14  ;;  %v2296_v0 = vadd.f32 %v2295_v61, %v5887_v14  ;;  %3448 = vmatpush3.bf16.msra.mxu0 %v3565_v46 }
 0x3e5   :  { %v3231_v28 = vpop.f32.mrb[68].mxu0  ;;  %v3343_v57 = vpop.f32.mrb[100].mxu1  ;;  %v2366_v53 = vadd.f32 %v2365_v16, %v2335_v1  ;;  %v2336_v30 = vmul.f32 %v5890_v26, %v5890_v26 }
 0x3e6   :  { %v3232_v27 = vpop.f32.mrb[69].mxu0  ;;  %v3344_v13 = vpop.f32.mrb[101].mxu1 }
 0x3e7   :  { %v3233_v54 = vadd.f32 %v3232_v27, %v3231_v28  ;;  %v3345_v50 = vadd.f32 %v3344_v13, %v3343_v57  ;;  %v3234_v25 = vpop.f32.mrb[70].mxu0  ;;  %v3346_v7 = vpop.f32.mrb[102].mxu1  ;;  %v2367_v22 = vadd.f32 %v2366_v53, %v2336_v30 }
 0x3e8   :  { %v3235_v3 = vpop.f32.mrb[71].mxu0  ;;  %v3347_v56 = vpop.f32.mrb[103].mxu1 }
 0x3e9   :  { %v5898_v40 = vadd.f32 %v3345_v50, %v3233_v54  ;;  %v3236_v36 = vadd.f32 %v3235_v3, %v3234_v25  ;;  %v3348_v8 = vadd.f32 %v3347_v56, %v3346_v7  ;;  %v2297_v54 = vadd.f32 %v2296_v0, %v5890_v26 }
 0x3eb   :  { %v5902_v63 = vadd.f32 %v3348_v8, %v3236_v36  ;;  %v2337_v27 = vmul.f32 %v5898_v40, %v5898_v40  ;;  %v2298_v3 = vadd.f32 %v2297_v54, %v5898_v40 }
 0x3ed   :  { %v3237_v5 = vpop.f32.mrb[72].mxu0  ;;  %v3349_v15 = vpop.f32.mrb[104].mxu1  ;;  %v2368_v51 = vadd.f32 %v2367_v22, %v2337_v27  ;;  %v2338_v36 = vmul.f32 %v5902_v63, %v5902_v63 }
 0x3ee   :  { %v3238_v58 = vpop.f32.mrb[73].mxu0  ;;  %v3350_v12 = vpop.f32.mrb[105].mxu1 }
 0x3ef   :  { %v3239_v34 = vadd.f32 %v3238_v58, %v3237_v5  ;;  %v3351_v6 = vadd.f32 %v3350_v12, %v3349_v15  ;;  %v3240_v44 = vpop.f32.mrb[74].mxu0  ;;  %v3352_v59 = vpop.f32.mrb[106].mxu1  ;;  %v2299_v5 = vadd.f32 %v2298_v3, %v5902_v63  ;;  %v2369_v49 = vadd.f32 %v2368_v51, %v2338_v36 }
 0x3f0   :  { %v3241_v29 = vpop.f32.mrb[75].mxu0  ;;  %v3353_v2 = vpop.f32.mrb[107].mxu1 }
 0x3f1   :  { %v5916_v43 = vadd.f32 %v3351_v6, %v3239_v34  ;;  %v3242_v62 = vadd.f32 %v3241_v29, %v3240_v44  ;;  %v3354_v19 = vadd.f32 %v3353_v2, %v3352_v59 }
 0x3f3   :  { %v5924_v47 = vadd.f32 %v3354_v19, %v3242_v62  ;;  %v2339_v41 = vmul.f32 %v5916_v43, %v5916_v43  ;;  %v2300_v34 = vadd.f32 %v2299_v5, %v5916_v43 }
 0x3f5   :  { %v3243_v20 = vpop.f32.mrb[76].mxu0  ;;  %v3355_v37 = vpop.f32.mrb[108].mxu1  ;;  %v2370_v9 = vadd.f32 %v2369_v49, %v2339_v41  ;;  %v2340_v18 = vmul.f32 %v5924_v47, %v5924_v47  ;;  %v2301_v62 = vadd.f32 %v2300_v34, %v5924_v47 }
 0x3f6   :  { %v3244_v45 = vpop.f32.mrb[77].mxu0  ;;  %v3356_v60 = vpop.f32.mrb[109].mxu1 }
 0x3f7   :  { %v3245_v32 = vadd.f32 %v3244_v45, %v3243_v20  ;;  %v3357_v28 = vadd.f32 %v3356_v60, %v3355_v37  ;;  %v3246_v57 = vpop.f32.mrb[78].mxu0  ;;  %v3358_v17 = vpop.f32.mrb[110].mxu1  ;;  %v2371_v46 = vadd.f32 %v2370_v9, %v2340_v18 }
 0x3f8   :  { %v3247_v13 = vpop.f32.mrb[79].mxu0  ;;  %v3359_v39 = vpop.f32.mrb[111].mxu1 }
 0x3f9   :  { %v5932_v50 = vadd.f32 %v3357_v28, %v3245_v32  ;;  %v3248_v25 = vadd.f32 %v3247_v13, %v3246_v57  ;;  %v3360_v7 = vadd.f32 %v3359_v39, %v3358_v17 }
 0x3fb   :  { %v5935_v56 = vadd.f32 %v3360_v7, %v3248_v25  ;;  %v2341_v2 = vmul.f32 %v5932_v50, %v5932_v50  ;;  %v2302_v0 = vadd.f32 %v2301_v62, %v5932_v50 }
 0x3fd   :  { %v3249_v8 = vpop.f32.mrb[80].mxu0  ;;  %v3361_v21 = vpop.f32.mrb[112].mxu1  ;;  %v2372_v45 = vadd.f32 %v2371_v46, %v2341_v2  ;;  %v2342_v60 = vmul.f32 %v5935_v56, %v5935_v56  ;;  %v2303_v39 = vadd.f32 %v2302_v0, %v5935_v56 }
 0x3fe   :  { %v3250_v42 = vpop.f32.mrb[81].mxu0  ;;  %v3362_v4 = vpop.f32.mrb[113].mxu1 }
 0x3ff   :  { %v3251_v15 = vadd.f32 %v3250_v42, %v3249_v8  ;;  %v3363_v55 = vadd.f32 %v3362_v4, %v3361_v21  ;;  %v3252_v58 = vpop.f32.mrb[82].mxu0  ;;  %v3364_v12 = vpop.f32.mrb[114].mxu1  ;;  %v2373_v25 = vadd.f32 %v2372_v45, %v2342_v60 }
 0x400   :  { %v3253_v11 = vpop.f32.mrb[83].mxu0  ;;  %v3365_v10 = vpop.f32.mrb[115].mxu1 }
 0x401   :  { %v5943_v6 = vadd.f32 %v3363_v55, %v3251_v15  ;;  %v3254_v44 = vadd.f32 %v3253_v11, %v3252_v58  ;;  %v3366_v59 = vadd.f32 %v3365_v10, %v3364_v12 }
 0x403   :  { %v5947_v29 = vadd.f32 %v3366_v59, %v3254_v44  ;;  %v2343_v13 = vmul.f32 %v5943_v6, %v5943_v6  ;;  %v2304_v7 = vadd.f32 %v2303_v39, %v5943_v6 }
 0x405   :  { %v3255_v19 = vpop.f32.mrb[84].mxu0  ;;  %v3367_v1 = vpop.f32.mrb[116].mxu1  ;;  %v2374_v51 = vadd.f32 %v2373_v25, %v2343_v13  ;;  %v2344_v36 = vmul.f32 %v5947_v29, %v5947_v29  ;;  %v2305_v12 = vadd.f32 %v2304_v7, %v5947_v29 }
 0x406   :  { %v3256_v61 = vpop.f32.mrb[85].mxu0  ;;  %v3368_v16 = vpop.f32.mrb[117].mxu1 }
 0x407   :  { %v3257_v20 = vadd.f32 %v3256_v61, %v3255_v19  ;;  %v3369_v37 = vadd.f32 %v3368_v16, %v3367_v1  ;;  %v3258_v53 = vpop.f32.mrb[86].mxu0  ;;  %v3370_v30 = vpop.f32.mrb[118].mxu1  ;;  %v2375_v34 = vadd.f32 %v2374_v51, %v2344_v36 }
 0x408   :  { %v3259_v32 = vpop.f32.mrb[87].mxu0  ;;  %v3371_v28 = vpop.f32.mrb[119].mxu1 }
 0x409   :  { %v5955_v57 = vadd.f32 %v3369_v37, %v3257_v20  ;;  %v3260_v17 = vadd.f32 %v3259_v32, %v3258_v53  ;;  %v3372_v27 = vadd.f32 %v3371_v28, %v3370_v30 }
 0x40b   :  { %v5960_v54 = vadd.f32 %v3372_v27, %v3260_v17  ;;  %v2345_v15 = vmul.f32 %v5955_v57, %v5955_v57  ;;  %v2306_v44 = vadd.f32 %v2305_v12, %v5955_v57 }
 0x40d   :  { %v3261_v22 = vpop.f32.mrb[88].mxu0  ;;  %v3373_v3 = vpop.f32.mrb[120].mxu1  ;;  %v2376_v9 = vadd.f32 %v2375_v34, %v2345_v15  ;;  %v2346_v18 = vmul.f32 %v5960_v54, %v5960_v54  ;;  %v2307_v61 = vadd.f32 %v2306_v44, %v5960_v54 }
 0x40e   :  { %v3262_v8 = vpop.f32.mrb[89].mxu0  ;;  %v3374_v21 = vpop.f32.mrb[121].mxu1 }
 0x40f   :  { %v3263_v41 = vadd.f32 %v3262_v8, %v3261_v22  ;;  %v3375_v42 = vadd.f32 %v3374_v21, %v3373_v3  ;;  %v3264_v4 = vpop.f32.mrb[90].mxu0  ;;  %v3376_v5 = vpop.f32.mrb[122].mxu1  ;;  %v2377_v53 = vadd.f32 %v2376_v9, %v2346_v18 }
 0x410   :  { %v3265_v55 = vpop.f32.mrb[91].mxu0  ;;  %v3377_v58 = vpop.f32.mrb[123].mxu1 }
 0x411   :  { %v5968_v49 = vadd.f32 %v3375_v42, %v3263_v41  ;;  %v3266_v11 = vadd.f32 %v3265_v55, %v3264_v4  ;;  %v3378_v10 = vadd.f32 %v3377_v58, %v3376_v5 }
 0x413   :  { %v5971_v59 = vadd.f32 %v3378_v10, %v3266_v11  ;;  %v2347_v19 = vmul.f32 %v5968_v49, %v5968_v49  ;;  %v2308_v60 = vadd.f32 %v2307_v61, %v5968_v49 }
 0x415   :  { %v3267_v2 = vpop.f32.mrb[92].mxu0  ;;  %v3379_v62 = vpop.f32.mrb[124].mxu1  ;;  %v2378_v27 = vadd.f32 %v2377_v53, %v2347_v19  ;;  %v2348_v13 = vmul.f32 %v5971_v59, %v5971_v59  ;;  %v2309_v7 = vadd.f32 %v2308_v60, %v5971_v59 }
 0x416   :  { %v3268_v1 = vpop.f32.mrb[93].mxu0  ;;  %v3380_v46 = vpop.f32.mrb[125].mxu1 }
 0x417   :  { %v3269_v16 = vadd.f32 %v3268_v1, %v3267_v2  ;;  %v3381_v0 = vadd.f32 %v3380_v46, %v3379_v62  ;;  %v3270_v20 = vpop.f32.mrb[94].mxu0  ;;  %v3382_v37 = vpop.f32.mrb[126].mxu1  ;;  %v2379_v51 = vadd.f32 %v2378_v27, %v2348_v13 }
 0x418   :  { %v3271_v30 = vpop.f32.mrb[95].mxu0  ;;  %v3383_v45 = vpop.f32.mrb[127].mxu1 }
 0x419   :  { %v5979_v32 = vadd.f32 %v3381_v0, %v3269_v16  ;;  %v3272_v28 = vadd.f32 %v3271_v30, %v3270_v20  ;;  %v3384_v17 = vadd.f32 %v3383_v45, %v3382_v37 }
 0x41b   :  { %v5983_v39 = vadd.f32 %v3384_v17, %v3272_v28  ;;  %v2349_v25 = vmul.f32 %v5979_v32, %v5979_v32  ;;  %v2310_v21 = vadd.f32 %v2309_v7, %v5979_v32 }
 0x41d   :  { %v3273_v22 = vpop.f32.mrb[96].mxu0  ;;  %v3385_v3 = vpop.f32.mrb[128].mxu1  ;;  %v2380_v15 = vadd.f32 %v2379_v51, %v2349_v25  ;;  %v2350_v12 = vmul.f32 %v5983_v39, %v5983_v39  ;;  %v2311_v44 = vadd.f32 %v2310_v21, %v5983_v39 }
 0x41e   :  { %v3274_v36 = vpop.f32.mrb[97].mxu0  ;;  %v3386_v8 = vpop.f32.mrb[129].mxu1 }
 0x41f   :  { %v3275_v41 = vadd.f32 %v3274_v36, %v3273_v22  ;;  %v3387_v42 = vadd.f32 %v3386_v8, %v3385_v3  ;;  %v3276_v4 = vpop.f32.mrb[98].mxu0  ;;  %v3388_v5 = vpop.f32.mrb[130].mxu1  ;;  %v2381_v2 = vadd.f32 %v2380_v15, %v2350_v12 }
 0x420   :  { %v3277_v55 = vpop.f32.mrb[99].mxu0  ;;  %v3389_v58 = vpop.f32.mrb[131].mxu1 }
 0x421   :  { %v5991_v11 = vadd.f32 %v3387_v42, %v3275_v41  ;;  %v3278_v10 = vadd.f32 %v3277_v55, %v3276_v4  ;;  %v3390_v34 = vadd.f32 %v3389_v58, %v3388_v5 }
 0x423   :  { %v2351_v9 = vmul.f32 %v5991_v11, %v5991_v11  ;;  %v5996_v18 = vadd.f32 %v3390_v34, %v3278_v10  ;;  %v2312_v62 = vadd.f32 %v2311_v44, %v5991_v11 }
 0x425   :  { %v3279_v19 = vpop.f32.mrb[100].mxu0  ;;  %v3391_v1 = vpop.f32.mrb[132].mxu1  ;;  %v2382_v16 = vadd.f32 %v2381_v2, %v2351_v9  ;;  %v2352_v0 = vmul.f32 %v5996_v18, %v5996_v18  ;;  %v2313_v28 = vadd.f32 %v2312_v62, %v5996_v18 }
 0x426   :  { %v3280_v46 = vpop.f32.mrb[101].mxu0  ;;  %v3392_v61 = vpop.f32.mrb[133].mxu1 }
 0x427   :  { %v3281_v20 = vadd.f32 %v3280_v46, %v3279_v19  ;;  %v3393_v37 = vadd.f32 %v3392_v61, %v3391_v1  ;;  %v3282_v53 = vpop.f32.mrb[102].mxu0  ;;  %v3394_v30 = vpop.f32.mrb[134].mxu1  ;;  %v2383_v25 = vadd.f32 %v2382_v16, %v2352_v0 }
 0x428   :  { %v3283_v45 = vpop.f32.mrb[103].mxu0  ;;  %v3395_v60 = vpop.f32.mrb[135].mxu1 }
 0x429   :  { %v6002_v17 = vadd.f32 %v3393_v37, %v3281_v20  ;;  %v3284_v27 = vadd.f32 %v3283_v45, %v3282_v53  ;;  %v3396_v13 = vadd.f32 %v3395_v60, %v3394_v30 }
 0x42b   :  { %v2314_v7 = vadd.f32 %v2313_v28, %v6002_v17  ;;  %v2353_v22 = vmul.f32 %v6002_v17, %v6002_v17  ;;  %v6007_v3 = vadd.f32 %v3396_v13, %v3284_v27 }
 0x42d   :  { %v2384_v51 = vadd.f32 %v2383_v25, %v2353_v22  ;;  %v2315_v36 = vadd.f32 %v2314_v7, %v6007_v3  ;;  %v2354_v8 = vmul.f32 %v6007_v3, %v6007_v3  ;;  %v3285_v21 = vpop.f32.mrb[104].mxu0  ;;  %v3397_v41 = vpop.f32.mrb[136].mxu1 }
 0x42e   :  { %v3286_v42 = vpop.f32.mrb[105].mxu0  ;;  %v3398_v4 = vpop.f32.mrb[137].mxu1 }
 0x42f   :  { %v2385_v5 = vadd.f32 %v2384_v51, %v2354_v8  ;;  %v3287_v15 = vadd.f32 %v3286_v42, %v3285_v21  ;;  %v3399_v55 = vadd.f32 %v3398_v4, %v3397_v41  ;;  %v3288_v58 = vpop.f32.mrb[106].mxu0  ;;  %v3400_v12 = vpop.f32.mrb[138].mxu1 }
 0x430   :  { %v3289_v10 = vpop.f32.mrb[107].mxu0  ;;  %v3401_v34 = vpop.f32.mrb[139].mxu1 }
 0x431   :  { %v6012_v44 = vadd.f32 %v3399_v55, %v3287_v15  ;;  %v3290_v9 = vadd.f32 %v3289_v10, %v3288_v58  ;;  %v3402_v2 = vadd.f32 %v3401_v34, %v3400_v12 }
 0x433   :  { %v2316_v62 = vadd.f32 %v2315_v36, %v6012_v44  ;;  %v2355_v19 = vmul.f32 %v6012_v44, %v6012_v44  ;;  %v6017_v1 = vadd.f32 %v3402_v2, %v3290_v9 }
 0x435   :  { %v2386_v46 = vadd.f32 %v2385_v5, %v2355_v19  ;;  %v2317_v61 = vadd.f32 %v2316_v62, %v6017_v1  ;;  %v2356_v16 = vmul.f32 %v6017_v1, %v6017_v1  ;;  %v3291_v0 = vpop.f32.mrb[108].mxu0  ;;  %v3403_v20 = vpop.f32.mrb[140].mxu1 }
 0x436   :  { %v3292_v37 = vpop.f32.mrb[109].mxu0  ;;  %v3404_v53 = vpop.f32.mrb[141].mxu1 }
 0x437   :  { %v2387_v30 = vadd.f32 %v2386_v46, %v2356_v16  ;;  %v3293_v45 = vadd.f32 %v3292_v37, %v3291_v0  ;;  %v3405_v60 = vadd.f32 %v3404_v53, %v3403_v20  ;;  %v3294_v28 = vpop.f32.mrb[110].mxu0  ;;  %v3406_v27 = vpop.f32.mrb[142].mxu1 }
 0x438   :  { %v3295_v13 = vpop.f32.mrb[111].mxu0  ;;  %v3407_v25 = vpop.f32.mrb[143].mxu1 }
 0x439   :  { %v6022_v7 = vadd.f32 %v3405_v60, %v3293_v45  ;;  %v3296_v22 = vadd.f32 %v3295_v13, %v3294_v28  ;;  %v3408_v51 = vadd.f32 %v3407_v25, %v3406_v27  ;;  %v2288_v28 = vld [vmem:[%s6409_s6] sm:$0x1]  ;;  %v7009_v13 = vld [vmem:[#allocation107_spill] sm:$0xff] }
 0x43b   :  { %v2318_v36 = vadd.f32 %v2317_v61, %v6022_v7  ;;  %v2357_v8 = vmul.f32 %v6022_v7, %v6022_v7  ;;  %v2284_v21 = vadd.f32 %v3408_v51, %v3296_v22 }
 0x43d   :  { %v2388_v41 = vadd.f32 %v2387_v30, %v2357_v8  ;;  %v2319_v42 = vadd.f32 %v2318_v36, %v2284_v21  ;;  %v2358_v4 = vmul.f32 %v2284_v21, %v2284_v21  ;;  %v2287_v30 = vld [vmem:[%s6408_s5] sm:$0x1] }
 0x43f   :  { %v2320_v5 = vrot.slane %v2319_v42, 4  ;;  %v2389_v15 = vadd.f32 %v2388_v41, %v2358_v4 }
 0x441   :  { %v2321_v55 = vadd.f32 %v2320_v5, %v2319_v42  ;;  %v2390_v58 = vrot.slane %v2389_v15, 4 }
 0x443   :  { %v2322_v12 = vrot.slane %v2321_v55, 2  ;;  %v2391_v10 = vadd.f32 %v2390_v58, %v2389_v15 }
 0x445   :  { %v2323_v34 = vadd.f32 %v2322_v12, %v2321_v55  ;;  %v2392_v9 = vrot.slane %v2391_v10, 2 }
 0x447   :  { %v2324_v2 = vrot.slane %v2323_v34, 1  ;;  %v2393_v62 = vadd.f32 %v2392_v9, %v2391_v10 }
 0x449   :  { %v2325_v19 = vadd.f32 %v2324_v2, %v2323_v34  ;;  %v2394_v46 = vrot.slane %v2393_v62, 1 }
 0x44b   :  { %v2326_v61 = vmul.f32 0.00390625, %v2325_v19  ;;  %v2395_v16 = vadd.f32 %v2394_v46, %v2393_v62 }
 0x44d   :  { %v2396_v0 = vmul.f32 0.00390625, %v2395_v16  ;;  %v2397_v20 = vmul.f32 %v2326_v61, %v2326_v61 }
 0x44f   :  { %v2398_v37 = vsub.f32 %v2396_v0, %v2397_v20 }
 0x451   :  { %v2399_v53 = vadd.f32 1e-05, %v2398_v37 }
 0x453   :  { %3574 = vrsqrt.f32 %v2399_v53 }
 0x45d   :  { %v3575_v45 = vpop.eup %3574 }
 0x45e   :  { %v2401_v60 = vmul.f32 %v3575_v45, %v2287_v30 }
 0x460   :  { %v2402_v27 = vmul.f32 %v2401_v60, %v2326_v61  ;;  %v2408_v25 = vrot.slane %v2401_v60, %v7009_v13 }
 0x462   :  { %v2403_v22 = vsub.f32 %v2288_v28, %v2402_v27  ;;  %v6034_v51 = vmul.f32 %v2408_v25, %v2284_v21  ;;  %v2410_v36 = vmul.f32 %v2408_v25, %v5863_v48  ;;  %v2411_v8 = vmul.f32 %v2408_v25, %v5865_v24 }
 0x463   :  { %v2412_v41 = vmul.f32 %v2408_v25, %v5867_v23  ;;  %v2413_v42 = vmul.f32 %v2408_v25, %v5869_v33  ;;  %v2414_v4 = vmul.f32 %v2408_v25, %v5871_v38  ;;  %v2415_v5 = vmul.f32 %v2408_v25, %v5873_v35 }
 0x464   :  { %v6043_v15 = vrot.slane %v2403_v22, %v7009_v13  ;;  %v2416_v55 = vmul.f32 %v2408_v25, %v5875_v52  ;;  %v2417_v21 = vmul.f32 %v2408_v25, %v5877_v31  ;;  %v2418_v58 = vmul.f32 %v2408_v25, %v5887_v14 }
 0x465   :  { %v2419_v48 = vmul.f32 %v2408_v25, %v5890_v26  ;;  %v2420_v24 = vmul.f32 %v2408_v25, %v5898_v40  ;;  %v2421_v23 = vmul.f32 %v2408_v25, %v5902_v63  ;;  %v2422_v33 = vmul.f32 %v2408_v25, %v5916_v43 }
 0x466   :  { %v2423_v38 = vmul.f32 %v2408_v25, %v5924_v47  ;;  %v2424_v35 = vmul.f32 %v2408_v25, %v5932_v50  ;;  %v2425_v12 = vmul.f32 %v2408_v25, %v5935_v56  ;;  %v2426_v52 = vmul.f32 %v2408_v25, %v5943_v6 }
 0x467   :  { %v2427_v31 = vmul.f32 %v2408_v25, %v5947_v29  ;;  %v2428_v14 = vmul.f32 %v2408_v25, %v5955_v57  ;;  %v2429_v26 = vmul.f32 %v2408_v25, %v5960_v54  ;;  %v2430_v40 = vmul.f32 %v2408_v25, %v5968_v49 }
 0x468   :  { %v2431_v63 = vmul.f32 %v2408_v25, %v5971_v59  ;;  %v2432_v43 = vmul.f32 %v2408_v25, %v5979_v32  ;;  %v6063_v47 = vmul.f32 %v2408_v25, %v5983_v39  ;;  %v6066_v50 = vmul.f32 %v2408_v25, %v5991_v11 }
 0x469   :  { %v6069_v56 = vmul.f32 %v2408_v25, %v5996_v18  ;;  %v6072_v6 = vmul.f32 %v2408_v25, %v6002_v17  ;;  %v6075_v29 = vmul.f32 %v2408_v25, %v6007_v3  ;;  %v6078_v57 = vmul.f32 %v2408_v25, %v6012_v44 }
 0x46a   :  { %v6081_v54 = vmul.f32 %v2408_v25, %v6017_v1  ;;  %v6084_v49 = vmul.f32 %v2408_v25, %v6022_v7  ;;  %v2450_v59 = vadd.f32 %v6043_v15, %v2412_v41  ;;  %v2451_v32 = vadd.f32 %v6043_v15, %v2413_v42 }
 0x46b   :  { %v2448_v39 = vadd.f32 %v6043_v15, %v2410_v36  ;;  %v2449_v11 = vadd.f32 %v6043_v15, %v2411_v8  ;;  %v2452_v18 = vadd.f32 %v6043_v15, %v2414_v4  ;;  %v2453_v17 = vadd.f32 %v6043_v15, %v2415_v5 }
 0x46c   :  { %v2482_v3 = vmax.f32 %v2450_v59, 0.0  ;;  %v2483_v44 = vmax.f32 %v2451_v32, 0.0  ;;  %v2454_v1 = vadd.f32 %v6043_v15, %v2416_v55  ;;  %v2455_v10 = vadd.f32 %v6043_v15, %v2417_v21 }
 0x46d   :  { %v2480_v7 = vmax.f32 %v2448_v39, 0.0  ;;  %v2481_v34 = vmax.f32 %v2449_v11, 0.0  ;;  %v2484_v9 = vmax.f32 %v2452_v18, 0.0  ;;  %v2485_v2 = vmax.f32 %v2453_v17, 0.0 }
 0x46e   :  { %v2513_v62 = vpack.c.bf16 %v2483_v44, %v2482_v3  ;;  %v2486_v19 = vmax.f32 %v2454_v1, 0.0  ;;  %v2487_v46 = vmax.f32 %v2455_v10, 0.0  ;;  %v2456_v61 = vadd.f32 %v6043_v15, %v2418_v58 }
 0x46f   :  { %v2512_v16 = vpack.c.bf16 %v2481_v34, %v2480_v7  ;;  %v2514_v0 = vpack.c.bf16 %v2485_v2, %v2484_v9  ;;  %v2457_v20 = vadd.f32 %v6043_v15, %v2419_v48  ;;  %v2458_v37 = vadd.f32 %v6043_v15, %v2420_v24 }
 0x470   :  { %v2515_v53 = vpack.c.bf16 %v2487_v46, %v2486_v19  ;;  %v2488_v30 = vmax.f32 %v2456_v61, 0.0  ;;  %v2459_v45 = vadd.f32 %v6043_v15, %v2421_v23  ;;  %v2460_v60 = vadd.f32 %v6043_v15, %v2422_v33 }
 0x471   :  { %3449 = vmatprep.mubr.bf16.mxu0 %v2512_v16  ;;  %v2489_v28 = vmax.f32 %v2457_v20, 0.0  ;;  %v2490_v27 = vmax.f32 %v2458_v37, 0.0  ;;  %v2461_v25 = vadd.f32 %v6043_v15, %v2423_v38  ;;  %v2462_v22 = vadd.f32 %v6043_v15, %v2424_v35 }
 0x472   :  { %3450 = vmatmul.mubr.bf16.vlgmr.msra.gmra.mrb[112].mxu0 %v2513_v62  ;;  %v2491_v36 = vmax.f32 %v2459_v45, 0.0  ;;  %v2492_v8 = vmax.f32 %v2460_v60, 0.0  ;;  %v2463_v41 = vadd.f32 %v6043_v15, %v2425_v12  ;;  %v2464_v42 = vadd.f32 %v6043_v15, %v2426_v52 }
 0x473   :  { %3453 = vmatprep.mubr.bf16.mxu0 %v2514_v0  ;;  %v2516_v4 = vpack.c.bf16 %v2489_v28, %v2488_v30  ;;  %v2493_v5 = vmax.f32 %v2461_v25, 0.0  ;;  %v2494_v55 = vmax.f32 %v2462_v22, 0.0  ;;  %v2465_v21 = vadd.f32 %v6043_v15, %v2427_v31 }
 0x474   :  { %v2517_v58 = vpack.c.bf16 %v2491_v36, %v2490_v27  ;;  %v2495_v48 = vmax.f32 %v2463_v41, 0.0  ;;  %v2496_v24 = vmax.f32 %v2464_v42, 0.0  ;;  %v2466_v23 = vadd.f32 %v6043_v15, %v2428_v14 }
 0x475   :  { %v2518_v33 = vpack.c.bf16 %v2493_v5, %v2492_v8  ;;  %v2497_v38 = vmax.f32 %v2465_v21, 0.0  ;;  %v2467_v35 = vadd.f32 %v6043_v15, %v2429_v26  ;;  %v2468_v59 = vadd.f32 %v6043_v15, %v2430_v40 }
 0x476   :  { %v2519_v12 = vpack.c.bf16 %v2495_v48, %v2494_v55  ;;  %v2498_v32 = vmax.f32 %v2466_v23, 0.0  ;;  %v2469_v52 = vadd.f32 %v6043_v15, %v2431_v63  ;;  %v2470_v39 = vadd.f32 %v6043_v15, %v2432_v43 }
 0x477   :  { %v2520_v11 = vpack.c.bf16 %v2497_v38, %v2496_v24  ;;  %v2499_v18 = vmax.f32 %v2467_v35, 0.0  ;;  %v2500_v31 = vmax.f32 %v2468_v59, 0.0  ;;  %v2471_v17 = vadd.f32 %v6043_v15, %v6063_v47 }
 0x478   :  { %v2501_v3 = vmax.f32 %v2469_v52, 0.0  ;;  %v2502_v14 = vmax.f32 %v2470_v39, 0.0  ;;  %v2472_v44 = vadd.f32 %v6043_v15, %v6066_v50  ;;  %v2473_v26 = vadd.f32 %v6043_v15, %v6069_v56 }
 0x479   :  { %v2521_v40 = vpack.c.bf16 %v2499_v18, %v2498_v32  ;;  %v2503_v1 = vmax.f32 %v2471_v17, 0.0  ;;  %v2474_v63 = vadd.f32 %v6043_v15, %v6072_v6  ;;  %v2475_v43 = vadd.f32 %v6043_v15, %v6075_v29 }
 0x47a   :  { %3454 = vmatmul.mubr.bf16.gmra.mrb[116].mxu0 %v2515_v53  ;;  %v2522_v10 = vpack.c.bf16 %v2501_v3, %v2500_v31  ;;  %v2504_v7 = vmax.f32 %v2472_v44, 0.0  ;;  %v2505_v47 = vmax.f32 %v2473_v26, 0.0  ;;  %v2476_v34 = vadd.f32 %v6043_v15, %v6078_v57 }
 0x47b   :  { %3457 = vmatprep.mubr.bf16.mxu0 %v2516_v4  ;;  %v2523_v50 = vpack.c.bf16 %v2503_v1, %v2502_v14  ;;  %v2506_v9 = vmax.f32 %v2474_v63, 0.0  ;;  %v2507_v2 = vmax.f32 %v2475_v43, 0.0  ;;  %v2477_v56 = vadd.f32 %v6043_v15, %v6081_v54 }
 0x47c   :  { %v2524_v62 = vpack.c.bf16 %v2505_v47, %v2504_v7  ;;  %v2508_v19 = vmax.f32 %v2476_v34, 0.0  ;;  %v2478_v6 = vadd.f32 %v6043_v15, %v6084_v49  ;;  %v2479_v29 = vadd.f32 %v6043_v15, %v6034_v51 }
 0x47d   :  { %v2525_v46 = vpack.c.bf16 %v2507_v2, %v2506_v9  ;;  %v2509_v61 = vmax.f32 %v2477_v56, 0.0 }
 0x47e   :  { %v2510_v16 = vmax.f32 %v2478_v6, 0.0  ;;  %v2511_v0 = vmax.f32 %v2479_v29, 0.0 }
 0x47f   :  { %v2526_v57 = vpack.c.bf16 %v2509_v61, %v2508_v19 }
 0x480   :  { %v2527_v20 = vpack.c.bf16 %v2511_v0, %v2510_v16 }
 0x482   :  { %3458 = vmatmul.mubr.bf16.gmra.mrb[120].mxu0 %v2517_v58 }
 0x483   :  { %3461 = vmatprep.mubr.bf16.mxu0 %v2518_v33 }
 0x48a   :  { %3462 = vmatmul.mubr.bf16.gmra.mrb[124].mxu0 %v2519_v12 }
 0x48b   :  { %3465 = vmatprep.mubr.bf16.mxu0 %v2520_v11 }
 0x492   :  { %3466 = vmatmul.mubr.bf16.gmra.mrb[128].mxu0 %v2521_v40 }
 0x493   :  { %3469 = vmatprep.mubr.bf16.mxu0 %v2522_v10 }
 0x49a   :  { %3470 = vmatmul.mubr.bf16.gmra.mrb[132].mxu0 %v2523_v50 }
 0x49b   :  { %3473 = vmatprep.mubr.bf16.mxu0 %v2524_v62 }
 0x4a2   :  { %3474 = vmatmul.mubr.bf16.gmra.mrb[136].mxu0 %v2525_v46 }
 0x4a3   :  { %3477 = vmatprep.mubr.bf16.mxu0 %v2526_v57 }
 0x4aa   :  { %3478 = vmatmul.mubr.bf16.gmra.mrb[140].mxu0 %v2527_v20 }
 0x545   :  { %v6127_v54 = vpop.f32.mrb[112].mxu0 }
 0x546   :  { %v6129_v51 = vpop.f32.mrb[113].mxu0  ;;  %v2828_v53 = vmul.f32 %v6127_v54, %v6127_v54  ;;  %v2759_v27 = vsel %vm2755_vm1, %v6127_v54, 0.0 }
 0x547   :  { %v2826_v15 = vmul.f32 %v6129_v51, %v6129_v51  ;;  %v6133_v49 = vpop.f32.mrb[114].mxu0  ;;  %v2756_v30 = vsel %vm2755_vm1, %v6129_v51, 0.0 }
 0x548   :  { %v6135_v37 = vpop.f32.mrb[115].mxu0  ;;  %v2829_v22 = vmul.f32 %v6133_v49, %v6133_v49  ;;  %v2861_v42 = vsel %vm2755_vm1, %v2828_v53, 0.0  ;;  %v2761_v4 = vsel %vm2755_vm1, %v6133_v49, 0.0 }
 0x549   :  { %v2757_v45 = vsel %vm2755_vm1, %v6135_v37, 0.0  ;;  %v2827_v60 = vmul.f32 %v6135_v37, %v6135_v37  ;;  %v2858_v25 = vsel %vm2755_vm1, %v2826_v15, 0.0 }
 0x54a   :  { %v2758_v28 = vadd.f32 %v2757_v45, %v2756_v30  ;;  %v2863_v48 = vsel %vm2755_vm1, %v2829_v22, 0.0 }
 0x54b   :  { %v2859_v36 = vsel %vm2755_vm1, %v2827_v60, 0.0 }
 0x54c   :  { %v2760_v8 = vadd.f32 %v2759_v27, %v2758_v28  ;;  %v2860_v41 = vadd.f32 %v2859_v36, %v2858_v25 }
 0x54d   :  { %v6154_v5 = vpop.f32.mrb[116].mxu0 }
 0x54e   :  { %v2862_v55 = vadd.f32 %v2861_v42, %v2860_v41  ;;  %v6156_v21 = vpop.f32.mrb[117].mxu0  ;;  %v2762_v58 = vadd.f32 %v2761_v4, %v2760_v8  ;;  %v2832_v12 = vmul.f32 %v6154_v5, %v6154_v5  ;;  %v2767_v31 = vsel %vm2755_vm1, %v6154_v5, 0.0 }
 0x54f   :  { %v2763_v24 = vsel %vm2755_vm1, %v6156_v21, 0.0  ;;  %v2830_v23 = vmul.f32 %v6156_v21, %v6156_v21  ;;  %v6163_v33 = vpop.f32.mrb[118].mxu0 }
 0x550   :  { %v2764_v38 = vadd.f32 %v2763_v24, %v2762_v58  ;;  %v2864_v35 = vadd.f32 %v2863_v48, %v2862_v55  ;;  %v6165_v59 = vpop.f32.mrb[119].mxu0  ;;  %v2833_v17 = vmul.f32 %v6163_v33, %v6163_v33  ;;  %v2869_v26 = vsel %vm2755_vm1, %v2832_v12, 0.0 }
 0x551   :  { %v2865_v32 = vsel %vm2755_vm1, %v2830_v23, 0.0  ;;  %v2765_v52 = vsel %vm2755_vm1, %v6165_v59, 0.0  ;;  %v2831_v39 = vmul.f32 %v6165_v59, %v6165_v59  ;;  %v2769_v40 = vsel %vm2755_vm1, %v6163_v33, 0.0 }
 0x552   :  { %v2866_v11 = vadd.f32 %v2865_v32, %v2864_v35  ;;  %v2766_v18 = vadd.f32 %v2765_v52, %v2764_v38  ;;  %v2871_v7 = vsel %vm2755_vm1, %v2833_v17, 0.0 }
 0x553   :  { %v2867_v3 = vsel %vm2755_vm1, %v2831_v39, 0.0 }
 0x554   :  { %v2768_v14 = vadd.f32 %v2767_v31, %v2766_v18  ;;  %v2868_v44 = vadd.f32 %v2867_v3, %v2866_v11 }
 0x555   :  { %v6182_v1 = vpop.f32.mrb[120].mxu0 }
 0x556   :  { %v2870_v63 = vadd.f32 %v2869_v26, %v2868_v44  ;;  %v6184_v43 = vpop.f32.mrb[121].mxu0  ;;  %v2770_v10 = vadd.f32 %v2769_v40, %v2768_v14  ;;  %v2836_v62 = vmul.f32 %v6182_v1, %v6182_v1  ;;  %v2775_v16 = vsel %vm2755_vm1, %v6182_v1, 0.0 }
 0x557   :  { %v2771_v47 = vsel %vm2755_vm1, %v6184_v43, 0.0  ;;  %v2834_v34 = vmul.f32 %v6184_v43, %v6184_v43  ;;  %v6191_v50 = vpop.f32.mrb[122].mxu0 }
 0x558   :  { %v2772_v9 = vadd.f32 %v2771_v47, %v2770_v10  ;;  %v2872_v2 = vadd.f32 %v2871_v7, %v2870_v63  ;;  %v6193_v56 = vpop.f32.mrb[123].mxu0  ;;  %v2837_v0 = vmul.f32 %v6191_v50, %v6191_v50  ;;  %v2877_v53 = vsel %vm2755_vm1, %v2836_v62, 0.0 }
 0x559   :  { %v2873_v19 = vsel %vm2755_vm1, %v2834_v34, 0.0  ;;  %v2773_v6 = vsel %vm2755_vm1, %v6193_v56, 0.0  ;;  %v2835_v29 = vmul.f32 %v6193_v56, %v6193_v56  ;;  %v2777_v30 = vsel %vm2755_vm1, %v6191_v50, 0.0 }
 0x55a   :  { %v2874_v46 = vadd.f32 %v2873_v19, %v2872_v2  ;;  %v2774_v61 = vadd.f32 %v2773_v6, %v2772_v9  ;;  %v2879_v25 = vsel %vm2755_vm1, %v2837_v0, 0.0 }
 0x55b   :  { %v2875_v57 = vsel %vm2755_vm1, %v2835_v29, 0.0 }
 0x55c   :  { %v2776_v20 = vadd.f32 %v2775_v16, %v2774_v61  ;;  %v2876_v15 = vadd.f32 %v2875_v57, %v2874_v46 }
 0x55d   :  { %v6210_v45 = vpop.f32.mrb[124].mxu0 }
 0x55e   :  { %v2878_v60 = vadd.f32 %v2877_v53, %v2876_v15  ;;  %v6212_v28 = vpop.f32.mrb[125].mxu0  ;;  %v2778_v27 = vadd.f32 %v2777_v30, %v2776_v20  ;;  %v2840_v55 = vmul.f32 %v6210_v45, %v6210_v45  ;;  %v2783_v35 = vsel %vm2755_vm1, %v6210_v45, 0.0 }
 0x55f   :  { %v2779_v22 = vsel %vm2755_vm1, %v6212_v28, 0.0  ;;  %v2838_v36 = vmul.f32 %v6212_v28, %v6212_v28  ;;  %v6219_v8 = vpop.f32.mrb[126].mxu0 }
 0x560   :  { %v2780_v41 = vadd.f32 %v2779_v22, %v2778_v27  ;;  %v2880_v42 = vadd.f32 %v2879_v25, %v2878_v60  ;;  %v6221_v4 = vpop.f32.mrb[127].mxu0  ;;  %v2841_v12 = vmul.f32 %v6219_v8, %v6219_v8  ;;  %v2885_v11 = vsel %vm2755_vm1, %v2840_v55, 0.0 }
 0x561   :  { %v2881_v58 = vsel %vm2755_vm1, %v2838_v36, 0.0  ;;  %v2781_v48 = vsel %vm2755_vm1, %v6221_v4, 0.0  ;;  %v2839_v24 = vmul.f32 %v6221_v4, %v6221_v4  ;;  %v2785_v18 = vsel %vm2755_vm1, %v6219_v8, 0.0 }
 0x562   :  { %v2882_v23 = vadd.f32 %v2881_v58, %v2880_v42  ;;  %v2782_v38 = vadd.f32 %v2781_v48, %v2780_v41  ;;  %v2887_v44 = vsel %vm2755_vm1, %v2841_v12, 0.0 }
 0x563   :  { %v2883_v32 = vsel %vm2755_vm1, %v2839_v24, 0.0 }
 0x564   :  { %v2784_v52 = vadd.f32 %v2783_v35, %v2782_v38  ;;  %v2884_v39 = vadd.f32 %v2883_v32, %v2882_v23 }
 0x565   :  { %v6238_v31 = vpop.f32.mrb[128].mxu0 }
 0x566   :  { %v2886_v17 = vadd.f32 %v2885_v11, %v2884_v39  ;;  %v6240_v3 = vpop.f32.mrb[129].mxu0  ;;  %v2786_v14 = vadd.f32 %v2785_v18, %v2784_v52  ;;  %v2844_v34 = vmul.f32 %v6238_v31, %v6238_v31  ;;  %v2791_v29 = vsel %vm2755_vm1, %v6238_v31, 0.0 }
 0x567   :  { %v2787_v26 = vsel %vm2755_vm1, %v6240_v3, 0.0  ;;  %v2842_v40 = vmul.f32 %v6240_v3, %v6240_v3  ;;  %v6247_v63 = vpop.f32.mrb[130].mxu0 }
 0x568   :  { %v2788_v10 = vadd.f32 %v2787_v26, %v2786_v14  ;;  %v2888_v7 = vadd.f32 %v2887_v44, %v2886_v17  ;;  %v6249_v47 = vpop.f32.mrb[131].mxu0  ;;  %v2845_v46 = vmul.f32 %v6247_v63, %v6247_v63  ;;  %v2893_v57 = vsel %vm2755_vm1, %v2844_v34, 0.0 }
 0x569   :  { %v2889_v9 = vsel %vm2755_vm1, %v2842_v40, 0.0  ;;  %v2789_v2 = vsel %vm2755_vm1, %v6249_v47, 0.0  ;;  %v2843_v62 = vmul.f32 %v6249_v47, %v6249_v47  ;;  %v2793_v20 = vsel %vm2755_vm1, %v6247_v63, 0.0 }
 0x56a   :  { %v2890_v19 = vadd.f32 %v2889_v9, %v2888_v7  ;;  %v2790_v6 = vadd.f32 %v2789_v2, %v2788_v10  ;;  %v2895_v27 = vsel %vm2755_vm1, %v2845_v46, 0.0 }
 0x56b   :  { %v2891_v61 = vsel %vm2755_vm1, %v2843_v62, 0.0 }
 0x56c   :  { %v2792_v16 = vadd.f32 %v2791_v29, %v2790_v6  ;;  %v2892_v0 = vadd.f32 %v2891_v61, %v2890_v19 }
 0x56d   :  { %v6266_v15 = vpop.f32.mrb[132].mxu0 }
 0x56e   :  { %v2894_v53 = vadd.f32 %v2893_v57, %v2892_v0  ;;  %v6268_v30 = vpop.f32.mrb[133].mxu0  ;;  %v2794_v60 = vadd.f32 %v2793_v20, %v2792_v16  ;;  %v2848_v58 = vmul.f32 %v6266_v15, %v6266_v15  ;;  %v2799_v12 = vsel %vm2755_vm1, %v6266_v15, 0.0 }
 0x56f   :  { %v2795_v25 = vsel %vm2755_vm1, %v6268_v30, 0.0  ;;  %v2846_v22 = vmul.f32 %v6268_v30, %v6268_v30  ;;  %v6275_v36 = vpop.f32.mrb[134].mxu0 }
 0x570   :  { %v2796_v41 = vadd.f32 %v2795_v25, %v2794_v60  ;;  %v2896_v42 = vadd.f32 %v2895_v27, %v2894_v53  ;;  %v6277_v55 = vpop.f32.mrb[135].mxu0  ;;  %v2849_v32 = vmul.f32 %v6275_v36, %v6275_v36  ;;  %v2901_v18 = vsel %vm2755_vm1, %v2848_v58, 0.0 }
 0x571   :  { %v2897_v48 = vsel %vm2755_vm1, %v2846_v22, 0.0  ;;  %v2797_v24 = vsel %vm2755_vm1, %v6277_v55, 0.0  ;;  %v2847_v23 = vmul.f32 %v6277_v55, %v6277_v55  ;;  %v2801_v17 = vsel %vm2755_vm1, %v6275_v36, 0.0 }
 0x572   :  { %v2898_v38 = vadd.f32 %v2897_v48, %v2896_v42  ;;  %v2798_v35 = vadd.f32 %v2797_v24, %v2796_v41  ;;  %v2903_v10 = vsel %vm2755_vm1, %v2849_v32, 0.0 }
 0x573   :  { %v2899_v52 = vsel %vm2755_vm1, %v2847_v23, 0.0 }
 0x574   :  { %v2800_v39 = vadd.f32 %v2799_v12, %v2798_v35  ;;  %v2900_v11 = vadd.f32 %v2899_v52, %v2898_v38 }
 0x575   :  { %v6294_v14 = vpop.f32.mrb[136].mxu0 }
 0x576   :  { %v2902_v44 = vadd.f32 %v2901_v18, %v2900_v11  ;;  %v6296_v26 = vpop.f32.mrb[137].mxu0  ;;  %v2802_v40 = vadd.f32 %v2801_v17, %v2800_v39  ;;  %v2852_v6 = vmul.f32 %v6294_v14, %v6294_v14  ;;  %v2807_v57 = vsel %vm2755_vm1, %v6294_v14, 0.0 }
 0x577   :  { %v2803_v7 = vsel %vm2755_vm1, %v6296_v26, 0.0  ;;  %v2850_v34 = vmul.f32 %v6296_v26, %v6296_v26  ;;  %v6303_v9 = vpop.f32.mrb[138].mxu0 }
 0x578   :  { %v2804_v2 = vadd.f32 %v2803_v7, %v2802_v40  ;;  %v2904_v62 = vadd.f32 %v2903_v10, %v2902_v44  ;;  %v6305_v19 = vpop.f32.mrb[139].mxu0  ;;  %v2853_v20 = vmul.f32 %v6303_v9, %v6303_v9  ;;  %v2909_v25 = vsel %vm2755_vm1, %v2852_v6, 0.0 }
 0x579   :  { %v2905_v29 = vsel %vm2755_vm1, %v2850_v34, 0.0  ;;  %v2805_v46 = vsel %vm2755_vm1, %v6305_v19, 0.0  ;;  %v2851_v61 = vmul.f32 %v6305_v19, %v6305_v19  ;;  %v2809_v22 = vsel %vm2755_vm1, %v6303_v9, 0.0 }
 0x57a   :  { %v2906_v16 = vadd.f32 %v2905_v29, %v2904_v62  ;;  %v2806_v0 = vadd.f32 %v2805_v46, %v2804_v2  ;;  %v2911_v24 = vsel %vm2755_vm1, %v2853_v20, 0.0 }
 0x57b   :  { %v2907_v53 = vsel %vm2755_vm1, %v2851_v61, 0.0 }
 0x57c   :  { %v2808_v60 = vadd.f32 %v2807_v57, %v2806_v0  ;;  %v2908_v27 = vadd.f32 %v2907_v53, %v2906_v16 }
 0x57d   :  { %v6322_v41 = vpop.f32.mrb[140].mxu0 }
 0x57e   :  { %v2910_v42 = vadd.f32 %v2909_v25, %v2908_v27  ;;  %v6324_v58 = vpop.f32.mrb[141].mxu0  ;;  %v2810_v48 = vadd.f32 %v2809_v22, %v2808_v60  ;;  %v2856_v39 = vmul.f32 %v6322_v41, %v6322_v41  ;;  %v2815_v10 = vsel %vm2755_vm1, %v6322_v41, 0.0 }
 0x57f   :  { %v2811_v23 = vsel %vm2755_vm1, %v6324_v58, 0.0  ;;  %v2854_v38 = vmul.f32 %v6324_v58, %v6324_v58  ;;  %v6331_v35 = vpop.f32.mrb[142].mxu0 }
 0x580   :  { %v2812_v12 = vadd.f32 %v2811_v23, %v2810_v48  ;;  %v2912_v32 = vadd.f32 %v2911_v24, %v2910_v42  ;;  %v2741_v52 = vpop.f32.mrb[143].mxu0  ;;  %v2857_v7 = vmul.f32 %v6331_v35, %v6331_v35  ;;  %v2917_v6 = vsel %vm2755_vm1, %v2856_v39, 0.0 }
 0x581   :  { %v2913_v11 = vsel %vm2755_vm1, %v2854_v38, 0.0  ;;  %v2813_v18 = vsel %vm2755_vm1, %v2741_v52, 0.0  ;;  %v2855_v17 = vmul.f32 %v2741_v52, %v2741_v52  ;;  %v2817_v29 = vsel %vm2755_vm1, %v6331_v35, 0.0 }
 0x582   :  { %v2914_v44 = vadd.f32 %v2913_v11, %v2912_v32  ;;  %v2814_v40 = vadd.f32 %v2813_v18, %v2812_v12  ;;  %v2919_v16 = vsel %vm2755_vm1, %v2857_v7, 0.0 }
 0x583   :  { %v2915_v34 = vsel %vm2755_vm1, %v2855_v17, 0.0  ;;  %v2753_v17 = vld [vmem:[%s6411_s8] sm:$0x1]  ;;  %s3683_s8 = smov [#allocation8]  }
 0x584   :  { %v2816_v2 = vadd.f32 %v2815_v10, %v2814_v40  ;;  %v2916_v62 = vadd.f32 %v2915_v34, %v2914_v44  ;;  %v2754_v10 = vld [vmem:[%s6412_s9] sm:$0x1]  ;;  %s3084_s9 = sshll.u32 %s3683_s8, 4  ;;  %s3085_s9 = int_to_ptr.vmem [resolvable:$true] %s3084_s9 }
 0x585   :  { %s3644_s2 = scalar_lea.vmem %s3085_s9, 512  ;;  %p3649_p11 = scmp.lt.s32.totalorder %s3085_s9, %s3085_s9 }
 0x586   :  { %v2818_v46 = vadd.f32 %v2817_v29, %v2816_v2  ;;  %v2918_v61 = vadd.f32 %v2917_v6, %v2916_v62  ;;  %p3645_p10 = scmp.ne.s32.totalorder %s3085_s9, %s3644_s2  ;;  %p3650_p12 = scmp.lt.s32.totalorder %s3644_s2, %s3644_s2 }
 0x588   :  { %v2819_v0 = vrot.slane %v2818_v46, 4  ;;  %v2920_v57 = vadd.f32 %v2919_v16, %v2918_v61  ;;  %p3651_p13 = por %p3650_p12, %p3649_p11 }
 0x58a   :  { %v2820_v20 = vadd.f32 %v2819_v0, %v2818_v46  ;;  %v2921_v53 = vrot.slane %v2920_v57, 4  ;;  %p3652_p0 = pnand %p3651_p13, %p3645_p10 }
 0x58c   :  { %v2821_v60 = vrot.slane %v2820_v20, 2  ;;  %v2922_v27 = vadd.f32 %v2921_v53, %v2920_v57 }
 0x58e   :  { %v2822_v25 = vadd.f32 %v2821_v60, %v2820_v20  ;;  %v2923_v22 = vrot.slane %v2922_v27, 2 }
 0x590   :  { %v2823_v42 = vrot.slane %v2822_v25, 1  ;;  %v2924_v48 = vadd.f32 %v2923_v22, %v2922_v27 }
 0x592   :  { %v2824_v24 = vadd.f32 %v2823_v42, %v2822_v25  ;;  %v2925_v23 = vrot.slane %v2924_v48, 1 }
 0x594   :  { %v2825_v38 = vmul.f32 0.00390625, %v2824_v24  ;;  %v2926_v12 = vadd.f32 %v2925_v23, %v2924_v48 }
 0x596   :  { %v2927_v32 = vmul.f32 0.00390625, %v2926_v12  ;;  %v2928_v39 = vmul.f32 %v2825_v38, %v2825_v38 }
 0x598   :  { %v2929_v11 = vsub.f32 %v2927_v32, %v2928_v39 }
 0x59a   :  { %v2930_v18 = vadd.f32 1e-05, %v2929_v11 }
 0x59c   :  { %3576 = vrsqrt.f32 %v2930_v18 }
 0x5a6   :  { %v3577_v44 = vpop.eup %3576 }
 0x5a7   :  { %v2932_v40 = vmul.f32 %v3577_v44, %v2753_v17 }
 0x5a9   :  { %v2933_v7 = vmul.f32 %v2932_v40, %v2825_v38  ;;  %v2939_v34 = vrot.slane %v2932_v40, %v7009_v13 }
 0x5ab   :  { %v2934_v2 = vsub.f32 %v2754_v10, %v2933_v7  ;;  %v2970_v62 = vmul.f32 %v2939_v34, %v2741_v52  ;;  %v2942_v6 = vmul.f32 %v2939_v34, %v6135_v37  ;;  %v2943_v29 = vmul.f32 %v6127_v54, %v2939_v34 }
 0x5ac   :  { %v2944_v46 = vmul.f32 %v6133_v49, %v2939_v34  ;;  %v2945_v61 = vmul.f32 %v2939_v34, %v6156_v21  ;;  %v2946_v16 = vmul.f32 %v2939_v34, %v6165_v59  ;;  %v2947_v0 = vmul.f32 %v6154_v5, %v2939_v34 }
 0x5ad   :  { %v2977_v57 = vrot.slane %v2934_v2, %v7009_v13  ;;  %v2948_v20 = vmul.f32 %v6163_v33, %v2939_v34  ;;  %v2949_v53 = vmul.f32 %v2939_v34, %v6184_v43  ;;  %v2950_v52 = vmul.f32 %v2939_v34, %v6193_v56 }
 0x5ae   :  { %v2951_v37 = vmul.f32 %v6182_v1, %v2939_v34  ;;  %v2952_v54 = vmul.f32 %v6191_v50, %v2939_v34  ;;  %v2953_v49 = vmul.f32 %v2939_v34, %v6212_v28  ;;  %v2954_v21 = vmul.f32 %v2939_v34, %v6221_v4 }
 0x5af   :  { %v6367_v60 = vadd.f32 %v2977_v57, %v2970_v62  ;;  %v2955_v5 = vmul.f32 %v6210_v45, %v2939_v34  ;;  %v2956_v13 = vmul.f32 %v6219_v8, %v2939_v34  ;;  %v2958_v33 = vmul.f32 %v2939_v34, %v6249_v47 }
 0x5b0   :  { %v2959_v59 = vmul.f32 %v6238_v31, %v2939_v34  ;;  %v2960_v43 = vmul.f32 %v6247_v63, %v2939_v34  ;;  %v2961_v1 = vmul.f32 %v2939_v34, %v6268_v30  ;;  %v2962_v50 = vmul.f32 %v2939_v34, %v6277_v55 }
 0x5b1   :  { %v2963_v56 = vmul.f32 %v6266_v15, %v2939_v34  ;;  %v2964_v28 = vmul.f32 %v6275_v36, %v2939_v34  ;;  %v2965_v4 = vmul.f32 %v2939_v34, %v6296_v26  ;;  %v2966_v45 = vmul.f32 %v2939_v34, %v6305_v19 }
 0x5b2   :  { %v2967_v8 = vmul.f32 %v6294_v14, %v2939_v34  ;;  %v2968_v47 = vmul.f32 %v6303_v9, %v2939_v34  ;;  %v2969_v31 = vmul.f32 %v2939_v34, %v6324_v58  ;;  %v2971_v63 = vmul.f32 %v6322_v41, %v2939_v34 }
 0x5b3   :  { %v2972_v30 = vmul.f32 %v6331_v35, %v2939_v34  ;;  %v2957_v55 = vmul.f32 %v2939_v34, %v6240_v3  ;;  %v2941_v15 = vmul.f32 %v2939_v34, %v6129_v51  ;;  %v2996_v27 = vadd.f32 %v2977_v57, %v2958_v33 }
 0x5b4   :  { %v2980_v36 = vadd.f32 %v2977_v57, %v2942_v6  ;;  %v2997_v25 = vadd.f32 %v2977_v57, %v2959_v59  ;;  %v2981_v26 = vadd.f32 %v2977_v57, %v2943_v29  ;;  %v2998_v22 = vadd.f32 %v2977_v57, %v2960_v43 }
 0x5b5   :  { %v2995_v19 = vadd.f32 %v2977_v57, %v2957_v55  ;;  %v2979_v42 = vadd.f32 %v2977_v57, %v2941_v15  ;;  %v2982_v14 = vadd.f32 %v2977_v57, %v2944_v46  ;;  %v2999_v48 = vadd.f32 %v2977_v57, %v2961_v1 }
 0x5b6   :  { %v2983_v9 = vadd.f32 %v2977_v57, %v2945_v61  ;;  %v3000_v24 = vadd.f32 %v2977_v57, %v2962_v50  ;;  %v2984_v58 = vadd.f32 %v2977_v57, %v2946_v16  ;;  %v3001_v23 = vadd.f32 %v2977_v57, %v2963_v56 }
 0x5b7   :  { %3043 = vxpose.xlu1.b32.start [1/16] (narrow) %v2995_v19, 16  ;;  %3011 = vxpose.xlu0.b32.start [1/16] (narrow) %v2979_v42, 16  ;;  %v2985_v41 = vadd.f32 %v2977_v57, %v2947_v0  ;;  %v3002_v35 = vadd.f32 %v2977_v57, %v2964_v28  ;;  %v2986_v3 = vadd.f32 %v2977_v57, %v2948_v20 }
 0x5b8   :  { %v3003_v38 = vadd.f32 %v2977_v57, %v2965_v4  ;;  %v2987_v51 = vadd.f32 %v2977_v57, %v2949_v53  ;;  %v3004_v12 = vadd.f32 %v2977_v57, %v2966_v45  ;;  %v2988_v32 = vadd.f32 %v2977_v57, %v2950_v52 }
 0x5b9   :  { %v3005_v39 = vadd.f32 %v2977_v57, %v2967_v8  ;;  %v2989_v11 = vadd.f32 %v2977_v57, %v2951_v37  ;;  %v3006_v18 = vadd.f32 %v2977_v57, %v2968_v47  ;;  %v2990_v17 = vadd.f32 %v2977_v57, %v2952_v54 }
 0x5ba   :  { %v3007_v44 = vadd.f32 %v2977_v57, %v2969_v31  ;;  %v2991_v40 = vadd.f32 %v2977_v57, %v2953_v49  ;;  %v2992_v10 = vadd.f32 %v2977_v57, %v2954_v21  ;;  %v3009_v7 = vadd.f32 %v2977_v57, %v2971_v63 }
 0x5bb   :  { %3044 = vxpose.xlu1.b32.cont [2/16] (narrow) %v2996_v27, 16  ;;  %3012 = vxpose.xlu0.b32.cont [2/16] (narrow) %v2980_v36, 16  ;;  %v2993_v34 = vadd.f32 %v2977_v57, %v2955_v5  ;;  %v3010_v2 = vadd.f32 %v2977_v57, %v2972_v30  ;;  %v2994_v62 = vadd.f32 %v2977_v57, %v2956_v13 }
 0x5bf   :  { %3045 = vxpose.xlu1.b32.cont [3/16] (narrow) %v2997_v25, 16  ;;  %3013 = vxpose.xlu0.b32.cont [3/16] (narrow) %v2981_v26, 16 }
 0x5c3   :  { %3046 = vxpose.xlu1.b32.cont [4/16] (narrow) %v2998_v22, 16  ;;  %3014 = vxpose.xlu0.b32.cont [4/16] (narrow) %v2982_v14, 16 }
 0x5c7   :  { %3047 = vxpose.xlu1.b32.cont [5/16] (narrow) %v2999_v48, 16  ;;  %3015 = vxpose.xlu0.b32.cont [5/16] (narrow) %v2983_v9, 16 }
 0x5cb   :  { %3048 = vxpose.xlu1.b32.cont [6/16] (narrow) %v3000_v24, 16  ;;  %3016 = vxpose.xlu0.b32.cont [6/16] (narrow) %v2984_v58, 16 }
 0x5cf   :  { %3049 = vxpose.xlu1.b32.cont [7/16] (narrow) %v3001_v23, 16  ;;  %3017 = vxpose.xlu0.b32.cont [7/16] (narrow) %v2985_v41, 16 }
 0x5d3   :  { %3050 = vxpose.xlu1.b32.cont [8/16] (narrow) %v3002_v35, 16  ;;  %3018 = vxpose.xlu0.b32.cont [8/16] (narrow) %v2986_v3, 16 }
 0x5d7   :  { %3051 = vxpose.xlu1.b32.cont [9/16] (narrow) %v3003_v38, 16  ;;  %3019 = vxpose.xlu0.b32.cont [9/16] (narrow) %v2987_v51, 16 }
 0x5db   :  { %3052 = vxpose.xlu1.b32.cont [10/16] (narrow) %v3004_v12, 16  ;;  %3020 = vxpose.xlu0.b32.cont [10/16] (narrow) %v2988_v32, 16 }
 0x5df   :  { %3053 = vxpose.xlu1.b32.cont [11/16] (narrow) %v3005_v39, 16  ;;  %3021 = vxpose.xlu0.b32.cont [11/16] (narrow) %v2989_v11, 16 }
 0x5e3   :  { %3054 = vxpose.xlu1.b32.cont [12/16] (narrow) %v3006_v18, 16  ;;  %3022 = vxpose.xlu0.b32.cont [12/16] (narrow) %v2990_v17, 16 }
 0x5e7   :  { %3055 = vxpose.xlu1.b32.cont [13/16] (narrow) %v3007_v44, 16  ;;  %3023 = vxpose.xlu0.b32.cont [13/16] (narrow) %v2991_v40, 16 }
 0x5eb   :  { %3056 = vxpose.xlu1.b32.cont [14/16] (narrow) %v6367_v60, 16  ;;  %3024 = vxpose.xlu0.b32.cont [14/16] (narrow) %v2992_v10, 16 }
 0x5ef   :  { %3057 = vxpose.xlu1.b32.cont [15/16] (narrow) %v3009_v7, 16  ;;  %3025 = vxpose.xlu0.b32.cont [15/16] (narrow) %v2993_v34, 16 }
 0x5f3   :  { %3058 = vxpose.xlu1.b32.end [16/16] (narrow) %v3010_v2, 16  ;;  %3026 = vxpose.xlu0.b32.end [16/16] (narrow) %v2994_v62, 16 }
 0x637   :  { %v3059_v6 = vpop.trf.xlu1  ;;  %v3027_v29 = vpop.trf.xlu0 }
 0x638   :  { %3077 = vst [vmem:[#allocation8 + $0x10] sm:$0xff] %v3059_v6  ;;  %3075 = vst [vmem:[#allocation8] sm:$0xff] %v3027_v29 }
 0x63b   :  { %v3060_v46 = vpop.trf.xlu1  ;;  %v3028_v61 = vpop.trf.xlu0 }
 0x63c   :  { %3078 = vst [vmem:[#allocation8 + $0x18] sm:$0xff] %v3060_v46  ;;  %3076 = vst [vmem:[#allocation8 + $0x8] sm:$0xff] %v3028_v61 }
 0x63d   :  { %3655 = shalt.err (!%p3652_p0)
}
 0x63e   :  { %s3656_s16 = scalar_lea.hbm %s6413_s10, 512 }
 0x63f   :  { %p3657_p1 = scmp.ne.s32.totalorder %s6413_s10, %s3656_s16  ;;  %p3660_p2 = scmp.lt.u32.totalorder %s3656_s16, %s6413_s10 }
 0x641   :  { %p3662_p3 = pnand %p3660_p2, %p3657_p1 }
 0x643   :  { %3665 = shalt.err (!%p3662_p3)
}
 0x644   :  { %3090 = dma.vmem_to_hbm [thread:$0]  %s3085_s9, 512, %s6413_s10, [#allocation4], %s3676_s1, %s3676_s1, %s3677_s14  }
 0x645   :  { %3670 = dma.done.wait [#allocation4], 512  }
 0x646   :  { %3671 = vsyncadd [#allocation4], 4294966784 }
 0x647   :  { %3094 = vsyncpa [#allocation3], 1 }
 0x648   :  { %3095 = vsyncpa [#allocation6], 1 }
 0x649   :  { %3096 = vsyncpa [#allocation4], 1 }

</bundles_post_ra>
